<compile_context>
chip_gen: v7x
topology: tpu7x:2x2x1
jax: 0.10.0
libtpu: 0.0.40
codegen_flags: <defaults>
</compile_context>

<pallas_src>
import functools

import jax
import jax.numpy as jnp
from jax import lax
from jax.experimental import pallas as pl
from jax.experimental.pallas import tpu as pltpu

_BN_EPS = 1e-5


# ----------------------------------------------------------------------------
# Fused BottleNeck kernel (one image per grid step, NHWC)
# ----------------------------------------------------------------------------
def _bottleneck_kernel(x_ref, w1_ref, w2_ref, w3_ref, b1_ref, b2_ref, b3_ref,
                       *rest, H, W, stride, has_proj, fuse_proj, Cmid, Cout):
    if has_proj and fuse_proj:
        bsc_ref, o_ref, pad_ref = rest
        wsc_ref = None
    elif has_proj:
        wsc_ref, bsc_ref, o_ref, pad_ref = rest
    else:
        o_ref, pad_ref = rest
        wsc_ref = bsc_ref = None

    Ho = (H - 1) // stride + 1
    Wo = (W - 1) // stride + 1

    # Zero the 1-wide halo exactly once; the interior is overwritten below on
    # every grid step, so the halo stays zero for all subsequent images.
    @pl.when(pl.program_id(0) == 0)
    def _zero_pad():
        pad_ref[...] = jnp.zeros_like(pad_ref)

    x = x_ref[0]                                     # (H, W, Cin) bf16
    Cin = x.shape[-1]
    xf = x.reshape(H * W, Cin)                       # bf16 MXU operand

    # ---- conv1 (+ fused projection shortcut when stride==1) -----------------
    if has_proj and fuse_proj:
        # w1_ref = [wsc | w1] along output channels: one matmul, then split.
        fused = jnp.dot(xf, w1_ref[...], preferred_element_type=jnp.float32)
        sc = fused[:, :Cout] + bsc_ref[0]                       # (H*W, Cout)
        t1 = jnp.maximum(fused[:, Cout:] + b1_ref[0], 0.0)      # (H*W, Cmid)
    else:
        t1 = jnp.maximum(
            jnp.dot(xf, w1_ref[...], preferred_element_type=jnp.float32)
            + b1_ref[0], 0.0)                                   # (H*W, Cmid)
        if has_proj:
            if stride == 1:
                xs = xf
            else:
                xs = x[::stride, ::stride, :].reshape(Ho * Wo, Cin)
            sc = (jnp.dot(xs, wsc_ref[...],
                          preferred_element_type=jnp.float32) + bsc_ref[0])
        else:
            # identity shortcut (stride == 1, Cin == Cout)
            sc = x.reshape(H * W, Cout).astype(jnp.float32)

    # ---- conv2: 3x3, pad=1, stride -> bias -> ReLU (im2col, one matmul) -----
    pad_ref[1:H + 1, 1:W + 1, :] = t1.reshape(H, W, Cmid)       # f32 scratch

    slabs = []
    if stride == 1:
        for kh in range(3):
            for kw in range(3):
                slab = pad_ref[kh:kh + Ho, kw:kw + Wo, :]
                slabs.append(slab.reshape(Ho * Wo, Cmid))
    else:
        padded = pad_ref[...]
        for kh in range(3):
            for kw in range(3):
                slab = lax.slice(
                    padded, (kh, kw, 0),
                    (kh + (Ho - 1) * stride + 1,
                     kw + (Wo - 1) * stride + 1, Cmid),
                    (stride, stride, 1))
                slabs.append(slab.reshape(Ho * Wo, Cmid))
    patches = jnp.concatenate(slabs, axis=-1).astype(jnp.bfloat16)
    t2 = jnp.maximum(
        jnp.dot(patches, w2_ref[...], preferred_element_type=jnp.float32)
        + b2_ref[0], 0.0)                                       # (Ho*Wo, Cmid)

    # ---- conv3 + residual add + final ReLU ----------------------------------
    # Accumulate the conv3 matmul onto the shortcut (one live f32 Cout value).
    out = sc + b3_ref[0] + jnp.dot(t2.astype(jnp.bfloat16), w3_ref[...],
                                   preferred_element_type=jnp.float32)
    out = jnp.maximum(out, 0.0)
    o_ref[0] = out.reshape(Ho, Wo, Cout).astype(o_ref.dtype)


# ----------------------------------------------------------------------------
# Host-side (one-time) parameter preparation: fold BN scale into weights,
# cast to bf16, im2col-reshape w2, optionally fuse conv1+projection weights.
# ----------------------------------------------------------------------------
def fold_bottleneck_params(params, *, stride):
    has_proj = "wsc" in params
    fuse_proj = has_proj and stride == 1

    w1 = params["w1"] * params["s1"][None, :]                   # (Cin, Cmid)
    w2 = params["w2"] * params["s2"][None, None, None, :]       # (3,3,Cmid,Cmid)
    w3 = params["w3"] * params["s3"][None, :]                   # (Cmid, Cout)

    folded = {
        "w2": w2.reshape(-1, w2.shape[-1]).astype(jnp.bfloat16),  # (9*Cmid, Cmid)
        "w3": w3.astype(jnp.bfloat16),
        "b1": params["b1"].reshape(1, -1).astype(jnp.float32),
        "b2": params["b2"].reshape(1, -1).astype(jnp.float32),
        "b3": params["b3"].reshape(1, -1).astype(jnp.float32),
    }
    if has_proj:
        wsc = params["wsc"] * params["ssc"][None, :]            # (Cin, Cout)
        folded["bsc"] = params["bsc"].reshape(1, -1).astype(jnp.float32)
        if fuse_proj:
            # [wsc | w1]: Cout first so the in-kernel split is lane-aligned.
            folded["w1"] = jnp.concatenate([wsc, w1], axis=1).astype(jnp.bfloat16)
        else:
            folded["w1"] = w1.astype(jnp.bfloat16)
            folded["wsc"] = wsc.astype(jnp.bfloat16)
    else:
        folded["w1"] = w1.astype(jnp.bfloat16)
    return folded, has_proj, fuse_proj


# ----------------------------------------------------------------------------
# Forward: NHWC bf16 in -> NHWC bf16 out (no layout transposes on the hot path)
# ----------------------------------------------------------------------------
def bottleneck_forward_nhwc(x_nhwc, folded, *, stride, has_proj, fuse_proj):
    x = x_nhwc.astype(jnp.bfloat16)
    N, H, W, Cin = x.shape
    Cmid = folded["w2"].shape[-1]
    Cout = folded["w3"].shape[-1]
    Ho = (H - 1) // stride + 1
    Wo = (W - 1) // stride + 1
    if not has_proj:
        assert stride == 1 and Cin == Cout, (
            "identity shortcut requires stride==1 and Cin==Cout")

    def full_spec(arr):
        nd = arr.ndim
        return pl.BlockSpec(arr.shape, lambda n, _nd=nd: (0,) * _nd)

    args = [x, folded["w1"], folded["w2"], folded["w3"],
            folded["b1"], folded["b2"], folded["b3"]]
    in_specs = [pl.BlockSpec((1, H, W, Cin), lambda n: (n, 0, 0, 0))]
    in_specs += [full_spec(a) for a in args[1:]]
    if has_proj:
        if not fuse_proj:
            args.append(folded["wsc"])
            in_specs.append(full_spec(folded["wsc"]))
        args.append(folded["bsc"])
        in_specs.append(full_spec(folded["bsc"]))

    kern = functools.partial(
        _bottleneck_kernel, H=H, W=W, stride=stride,
        has_proj=has_proj, fuse_proj=fuse_proj, Cmid=Cmid, Cout=Cout)

    return pl.pallas_call(
        kern,
        out_shape=jax.ShapeDtypeStruct((N, Ho, Wo, Cout), jnp.bfloat16),
        grid=(N,),
        in_specs=in_specs,
        out_specs=pl.BlockSpec((1, Ho, Wo, Cout), lambda n: (n, 0, 0, 0)),
        scratch_shapes=[pltpu.VMEM((H + 2, W + 2, Cmid), jnp.float32)],
        compiler_params=pltpu.CompilerParams(
            dimension_semantics=("parallel",),      # v7x: batch over both TCs
            vmem_limit_bytes=64 * 1024 * 1024),
    )(*args)


def bottleneck_forward_nchw(x_nchw, folded, *, stride, has_proj, fuse_proj):
    """Drop-in NCHW wrapper (adds two transposes; prefer the NHWC path)."""
    x = jnp.transpose(x_nchw, (0, 2, 3, 1))
    out = bottleneck_forward_nhwc(x, folded, stride=stride,
                                  has_proj=has_proj, fuse_proj=fuse_proj)
    return jnp.transpose(out, (0, 3, 1, 2))


# ----------------------------------------------------------------------------
# Deterministic synthetic parameters.  BatchNorm is evaluated with its initial
# running stats (mean=0, var=1); scale/bias are folded on the host.
# ----------------------------------------------------------------------------
def init_bottleneck(key, in_channels, out_channels, stride=1):
    expansion = 4
    cmid = out_channels
    cout = out_channels * expansion
    ks = jax.random.split(key, 12)

    def conv_w(k, kh, kw, cin, co):
        fan_in = cin * kh * kw
        return jax.random.normal(k, (kh, kw, cin, co), jnp.float32) / jnp.sqrt(
            jnp.float32(fan_in))

    def bn_fold(kg, kb, c):
        gamma = 1.0 + 0.1 * jax.random.normal(kg, (c,), jnp.float32)
        beta = 0.1 * jax.random.normal(kb, (c,), jnp.float32)
        running_mean = jnp.zeros((c,), jnp.float32)
        running_var = jnp.ones((c,), jnp.float32)
        scale = gamma / jnp.sqrt(running_var + _BN_EPS)
        bias = beta - running_mean * scale
        return scale, bias

    p = {}
    p["w1"] = conv_w(ks[0], 1, 1, in_channels, cmid)[0, 0]
    p["s1"], p["b1"] = bn_fold(ks[1], ks[2], cmid)
    p["w2"] = conv_w(ks[3], 3, 3, cmid, cmid)
    p["s2"], p["b2"] = bn_fold(ks[4], ks[5], cmid)
    p["w3"] = conv_w(ks[6], 1, 1, cmid, cout)[0, 0]
    p["s3"], p["b3"] = bn_fold(ks[7], ks[8], cout)
    if stride != 1 or in_channels != cout:
        p["wsc"] = conv_w(ks[9], 1, 1, in_channels, cout)[0, 0]
        p["ssc"], p["bsc"] = bn_fold(ks[10], ks[11], cout)
    return p


# ----------------------------------------------------------------------------
if __name__ == "__main__":
    key = jax.random.PRNGKey(0)
    k_x, k_p = jax.random.split(key)

    N, CIN, H, W = 2, 64, 16, 16
    OUT = 32            # bottleneck width; block output channels = OUT*4 = 128
    STRIDE = 1          # CIN (64) != OUT*4 (128) -> projection shortcut path

    x_nhwc = jax.random.normal(k_x, (N, H, W, CIN), jnp.float32).astype(
        jnp.bfloat16)
    params = init_bottleneck(k_p, CIN, OUT, STRIDE)
    folded, has_proj, fuse_proj = fold_bottleneck_params(params, stride=STRIDE)

    fwd = jax.jit(functools.partial(bottleneck_forward_nhwc, stride=STRIDE,
                                    has_proj=has_proj, fuse_proj=fuse_proj))
    out = fwd(x_nhwc, folded)
    jax.block_until_ready(out)

    assert out.shape == (N, H, W, OUT * 4), out.shape
    assert bool(jnp.all(jnp.isfinite(out.astype(jnp.float32))))
    print("KERNEL_OK")
</pallas_src>

<mosaic_0001>
module attributes {stable_mosaic.version = 11 : i64} {
  func.func @_bottleneck_kernel(%arg0: i32, %arg1: memref<1x16x16x64xbf16, #tpu.memory_space<vmem>>, %arg2: memref<64x160xbf16, #tpu.memory_space<vmem>>, %arg3: memref<288x32xbf16, #tpu.memory_space<vmem>>, %arg4: memref<32x128xbf16, #tpu.memory_space<vmem>>, %arg5: memref<1x32xf32, #tpu.memory_space<vmem>>, %arg6: memref<1x32xf32, #tpu.memory_space<vmem>>, %arg7: memref<1x128xf32, #tpu.memory_space<vmem>>, %arg8: memref<1x128xf32, #tpu.memory_space<vmem>>, %arg9: memref<1x16x16x128xbf16, #tpu.memory_space<vmem>>, %arg10: memref<18x18x32xf32, #tpu.memory_space<vmem>>) attributes {dimension_semantics = [#tpu.dimension_semantics<parallel>], iteration_bounds = array<i64: 2>, scalar_prefetch = 0 : i64, scratch_operands = 1 : i64, tpu.core_type = #tpu.core_type<tc>, window_params = [{transform_indices = @transform_0, window_bounds = array<i64: 1, 16, 16, 64>}, {pipeline_mode = #tpu.pipeline_mode<synchronous>, transform_indices = @transform_1, window_bounds = array<i64: 64, 160>}, {pipeline_mode = #tpu.pipeline_mode<synchronous>, transform_indices = @transform_2, window_bounds = array<i64: 288, 32>}, {pipeline_mode = #tpu.pipeline_mode<synchronous>, transform_indices = @transform_3, window_bounds = array<i64: 32, 128>}, {pipeline_mode = #tpu.pipeline_mode<synchronous>, transform_indices = @transform_4, window_bounds = array<i64: 1, 32>}, {pipeline_mode = #tpu.pipeline_mode<synchronous>, transform_indices = @transform_5, window_bounds = array<i64: 1, 32>}, {pipeline_mode = #tpu.pipeline_mode<synchronous>, transform_indices = @transform_6, window_bounds = array<i64: 1, 128>}, {pipeline_mode = #tpu.pipeline_mode<synchronous>, transform_indices = @transform_7, window_bounds = array<i64: 1, 128>}, {transform_indices = @transform_8, window_bounds = array<i64: 1, 16, 16, 128>}]} {
    %c0_i32 = arith.constant 0 : i32
    %0 = arith.cmpi eq, %arg0, %c0_i32 : i32
    %1 = arith.extui %0 : i1 to i32
    %c0_i32_0 = arith.constant 0 : i32
    %2 = arith.cmpi ne, %1, %c0_i32_0 : i32
    scf.if %2 {
      %cst_55 = arith.constant 0.000000e+00 : f32
      %69 = vector.broadcast %cst_55 : f32 to vector<18x18x32xf32>
      %c0_56 = arith.constant 0 : index
      %c0_57 = arith.constant 0 : index
      %c0_58 = arith.constant 0 : index
      %70 = vector.load %arg10[%c0_56, %c0_57, %c0_58] : memref<18x18x32xf32, #tpu.memory_space<vmem>>, vector<18x18x32xf32>
      tpu.vector_store %arg10[%c0_56, %c0_57, %c0_58], %69 {strides = array<i32>} : memref<18x18x32xf32, #tpu.memory_space<vmem>>, vector<18x18x32xf32>,
    } else {
    }
    %c0 = arith.constant 0 : index
    %c0_1 = arith.constant 0 : index
    %c0_2 = arith.constant 0 : index
    %c0_3 = arith.constant 0 : index
    %3 = vector.load %arg1[%c0, %c0_1, %c0_2, %c0_3] : memref<1x16x16x64xbf16, #tpu.memory_space<vmem>>, vector<1x16x16x64xbf16>
    %4 = vector.shape_cast %3 : vector<1x16x16x64xbf16> to vector<16x16x64xbf16>
    %5 = vector.shape_cast %4 : vector<16x16x64xbf16> to vector<256x64xbf16>
    %c0_4 = arith.constant 0 : index
    %c0_5 = arith.constant 0 : index
    %6 = vector.load %arg2[%c0_4, %c0_5] : memref<64x160xbf16, #tpu.memory_space<vmem>>, vector<64x160xbf16>
    %cst = arith.constant dense<0.000000e+00> : vector<256x160xf32>
    %7 = tpu.matmul %5, %6, %cst {dimension_numbers = #tpu.dot_dimension_numbers<[1], [0], [0], [1], [0, 0, 1, 1], [], []>} : vector<256x64xbf16>, vector<64x160xbf16>, vector<256x160xf32> -> vector<256x160xf32>
    %8 = vector.extract_strided_slice %7 {offsets = [0, 0], sizes = [256, 128], strides = [1, 1]} : vector<256x160xf32> to vector<256x128xf32>
    %c0_6 = arith.constant 0 : index
    %c0_7 = arith.constant 0 : index
    %9 = vector.load %arg8[%c0_6, %c0_7] : memref<1x128xf32, #tpu.memory_space<vmem>>, vector<1x128xf32>
    %10 = vector.shape_cast %9 : vector<1x128xf32> to vector<128xf32>
    %11 = vector.shape_cast %10 : vector<128xf32> to vector<1x128xf32>
    %12 = vector.broadcast %11 : vector<1x128xf32> to vector<256x128xf32>
    %13 = arith.addf %8, %12 : vector<256x128xf32>
    %14 = vector.extract_strided_slice %7 {offsets = [0, 128], sizes = [256, 32], strides = [1, 1]} : vector<256x160xf32> to vector<256x32xf32>
    %c0_8 = arith.constant 0 : index
    %c0_9 = arith.constant 0 : index
    %15 = vector.load %arg5[%c0_8, %c0_9] : memref<1x32xf32, #tpu.memory_space<vmem>>, vector<1x32xf32>
    %16 = vector.shape_cast %15 : vector<1x32xf32> to vector<32xf32>
    %17 = vector.shape_cast %16 : vector<32xf32> to vector<1x32xf32>
    %18 = vector.broadcast %17 : vector<1x32xf32> to vector<256x32xf32>
    %19 = arith.addf %14, %18 : vector<256x32xf32>
    %cst_10 = arith.constant 0.000000e+00 : f32
    %20 = vector.broadcast %cst_10 : f32 to vector<256x32xf32>
    %21 = arith.maximumf %19, %20 : vector<256x32xf32>
    %22 = vector.shape_cast %21 : vector<256x32xf32> to vector<16x16x32xf32>
    %c1 = arith.constant 1 : index
    %c1_11 = arith.constant 1 : index
    %c0_12 = arith.constant 0 : index
    %23 = vector.load %arg10[%c1, %c1_11, %c0_12] : memref<18x18x32xf32, #tpu.memory_space<vmem>>, vector<16x16x32xf32>
    tpu.vector_store %arg10[%c1, %c1_11, %c0_12], %22 {strides = array<i32>} : memref<18x18x32xf32, #tpu.memory_space<vmem>>, vector<16x16x32xf32>,
    %c0_13 = arith.constant 0 : index
    %c0_14 = arith.constant 0 : index
    %c0_15 = arith.constant 0 : index
    %24 = vector.load %arg10[%c0_13, %c0_14, %c0_15] : memref<18x18x32xf32, #tpu.memory_space<vmem>>, vector<16x16x32xf32>
    %25 = vector.shape_cast %24 : vector<16x16x32xf32> to vector<256x32xf32>
    %c0_16 = arith.constant 0 : index
    %c1_17 = arith.constant 1 : index
    %c0_18 = arith.constant 0 : index
    %26 = vector.load %arg10[%c0_16, %c1_17, %c0_18] : memref<18x18x32xf32, #tpu.memory_space<vmem>>, vector<16x16x32xf32>
    %27 = vector.shape_cast %26 : vector<16x16x32xf32> to vector<256x32xf32>
    %c0_19 = arith.constant 0 : index
    %c2 = arith.constant 2 : index
    %c0_20 = arith.constant 0 : index
    %28 = vector.load %arg10[%c0_19, %c2, %c0_20] : memref<18x18x32xf32, #tpu.memory_space<vmem>>, vector<16x16x32xf32>
    %29 = vector.shape_cast %28 : vector<16x16x32xf32> to vector<256x32xf32>
    %c1_21 = arith.constant 1 : index
    %c0_22 = arith.constant 0 : index
    %c0_23 = arith.constant 0 : index
    %30 = vector.load %arg10[%c1_21, %c0_22, %c0_23] : memref<18x18x32xf32, #tpu.memory_space<vmem>>, vector<16x16x32xf32>
    %31 = vector.shape_cast %30 : vector<16x16x32xf32> to vector<256x32xf32>
    %c1_24 = arith.constant 1 : index
    %c1_25 = arith.constant 1 : index
    %c0_26 = arith.constant 0 : index
    %32 = vector.load %arg10[%c1_24, %c1_25, %c0_26] : memref<18x18x32xf32, #tpu.memory_space<vmem>>, vector<16x16x32xf32>
    %33 = vector.shape_cast %32 : vector<16x16x32xf32> to vector<256x32xf32>
    %c1_27 = arith.constant 1 : index
    %c2_28 = arith.constant 2 : index
    %c0_29 = arith.constant 0 : index
    %34 = vector.load %arg10[%c1_27, %c2_28, %c0_29] : memref<18x18x32xf32, #tpu.memory_space<vmem>>, vector<16x16x32xf32>
    %35 = vector.shape_cast %34 : vector<16x16x32xf32> to vector<256x32xf32>
    %c2_30 = arith.constant 2 : index
    %c0_31 = arith.constant 0 : index
    %c0_32 = arith.constant 0 : index
    %36 = vector.load %arg10[%c2_30, %c0_31, %c0_32] : memref<18x18x32xf32, #tpu.memory_space<vmem>>, vector<16x16x32xf32>
    %37 = vector.shape_cast %36 : vector<16x16x32xf32> to vector<256x32xf32>
    %c2_33 = arith.constant 2 : index
    %c1_34 = arith.constant 1 : index
    %c0_35 = arith.constant 0 : index
    %38 = vector.load %arg10[%c2_33, %c1_34, %c0_35] : memref<18x18x32xf32, #tpu.memory_space<vmem>>, vector<16x16x32xf32>
    %39 = vector.shape_cast %38 : vector<16x16x32xf32> to vector<256x32xf32>
    %c2_36 = arith.constant 2 : index
    %c2_37 = arith.constant 2 : index
    %c0_38 = arith.constant 0 : index
    %40 = vector.load %arg10[%c2_36, %c2_37, %c0_38] : memref<18x18x32xf32, #tpu.memory_space<vmem>>, vector<16x16x32xf32>
    %41 = vector.shape_cast %40 : vector<16x16x32xf32> to vector<256x32xf32>
    %42 = tpu.concatenate %25, %27, %29, %31, %33, %35, %37, %39, %41 in 1 : vector<256x32xf32>, vector<256x32xf32>, vector<256x32xf32>, vector<256x32xf32>, vector<256x32xf32>, vector<256x32xf32>, vector<256x32xf32>, vector<256x32xf32>, vector<256x32xf32> -> vector<256x288xf32>
    %43 = arith.truncf %42 : vector<256x288xf32> to vector<256x288xbf16>
    %c0_39 = arith.constant 0 : index
    %c0_40 = arith.constant 0 : index
    %44 = vector.load %arg3[%c0_39, %c0_40] : memref<288x32xbf16, #tpu.memory_space<vmem>>, vector<288x32xbf16>
    %cst_41 = arith.constant dense<0.000000e+00> : vector<256x32xf32>
    %45 = tpu.matmul %43, %44, %cst_41 {dimension_numbers = #tpu.dot_dimension_numbers<[1], [0], [0], [1], [0, 0, 1, 1], [], []>} : vector<256x288xbf16>, vector<288x32xbf16>, vector<256x32xf32> -> vector<256x32xf32>
    %c0_42 = arith.constant 0 : index
    %c0_43 = arith.constant 0 : index
    %46 = vector.load %arg6[%c0_42, %c0_43] : memref<1x32xf32, #tpu.memory_space<vmem>>, vector<1x32xf32>
    %47 = vector.shape_cast %46 : vector<1x32xf32> to vector<32xf32>
    %48 = vector.shape_cast %47 : vector<32xf32> to vector<1x32xf32>
    %49 = vector.broadcast %48 : vector<1x32xf32> to vector<256x32xf32>
    %50 = arith.addf %45, %49 : vector<256x32xf32>
    %cst_44 = arith.constant 0.000000e+00 : f32
    %51 = vector.broadcast %cst_44 : f32 to vector<256x32xf32>
    %52 = arith.maximumf %50, %51 : vector<256x32xf32>
    %c0_45 = arith.constant 0 : index
    %c0_46 = arith.constant 0 : index
    %53 = vector.load %arg7[%c0_45, %c0_46] : memref<1x128xf32, #tpu.memory_space<vmem>>, vector<1x128xf32>
    %54 = vector.shape_cast %53 : vector<1x128xf32> to vector<128xf32>
    %55 = vector.shape_cast %54 : vector<128xf32> to vector<1x128xf32>
    %56 = vector.broadcast %55 : vector<1x128xf32> to vector<256x128xf32>
    %57 = arith.addf %13, %56 : vector<256x128xf32>
    %58 = arith.truncf %52 : vector<256x32xf32> to vector<256x32xbf16>
    %c0_47 = arith.constant 0 : index
    %c0_48 = arith.constant 0 : index
    %59 = vector.load %arg4[%c0_47, %c0_48] : memref<32x128xbf16, #tpu.memory_space<vmem>>, vector<32x128xbf16>
    %cst_49 = arith.constant dense<0.000000e+00> : vector<256x128xf32>
    %60 = tpu.matmul %58, %59, %cst_49 {dimension_numbers = #tpu.dot_dimension_numbers<[1], [0], [0], [1], [0, 0, 1, 1], [], []>} : vector<256x32xbf16>, vector<32x128xbf16>, vector<256x128xf32> -> vector<256x128xf32>
    %61 = arith.addf %57, %60 : vector<256x128xf32>
    %cst_50 = arith.constant 0.000000e+00 : f32
    %62 = vector.broadcast %cst_50 : f32 to vector<256x128xf32>
    %63 = arith.maximumf %61, %62 : vector<256x128xf32>
    %64 = vector.shape_cast %63 : vector<256x128xf32> to vector<16x16x128xf32>
    %65 = arith.truncf %64 : vector<16x16x128xf32> to vector<16x16x128xbf16>
    %c0_51 = arith.constant 0 : index
    %c0_52 = arith.constant 0 : index
    %c0_53 = arith.constant 0 : index
    %c0_54 = arith.constant 0 : index
    %66 = vector.load %arg9[%c0_51, %c0_52, %c0_53, %c0_54] : memref<1x16x16x128xbf16, #tpu.memory_space<vmem>>, vector<1x16x16x128xbf16>
    %67 = vector.shape_cast %66 : vector<1x16x16x128xbf16> to vector<16x16x128xbf16>
    %68 = vector.shape_cast %65 : vector<16x16x128xbf16> to vector<1x16x16x128xbf16>
    tpu.vector_store %arg9[%c0_51, %c0_52, %c0_53, %c0_54], %68 {strides = array<i32>} : memref<1x16x16x128xbf16, #tpu.memory_space<vmem>>, vector<1x16x16x128xbf16>,
    return
  }
  func.func @transform_0(%arg0: i32) -> (i32, i32, i32, i32) {
    %c0_i32 = arith.constant 0 : i32
    %c0_i32_0 = arith.constant 0 : i32
    %c0_i32_1 = arith.constant 0 : i32
    %c0_i32_2 = arith.constant 0 : i32
    return %arg0, %c0_i32, %c0_i32_0, %c0_i32_1 : i32, i32, i32, i32
  }
  func.func @transform_1(%arg0: i32) -> (i32, i32) {
    %c0_i32 = arith.constant 0 : i32
    %c0_i32_0 = arith.constant 0 : i32
    %c0_i32_1 = arith.constant 0 : i32
    return %c0_i32, %c0_i32_0 : i32, i32
  }
  func.func @transform_2(%arg0: i32) -> (i32, i32) {
    %c0_i32 = arith.constant 0 : i32
    %c0_i32_0 = arith.constant 0 : i32
    %c0_i32_1 = arith.constant 0 : i32
    return %c0_i32, %c0_i32_0 : i32, i32
  }
  func.func @transform_3(%arg0: i32) -> (i32, i32) {
    %c0_i32 = arith.constant 0 : i32
    %c0_i32_0 = arith.constant 0 : i32
    %c0_i32_1 = arith.constant 0 : i32
    return %c0_i32, %c0_i32_0 : i32, i32
  }
  func.func @transform_4(%arg0: i32) -> (i32, i32) {
    %c0_i32 = arith.constant 0 : i32
    %c0_i32_0 = arith.constant 0 : i32
    %c0_i32_1 = arith.constant 0 : i32
    return %c0_i32, %c0_i32_0 : i32, i32
  }
  func.func @transform_5(%arg0: i32) -> (i32, i32) {
    %c0_i32 = arith.constant 0 : i32
    %c0_i32_0 = arith.constant 0 : i32
    %c0_i32_1 = arith.constant 0 : i32
    return %c0_i32, %c0_i32_0 : i32, i32
  }
  func.func @transform_6(%arg0: i32) -> (i32, i32) {
    %c0_i32 = arith.constant 0 : i32
    %c0_i32_0 = arith.constant 0 : i32
    %c0_i32_1 = arith.constant 0 : i32
    return %c0_i32, %c0_i32_0 : i32, i32
  }
  func.func @transform_7(%arg0: i32) -> (i32, i32) {
    %c0_i32 = arith.constant 0 : i32
    %c0_i32_0 = arith.constant 0 : i32
    %c0_i32_1 = arith.constant 0 : i32
    return %c0_i32, %c0_i32_0 : i32, i32
  }
  func.func @transform_8(%arg0: i32) -> (i32, i32, i32, i32) {
    %c0_i32 = arith.constant 0 : i32
    %c0_i32_0 = arith.constant 0 : i32
    %c0_i32_1 = arith.constant 0 : i32
    %c0_i32_2 = arith.constant 0 : i32
    return %arg0, %c0_i32, %c0_i32_0, %c0_i32_1 : i32, i32, i32, i32
  }
}

</mosaic_0001>

<bundles_post_ra>
// kernel: bottleneck_forward_nhwc.1
= control target key start
LH: loop header
LB: loop body
LE: loop exit
PB: predicated region body
PF: predicated region fallthrough
CT: control target
= control target key end

     0   :  { %s6365_s0 = inlined_call_operand.hbm [shape: bf16[2,16,16,64], index: 0, kind: input, shape index: {}]   ;;  %s6366_s1 = inlined_call_operand.hbm [shape: bf16[64,160], index: 1, kind: input, shape index: {}]   ;;  %s6367_s2 = inlined_call_operand.hbm [shape: bf16[288,32], index: 2, kind: input, shape index: {}]   ;;  %s6368_s3 = inlined_call_operand.hbm [shape: bf16[32,128], index: 3, kind: input, shape index: {}]   ;;  %s6369_s4 = inlined_call_operand.hbm [shape: f32[1,32], index: 4, kind: input, shape index: {}]   ;;  %s6370_s5 = inlined_call_operand.hbm [shape: f32[1,32], index: 5, kind: input, shape index: {}]   ;;  %s6371_s6 = inlined_call_operand.hbm [shape: f32[1,128], index: 6, kind: input, shape index: {}]   ;;  %s6372_s7 = inlined_call_operand.hbm [shape: f32[1,128], index: 7, kind: input, shape index: {}]   ;;  %s6373_s8 = inlined_call_operand.hbm [shape: bf16[2,16,16,128], index: 8, kind: output, shape index: {}]  }
   0x1   :  { %6380 = sst [smem:[#allocation38_spill]] %s6366_s1 }
   0x2   :  { %13 = vsyncpa [#allocation4], 0 }
   0x3   :  { %15 = vsyncpa [#allocation4 + $0x1], 0 }
   0x4   :  { %16 = vsyncpa [#allocation7], 0 }
   0x5   :  { %17 = vsyncpa [#allocation10], 0 }
   0x6   :  { %18 = vsyncpa [#allocation13], 0 }
   0x7   :  { %19 = vsyncpa [#allocation16], 0 }
   0x8   :  { %20 = vsyncpa [#allocation5], 0 }
   0x9   :  { %22 = vsyncpa [#allocation5 + $0x1], 0  ;;  %s5087_s27 = smov 0   ;;  %s5089_s28 = smov 0  }
   0xa   :  { %s5091_s29 = smov 0   ;;  %s5093_s30 = smov 0  }
   0xb LB: > { %s5023_s9 = smov [#allocation6]   ;;  %s5108_s11 = sadd.s32 4294967295, %s5021_s30   ;;  %s5021_s30 = sphi %s5093_s30, %s6436_s30   ;;  %s5017_s29 = sphi %s5091_s29, %s6435_s29   ;;  %s5013_s28 = sphi %s5089_s28, %s6434_s28   ;;  %s5009_s27 = sphi %s5087_s27, %s6433_s27  }
   0xc   : > { %s244_s10 = sshll.u32 %s5023_s9, 4  ;;  %p3535_p0 = scmp.ge.s32.totalorder %s5021_s30, 1  ;;  %s5114_s10 = int_to_ptr.vmem [resolvable:$true] %s244_s10 }
   0xd   : > { %p6374_p1 = scmp.eq.s32.totalorder %s5108_s11, 0  ;;  %p232_p2 = scmp.lt.s32.totalorder %s5021_s30, 3 }
   0xe   : > { %s5024_s14 = smov [#allocation9]   ;;  %s5025_s16 = smov [#allocation12]  }
   0xf   : > { %p5116_p4 = pnand %p3535_p0, %p232_p2  ;;  %s270_s15 = sshll.u32 %s5024_s14, 4  ;;  %s5129_s15 = int_to_ptr.vmem [resolvable:$true] %s270_s15 }
  0x10   : > { %s5131_s17 = sshll.u32 %s5025_s16, 4  ;;  %s6383_s1 = sld [smem:[#allocation38_spill]]  ;;  %s296_s17 = int_to_ptr.vmem [resolvable:$true] %s5131_s17 }
  0x11   : > { %s6381_s12 = scalar_select %p5116_p4, 1, 0 }
  0x12   : > { %p4088_p6 = pneg %p5116_p4 }
  0x14   : > { %p5125_p7 = pnand %p4088_p6, %p6374_p1 }
  0x16   : > { %s4713_s20 = scalar_lea.hbm %s6383_s1, 1024  ;;  %p5141_p9 = pneg %p5125_p7 }
  0x17   : > { %p4714_p8 = scmp.ne.s32.totalorder %s6383_s1, %s4713_s20  ;;  %p4720_p12 = scmp.lt.u32.totalorder %s4713_s20, %s6383_s1 }
  0x19   : > { %p4716_p10 = pnand %p5141_p9, %p4714_p8 }
  0x1b   : > { %p4717_p11 = pneg %p4716_p10 }
  0x1d   : > { %p4722_p13 = pnand %p4720_p12, %p4717_p11 }
  0x1f   : > { %4725 = shalt.err (!%p4722_p13)
}
  0x20   : > { %s4726_s26 = scalar_lea.vmem %s5114_s10, 1024  ;;  %p4734_p5 = scmp.lt.s32.totalorder %s5114_s10, %s5114_s10 }
  0x21   : > { %p4727_p0 = scmp.ne.s32.totalorder %s5114_s10, %s4726_s26  ;;  %p4735_p3 = scmp.lt.s32.totalorder %s4726_s26, %s4726_s26 }
  0x23   : > { %p4729_p2 = pnand %p4727_p0, %p5141_p9  ;;  %p4736_p8 = por %p4735_p3, %p4734_p5 }
  0x25   : > { %p4730_p6 = pneg %p4729_p2 }
  0x27   : > { %p4737_p10 = pnand %p4736_p8, %p4730_p6 }
  0x29   : > { %4740 = shalt.err (!%p4737_p10)
}
  0x2a   : > { %s5026_s9 = smov 128   ;;  %s5027_s14 = smov 8  }
  0x2b   : > { %4091 = dma.hbm_to_vmem [thread:$0]  (!%p5125_p7), %s6383_s1, 1024, %s5114_s10, [#allocation7], %s5026_s9, %s5026_s9, %s5027_s14  }
  0x2c   : > { %s4741_s21 = scalar_lea.hbm %s6368_s3, 256 }
  0x2d   : > { %p4742_p3 = scmp.ne.s32.totalorder %s6368_s3, %s4741_s21  ;;  %p4748_p12 = scmp.lt.u32.totalorder %s4741_s21, %s6368_s3 }
  0x2f   : > { %p4744_p5 = pnand %p4742_p3, %p5141_p9 }
  0x31   : > { %p4745_p11 = pneg %p4744_p5 }
  0x33   : > { %p4750_p13 = pnand %p4748_p12, %p4745_p11 }
  0x35   : > { %4753 = shalt.err (!%p4750_p13)
}
  0x36   : > { %s4754_s10 = scalar_lea.vmem %s5129_s15, 256  ;;  %p4762_p8 = scmp.lt.s32.totalorder %s5129_s15, %s5129_s15 }
  0x37   : > { %p4755_p0 = scmp.ne.s32.totalorder %s5129_s15, %s4754_s10  ;;  %p4763_p10 = scmp.lt.s32.totalorder %s4754_s10, %s4754_s10 }
  0x39   : > { %p4757_p2 = pnand %p4755_p0, %p5141_p9  ;;  %p4764_p3 = por %p4763_p10, %p4762_p8 }
  0x3b   : > { %p4758_p6 = pneg %p4757_p2 }
  0x3d   : > { %p4765_p5 = pnand %p4764_p3, %p4758_p6 }
  0x3f   : > { %4768 = shalt.err (!%p4765_p5)
}
  0x40   : > { %s6376_s9 = smov 64   ;;  %s6378_s14 = smov 4  }
  0x41   : > { %4097 = dma.hbm_to_vmem [thread:$0]  (!%p5125_p7), %s6368_s3, 256, %s5129_s15, [#allocation10], %s6376_s9, %s6376_s9, %s6378_s14  }
  0x42   : > { %s4769_s21 = scalar_lea.hbm %s6370_s5, 16 }
  0x43   : > { %p4770_p11 = scmp.ne.s32.totalorder %s6370_s5, %s4769_s21  ;;  %p4776_p0 = scmp.lt.u32.totalorder %s4769_s21, %s6370_s5 }
  0x45   : > { %p4772_p12 = pnand %p4770_p11, %p5141_p9 }
  0x47   : > { %p4773_p13 = pneg %p4772_p12 }
  0x49   : > { %p4778_p2 = pnand %p4776_p0, %p4773_p13 }
  0x4b   : > { %4781 = shalt.err (!%p4778_p2)
}
  0x4c   : > { %s4782_s10 = scalar_lea.vmem %s296_s17, 16  ;;  %s4789_s15 = scalar_lea.vmem %s296_s17, 32 }
  0x4d   : > { %p4783_p6 = scmp.ne.s32.totalorder %s296_s17, %s4782_s10  ;;  %p4790_p3 = scmp.lt.s32.totalorder %s296_s17, %s296_s17 }
  0x4e   : > { %p4791_p5 = scmp.lt.s32.totalorder %s4789_s15, %s4782_s10 }
  0x4f   : > { %p4785_p8 = pnand %p4783_p6, %p5141_p9 }
  0x50   : > { %p4792_p1 = por %p4791_p5, %p4790_p3 }
  0x51   : > { %p4786_p10 = pneg %p4785_p8 }
  0x53   : > { %p4793_p4 = pnand %p4792_p1, %p4786_p10 }
  0x55   : > { %4796 = shalt.err (!%p4793_p4)
}
  0x56   : > { %4103 = dma.hbm_to_vmem [thread:$0]  (!%p5125_p7), %s6370_s5, 16, %s296_s17, [#allocation13]  }
  0x57   : > { %s5030_s19 = smov [#allocation8]   ;;  %s5031_s21 = smov [#allocation11]  }
  0x58   : > { %s257_s20 = sshll.u32 %s5030_s19, 4  ;;  %s284_s22 = sshll.u32 %s5031_s21, 4  ;;  %s258_s20 = int_to_ptr.vmem [resolvable:$true] %s257_s20  ;;  %s285_s22 = int_to_ptr.vmem [resolvable:$true] %s284_s22 }
  0x59   : > { %s4797_s26 = scalar_lea.hbm %s6367_s2, 2304 }
  0x5a   : > { %p4798_p1 = scmp.ne.s32.totalorder %s6367_s2, %s4797_s26  ;;  %p4804_p12 = scmp.lt.u32.totalorder %s4797_s26, %s6367_s2 }
  0x5c   : > { %p4800_p4 = pnand %p4798_p1, %p5141_p9 }
  0x5e   : > { %p4801_p11 = pneg %p4800_p4 }
  0x60   : > { %p4806_p13 = pnand %p4804_p12, %p4801_p11 }
  0x62   : > { %4809 = shalt.err (!%p4806_p13)
}
  0x63   : > { %s4810_s17 = scalar_lea.vmem %s258_s20, 2304  ;;  %p4818_p8 = scmp.lt.s32.totalorder %s258_s20, %s258_s20 }
  0x64   : > { %p4811_p0 = scmp.ne.s32.totalorder %s258_s20, %s4810_s17  ;;  %p4819_p10 = scmp.lt.s32.totalorder %s4810_s17, %s4810_s17 }
  0x66   : > { %p4813_p2 = pnand %p4811_p0, %p5141_p9  ;;  %p4820_p3 = por %p4819_p10, %p4818_p8 }
  0x68   : > { %p4814_p6 = pneg %p4813_p2 }
  0x6a   : > { %p4821_p5 = pnand %p4820_p3, %p4814_p6 }
  0x6c   : > { %4824 = shalt.err (!%p4821_p5)
}
  0x6d   : > { %s6385_s18 = smov 64   ;;  %s4825_s25 = scalar_lea.hbm %s6369_s4, 16 }
  0x6e   : > { %4094 = dma.hbm_to_vmem [thread:$0]  (!%p5125_p7), %s6367_s2, 2304, %s258_s20, [#allocation7], %s6385_s18, %s6385_s18, %s6378_s14  }
  0x6f   : > { %p4826_p1 = scmp.ne.s32.totalorder %s6369_s4, %s4825_s25  ;;  %p4832_p12 = scmp.lt.u32.totalorder %s4825_s25, %s6369_s4 }
  0x71   : > { %p4828_p4 = pnand %p4826_p1, %p5141_p9 }
  0x73   : > { %p4829_p11 = pneg %p4828_p4 }
  0x75   : > { %p4834_p13 = pnand %p4832_p12, %p4829_p11 }
  0x77   : > { %4837 = shalt.err (!%p4834_p13)
}
  0x78   : > { %s4838_s17 = scalar_lea.vmem %s285_s22, 16  ;;  %s4845_s20 = scalar_lea.vmem %s285_s22, 32 }
  0x79   : > { %p4839_p0 = scmp.ne.s32.totalorder %s285_s22, %s4838_s17  ;;  %p4846_p8 = scmp.lt.s32.totalorder %s285_s22, %s285_s22 }
  0x7a   : > { %p4847_p10 = scmp.lt.s32.totalorder %s4845_s20, %s4838_s17 }
  0x7b   : > { %p4841_p2 = pnand %p4839_p0, %p5141_p9 }
  0x7c   : > { %p4848_p3 = por %p4847_p10, %p4846_p8 }
  0x7d   : > { %p4842_p6 = pneg %p4841_p2 }
  0x7f   : > { %p4849_p5 = pnand %p4848_p3, %p4842_p6 }
  0x81   : > { %4852 = shalt.err (!%p4849_p5)
}
  0x82   : > { %4100 = dma.hbm_to_vmem [thread:$0]  (!%p5125_p7), %s6369_s4, 16, %s285_s22, [#allocation10]  }
  0x83   : > { %s5032_s21 = smov [#allocation14]   ;;  %s5033_s25 = smov [#allocation15]  }
  0x84   : > { %s306_s24 = sshll.u32 %s5032_s21, 4  ;;  %s317_s26 = sshll.u32 %s5033_s25, 4  ;;  %s307_s24 = int_to_ptr.vmem [resolvable:$true] %s306_s24  ;;  %s318_s26 = int_to_ptr.vmem [resolvable:$true] %s317_s26 }
  0x85   : > { %s4853_s16 = scalar_lea.hbm %s6371_s6, 16 }
  0x86   : > { %p4854_p1 = scmp.ne.s32.totalorder %s6371_s6, %s4853_s16  ;;  %p4860_p12 = scmp.lt.u32.totalorder %s4853_s16, %s6371_s6 }
  0x88   : > { %p4856_p4 = pnand %p4854_p1, %p5141_p9 }
  0x8a   : > { %p4857_p11 = pneg %p4856_p4 }
  0x8c   : > { %p4862_p13 = pnand %p4860_p12, %p4857_p11 }
  0x8e   : > { %4865 = shalt.err (!%p4862_p13)
}
  0x8f   : > { %s4866_s22 = scalar_lea.vmem %s307_s24, 16  ;;  %s4873_s19 = scalar_lea.vmem %s307_s24, 32 }
  0x90   : > { %p4867_p0 = scmp.ne.s32.totalorder %s307_s24, %s4866_s22  ;;  %p4874_p8 = scmp.lt.s32.totalorder %s307_s24, %s307_s24 }
  0x91   : > { %p4875_p10 = scmp.lt.s32.totalorder %s4873_s19, %s4866_s22 }
  0x92   : > { %p4869_p2 = pnand %p4867_p0, %p5141_p9 }
  0x93   : > { %p4876_p3 = por %p4875_p10, %p4874_p8 }
  0x94   : > { %p4870_p6 = pneg %p4869_p2 }
  0x96   : > { %p4877_p5 = pnand %p4876_p3, %p4870_p6 }
  0x98   : > { %4880 = shalt.err (!%p4877_p5)
}
  0x99   : > { %4106 = dma.hbm_to_vmem [thread:$0]  (!%p5125_p7), %s6371_s6, 16, %s307_s24, [#allocation13]  }
  0x9a   : > { %s4881_s15 = scalar_lea.hbm %s6372_s7, 16 }
  0x9b   : > { %p4882_p1 = scmp.ne.s32.totalorder %s6372_s7, %s4881_s15  ;;  %p4888_p12 = scmp.lt.u32.totalorder %s4881_s15, %s6372_s7 }
  0x9d   : > { %p4884_p4 = pnand %p4882_p1, %p5141_p9 }
  0x9f   : > { %p4885_p11 = pneg %p4884_p4 }
  0xa1   : > { %p4890_p13 = pnand %p4888_p12, %p4885_p11 }
  0xa3   : > { %4893 = shalt.err (!%p4890_p13)
}
  0xa4   : > { %s4894_s22 = scalar_lea.vmem %s318_s26, 16  ;;  %s4901_s24 = scalar_lea.vmem %s318_s26, 32 }
  0xa5   : > { %p4895_p0 = scmp.ne.s32.totalorder %s318_s26, %s4894_s22  ;;  %p4902_p8 = scmp.lt.s32.totalorder %s318_s26, %s318_s26 }
  0xa6   : > { %p4903_p10 = scmp.lt.s32.totalorder %s4901_s24, %s4894_s22 }
  0xa7   : > { %p4897_p2 = pnand %p4895_p0, %p5141_p9 }
  0xa8   : > { %p4904_p3 = por %p4903_p10, %p4902_p8 }
  0xa9   : > { %p4898_p6 = pneg %p4897_p2 }
  0xab   : > { %p4905_p5 = pnand %p4904_p3, %p4898_p6 }
  0xad   : > { %4908 = shalt.err (!%p4905_p5)
}
  0xae   : > { %4109 = dma.hbm_to_vmem [thread:$0]  (!%p5125_p7), %s6372_s7, 16, %s318_s26, [#allocation16]  }
  0xaf   : > { %s3534_s23 = sadd.s32 4294967294, %s5021_s30   ;;  %s5284_s13 = sadd.s32 1, %s5021_s30  }
  0xb0   : > { %s35_s25 = sadd.s32 1, %s5017_s29  ;;  %s32_s14 = ssub.s32 %s5021_s30, %s5284_s13 }
  0xb1   : > { %p42_p9 = scmp.ne.s32.totalorder %s5017_s29, %s5013_s28  ;;  %p33_p1 = scmp.eq.s32.totalorder %s32_s14, 0 }
  0xb2   : > { %p43_p4 = scmp.eq.s32.totalorder %s5021_s30, 0  ;;  %p48_p11 = scmp.ne.s32.totalorder %s5013_s28, %s5009_s27 }
  0xb3   : > { %p219_p12 = scmp.eq.s32.totalorder %s5108_s11, 1  ;;  %p6386_p0 = scmp.eq.s32.totalorder %s5108_s11, 0 }
  0xb4   : > { %s5296_s10 = scalar_select %p33_p1, %s5017_s29, %s35_s25  }
  0xb5   : > { %p44_p13 = por %p43_p4, %p42_p9  ;;  %p5300_p2 = por %p6386_p0, %p48_p11 }
  0xb6   : > { %p5304_p7 = por %p219_p12, %p42_p9  ;;  %p225_p6 = scmp.eq.s32.totalorder %s3534_s23, 1 }
  0xb7   : > { %p4125_p8 = scmp.lt.s32.totalorder %s5021_s30, 2  ;;  %s328_s16 = sand.u32 1, %s5017_s29  }
  0xb8   : > { %s6388_s26 = scalar_select %p5304_p7, 1, 0 }
  0xb9   : > { %p5310_p10 = por %p225_p6, %p48_p11  ;;  %s3544_s20 = sshll.u32 %s328_s16, 7 }
  0xba   : > { %s3691_s9 = sshll.u32 %s5021_s30, 11  ;;  %s332_s21 = scalar_lea.vmem [#allocation3], %s3544_s20 }
  0xbb   : > { %s6389_s17 = scalar_select %p5310_p10, 1, 0 }
  0xbc   : > { %s5318_s19 = scalar_lea.hbm %s6365_s0, %s3691_s9  ;;  %s339_s25 = sshll.u32 %s332_s21, 4  ;;  %s5324_s25 = int_to_ptr.vmem [resolvable:$true] %s339_s25 }
  0xbd   : > { %p5320_p3 = pnand %p4125_p8, %p44_p13  ;;  %s5326_s14 = scalar_lea.sflag [#allocation4], %s328_s16 }
  0xbe   : > { %s4909_s1 = scalar_lea.hbm %s5318_s19, 2048  ;;  %s4914_s22 = scalar_lea.hbm %s6365_s0, 4096 }
  0xbf   : > { %p4910_p5 = scmp.ne.s32.totalorder %s5318_s19, %s4909_s1  ;;  %p4911_p9 = pneg %p5320_p3 }
  0xc0   : > { %p4915_p11 = scmp.lt.u32.totalorder %s5318_s19, %s6365_s0  ;;  %p4916_p12 = scmp.lt.u32.totalorder %s4914_s22, %s4909_s1 }
  0xc1   : > { %p4912_p1 = pnand %p4911_p9, %p4910_p5  ;;  %p4918_p0 = scmp.lt.u32.totalorder %s4909_s1, %s5318_s19 }
  0xc2   : > { %p4917_p13 = por %p4916_p12, %p4915_p11 }
  0xc3   : > { %p4913_p4 = pneg %p4912_p1 }
  0xc4   : > { %p4919_p6 = por %p4918_p0, %p4917_p13 }
  0xc6   : > { %p4920_p8 = pnand %p4919_p6, %p4913_p4 }
  0xc8   : > { %4923 = shalt.err (!%p4920_p8)
}
  0xc9   : > { %s4924_s16 = scalar_lea.vmem %s5324_s25, 2048  ;;  %s5034_s20 = smov [#allocation3]  }
  0xca   : > { %p4925_p5 = scmp.ne.s32.totalorder %s5324_s25, %s4924_s16  ;;  %s4929_s9 = sshll.u32 %s5034_s20, 4  ;;  %s4930_s9 = int_to_ptr.vmem [resolvable:$false] %s4929_s9 }
  0xcb   : > { %s4931_s24 = scalar_lea.vmem %s4930_s9, 4096  ;;  %p4932_p7 = scmp.lt.s32.totalorder %s5324_s25, %s4930_s9 }
  0xcc   : > { %p4927_p1 = pnand %p4925_p5, %p4911_p9  ;;  %p4933_p11 = scmp.lt.s32.totalorder %s4931_s24, %s4924_s16 }
  0xce   : > { %p4928_p10 = pneg %p4927_p1  ;;  %p4934_p12 = por %p4933_p11, %p4932_p7 }
  0xd0   : > { %p4935_p13 = pnand %p4934_p12, %p4928_p10 }
  0xd2   : > { %4938 = shalt.err (!%p4935_p13)
}
  0xd3   : > { %s6391_s1 = smov 4   ;;  %p6392_p9 = scmp.ne.s32.totalorder %s6381_s12, 0 }
  0xd4   : > { %4113 = dma.hbm_to_vmem [thread:$0]  (!%p5320_p3), %s5318_s19, 2048, %s5324_s25, %s5326_s14, %s6385_s18, %s6385_s18, %s6391_s1  }
  0xd5   : > { %351 = sbr.rel (%p6392_p9) target bundleno = 1279 (0x4ff), region = 52 }
  0xdc   : > { %s5360_s22 = sand.u32 1, %s5013_s28  }
  0xdd   : > { %s3548_s21 = sshll.u32 %s5360_s22, 7  ;;  %s354_s16 = scalar_lea.sflag [#allocation4], %s5360_s22 }
  0xde   : > { %s5364_s20 = scalar_lea.vmem [#allocation3], %s3548_s21 }
  0xdf   : > { %4984 = dma.done.wait (%p5300_p2), %s354_s16, 2048  }
  0xe0   : > { %4986 = vsyncadd (%p5300_p2), %s354_s16, 4294965248  ;;  %p6393_p7 = scmp.eq.s32.totalorder %s5108_s11, 0 }
  0xe2   : > { %4988 = dma.done.wait (%p6393_p7), [#allocation7], 3328   ;;  %p6394_p10 = pmov %p6393_p7 }
  0xe3   : > { %p6395_p3 = pmov %p6393_p7 }
  0xe4   : > { %4990 = vsyncadd (%p6394_p10), [#allocation7], 4294963968 }
  0xe5   : > { %4992 = dma.done.wait (%p6395_p3), [#allocation10], 272   ;;  %p6396_p4 = pmov %p6395_p3 }
  0xe6   : > { %p6397_p0 = pmov %p6395_p3 }
  0xe7   : > { %4994 = vsyncadd (%p6396_p4), [#allocation10], 4294967024 }
  0xe8   : > { %4996 = dma.done.wait (%p6397_p0), [#allocation13], 32   ;;  %p6398_p6 = pmov %p6397_p0 }
  0xe9   : > { %p6399_p2 = pmov %p6397_p0 }
  0xea   : > { %4998 = vsyncadd (%p6398_p6), [#allocation13], 4294967264 }
  0xeb   : > { %5000 = dma.done.wait (%p6399_p2), [#allocation16], 16   ;;  %p6400_p8 = pmov %p6397_p0 }
  0xec   : > { %s5386_s12 = scalar_lea.vmem [#allocation17], %s3548_s21  ;;  %p6401_p5 = scmp.ne.s32.totalorder %s5108_s11, 0 }
  0xed   : > { %5002 = vsyncadd (%p6400_p8), [#allocation16], 4294967280  ;;  %vm423_vm0 = vcmask (!%p6401_p5), 261120   ;;  %vm426_vm1 = vcmask (!%p6401_p5), 254976   ;;  %v5035_v0 = vmov (!%p6401_p5), 0.0  }
  0xee   : > { %422 = sbr.rel (%p6401_p5) target bundleno = 265 (0x109), region = 88  ;;  %424 = vst.msk [vmem:[#allocation2] sm:$0xff] (!%p6401_p5), %vm423_vm0, %v5035_v0  ;;  %425 = vst.msk [vmem:[#allocation2 + $0x8] sm:$0xff] (!%p6401_p5), %vm423_vm0, %v5035_v0 }
  0xef   : > { %428 = vst.msk [vmem:[#allocation2 + $0x18] sm:$0xff] (!%p6401_p5), %vm423_vm0, %v5035_v0  ;;  %429 = vst.msk [vmem:[#allocation2 + $0x20] sm:$0xff] (!%p6401_p5), %vm423_vm0, %v5035_v0 }
  0xf0   : > { %431 = vst.msk [vmem:[#allocation2 + $0x30] sm:$0xff] (!%p6401_p5), %vm423_vm0, %v5035_v0  ;;  %432 = vst.msk [vmem:[#allocation2 + $0x38] sm:$0xff] (!%p6401_p5), %vm423_vm0, %v5035_v0 }
  0xf1   : > { %434 = vst.msk [vmem:[#allocation2 + $0x48] sm:$0xff] (!%p6401_p5), %vm423_vm0, %v5035_v0  ;;  %435 = vst.msk [vmem:[#allocation2 + $0x50] sm:$0xff] (!%p6401_p5), %vm423_vm0, %v5035_v0 }
  0xf2   : > { %437 = vst.msk [vmem:[#allocation2 + $0x60] sm:$0xff] (!%p6401_p5), %vm423_vm0, %v5035_v0  ;;  %438 = vst.msk [vmem:[#allocation2 + $0x68] sm:$0xff] (!%p6401_p5), %vm423_vm0, %v5035_v0 }
  0xf3   : > { %440 = vst.msk [vmem:[#allocation2 + $0x78] sm:$0xff] (!%p6401_p5), %vm423_vm0, %v5035_v0  ;;  %441 = vst.msk [vmem:[#allocation2 + $0x80] sm:$0xff] (!%p6401_p5), %vm423_vm0, %v5035_v0 }
  0xf4   : > { %443 = vst.msk [vmem:[#allocation2 + $0x90] sm:$0xff] (!%p6401_p5), %vm423_vm0, %v5035_v0  ;;  %444 = vst.msk [vmem:[#allocation2 + $0x98] sm:$0xff] (!%p6401_p5), %vm423_vm0, %v5035_v0 }
  0xf5   : > { %446 = vst.msk [vmem:[#allocation2 + $0xa8] sm:$0xff] %vm423_vm0, %v5035_v0  ;;  %447 = vst.msk [vmem:[#allocation2 + $0xb0] sm:$0xff] %vm423_vm0, %v5035_v0 }
  0xf6   : > { %449 = vst.msk [vmem:[#allocation2 + $0xc0] sm:$0xff] %vm423_vm0, %v5035_v0  ;;  %450 = vst.msk [vmem:[#allocation2 + $0xc8] sm:$0xff] %vm423_vm0, %v5035_v0 }
  0xf7   : > { %452 = vst.msk [vmem:[#allocation2 + $0xd8] sm:$0xff] %vm423_vm0, %v5035_v0  ;;  %453 = vst.msk [vmem:[#allocation2 + $0xe0] sm:$0xff] %vm423_vm0, %v5035_v0 }
  0xf8   : > { %455 = vst.msk [vmem:[#allocation2 + $0xf0] sm:$0xff] %vm423_vm0, %v5035_v0  ;;  %456 = vst.msk [vmem:[#allocation2 + $0xf8] sm:$0xff] %vm423_vm0, %v5035_v0 }
  0xf9   : > { %458 = vst.msk [vmem:[#allocation2 + $0x108] sm:$0xff] %vm423_vm0, %v5035_v0  ;;  %459 = vst.msk [vmem:[#allocation2 + $0x110] sm:$0xff] %vm423_vm0, %v5035_v0 }
  0xfa   : > { %461 = vst.msk [vmem:[#allocation2 + $0x120] sm:$0xff] %vm423_vm0, %v5035_v0  ;;  %462 = vst.msk [vmem:[#allocation2 + $0x128] sm:$0xff] %vm423_vm0, %v5035_v0 }
  0xfb   : > { %464 = vst.msk [vmem:[#allocation2 + $0x138] sm:$0xff] %vm423_vm0, %v5035_v0  ;;  %465 = vst.msk [vmem:[#allocation2 + $0x140] sm:$0xff] %vm423_vm0, %v5035_v0 }
  0xfc   : > { %467 = vst.msk [vmem:[#allocation2 + $0x150] sm:$0xff] %vm423_vm0, %v5035_v0  ;;  %468 = vst.msk [vmem:[#allocation2 + $0x158] sm:$0xff] %vm423_vm0, %v5035_v0 }
  0xfd   : > { %470 = vst.msk [vmem:[#allocation2 + $0x168] sm:$0xff] %vm423_vm0, %v5035_v0  ;;  %471 = vst.msk [vmem:[#allocation2 + $0x170] sm:$0xff] %vm423_vm0, %v5035_v0 }
  0xfe   : > { %473 = vst.msk [vmem:[#allocation2 + $0x180] sm:$0xff] %vm423_vm0, %v5035_v0  ;;  %474 = vst.msk [vmem:[#allocation2 + $0x188] sm:$0xff] %vm423_vm0, %v5035_v0 }
  0xff   : > { %476 = vst.msk [vmem:[#allocation2 + $0x198] sm:$0xff] %vm423_vm0, %v5035_v0  ;;  %477 = vst.msk [vmem:[#allocation2 + $0x1a0] sm:$0xff] %vm423_vm0, %v5035_v0 }
 0x100   : > { %427 = vst.msk [vmem:[#allocation2 + $0x10] sm:$0x3] %vm426_vm1, %v5035_v0  ;;  %430 = vst.msk [vmem:[#allocation2 + $0x28] sm:$0x3] %vm426_vm1, %v5035_v0 }
 0x101   : > { %433 = vst.msk [vmem:[#allocation2 + $0x40] sm:$0x3] %vm426_vm1, %v5035_v0  ;;  %436 = vst.msk [vmem:[#allocation2 + $0x58] sm:$0x3] %vm426_vm1, %v5035_v0 }
 0x102   : > { %439 = vst.msk [vmem:[#allocation2 + $0x70] sm:$0x3] %vm426_vm1, %v5035_v0  ;;  %442 = vst.msk [vmem:[#allocation2 + $0x88] sm:$0x3] %vm426_vm1, %v5035_v0 }
 0x103   : > { %445 = vst.msk [vmem:[#allocation2 + $0xa0] sm:$0x3] %vm426_vm1, %v5035_v0  ;;  %448 = vst.msk [vmem:[#allocation2 + $0xb8] sm:$0x3] %vm426_vm1, %v5035_v0 }
 0x104   : > { %451 = vst.msk [vmem:[#allocation2 + $0xd0] sm:$0x3] %vm426_vm1, %v5035_v0  ;;  %454 = vst.msk [vmem:[#allocation2 + $0xe8] sm:$0x3] %vm426_vm1, %v5035_v0 }
 0x105   : > { %457 = vst.msk [vmem:[#allocation2 + $0x100] sm:$0x3] %vm426_vm1, %v5035_v0  ;;  %460 = vst.msk [vmem:[#allocation2 + $0x118] sm:$0x3] %vm426_vm1, %v5035_v0 }
 0x106   : > { %463 = vst.msk [vmem:[#allocation2 + $0x130] sm:$0x3] %vm426_vm1, %v5035_v0  ;;  %466 = vst.msk [vmem:[#allocation2 + $0x148] sm:$0x3] %vm426_vm1, %v5035_v0 }
 0x107   : > { %469 = vst.msk [vmem:[#allocation2 + $0x160] sm:$0x3] %vm426_vm1, %v5035_v0  ;;  %472 = vst.msk [vmem:[#allocation2 + $0x178] sm:$0x3] %vm426_vm1, %v5035_v0 }
 0x108   : > { %475 = vst.msk [vmem:[#allocation2 + $0x190] sm:$0x3] %vm426_vm1, %v5035_v0  ;;  %478 = vst.msk [vmem:[#allocation2 + $0x1a8] sm:$0x3] %vm426_vm1, %v5035_v0 }
 0x109 PF: > { %v4663_v1 = vld [vmem:[#allocation6 + $0x4] ss:$8 sps:$4 sm:$0xff]   ;;  %v4665_v2 = vld [vmem:[#allocation6] ss:$8 sps:$4 sm:$0xff]   ;;  %v5036_v3 = vmov 0   ;;  %vm639_vm2 = vcmask 523264  }
 0x10a   : > { %720 = vmatprep.mubr.bf16.mxu0 %v5036_v3  ;;  %688 = vmatprep.subr.bf16.mxu0 %v4663_v1  ;;  %v4666_v4 = vld [vmem:[#allocation6 + $0x14] ss:$8 sps:$4 sm:$0xff]   ;;  %v4668_v5 = vld [vmem:[#allocation6 + $0x10] ss:$8 sps:$4 sm:$0xff]   ;;  %v4669_v6 = vld [vmem:[#allocation6 + $0x24] ss:$8 sps:$4 sm:$0xff]  }
 0x10b   : > { %689 = vmatpush1.bf16.msra.mxu0 %v4665_v2  ;;  %v4671_v7 = vld [vmem:[#allocation6 + $0x20] ss:$8 sps:$4 sm:$0xff]   ;;  %v4672_v8 = vld [vmem:[#allocation6 + $0x34] ss:$8 sps:$4 sm:$0xff]   ;;  %v4674_v9 = vld [vmem:[#allocation6 + $0x30] ss:$8 sps:$4 sm:$0xff]  }
 0x10c   : > { %690 = vmatprep.subr.bf16.mxu0 %v4666_v4  ;;  %v4675_v10 = vld [vmem:[%s5364_s20] sm:$0xff]   ;;  %v4676_v11 = vld [vmem:[%s5364_s20 + $0x8] sm:$0xff]   ;;  %v4677_v12 = vld [vmem:[%s5364_s20 + $0x10] sm:$0xff]   ;;  %s5037_s18 = smov 32   ;;  %s5038_s15 = smov 64   ;;  %vm992_vm3 = vcmask 261120  }
 0x10d   : > { %v4678_v13 = vld [vmem:[%s5364_s20 + $0x18] sm:$0xff]   ;;  %v4679_v14 = vld [vmem:[%s5364_s20 + $0x20] sm:$0xff]   ;;  %v4680_v15 = vld [vmem:[%s5364_s20 + $0x28] sm:$0xff]   ;;  %s5039_s19 = smov 96   ;;  %vm2146_vm4 = vcmask 785408   ;;  %s3724_s25 = sshll.u32 %s5108_s11, 11 }
 0x10e   : > { %v4681_v16 = vld [vmem:[%s5364_s20 + $0x30] sm:$0xff]   ;;  %v4682_v17 = vld [vmem:[%s5364_s20 + $0x38] sm:$0xff]   ;;  %v4683_v18 = vld [vmem:[%s5364_s20 + $0x40] sm:$0xff]   ;;  %s3394_s23 = sshll.u32 %s5386_s12, 4  ;;  %s6315_s24 = scalar_lea.hbm %s6373_s8, %s3724_s25  ;;  %s6317_s23 = int_to_ptr.vmem [resolvable:$true] %s3394_s23 }
 0x10f   : > { %691 = vmatpush1.bf16.msra.mxu0 %v4668_v5  ;;  %v4684_v19 = vld [vmem:[%s5364_s20 + $0x48] sm:$0xff]   ;;  %v4685_v20 = vld [vmem:[%s5364_s20 + $0x50] sm:$0xff]   ;;  %v4686_v21 = vld [vmem:[%s5364_s20 + $0x58] sm:$0xff]   ;;  %s3381_s11 = scalar_lea.sflag [#allocation5], %s5360_s22  ;;  %s4939_s1 = scalar_lea.vmem %s6317_s23, 2048 }
 0x110   : > { %692 = vmatprep.subr.bf16.mxu0 %v4669_v6  ;;  %v1057_v22 = vld [vmem:[#allocation2 + $0x1] sm:$0xff]  ;;  %v1058_v23 = vld [vmem:[#allocation2 + $0x9] sm:$0xff]  ;;  %v1248_v26 = vld [vmem:[#allocation2 + $0x198] sm:$0xff]  ;;  %p4940_p1 = scmp.ne.s32.totalorder %s6317_s23, %s4939_s1  ;;  %p6430_p11 = scmp.ne.s32.totalorder %s6388_s26, 0 }
 0x111   : > { %v4183_v24 = vpack.i.bf16 %v1058_v23, %v1057_v22  ;;  %v4687_v25 = vld [vmem:[%s5364_s20 + $0x60] sm:$0xff]   ;;  %v1249_v27 = vld [vmem:[#allocation2 + $0x1a0] sm:$0xff]  ;;  %v4688_v32 = vld [vmem:[%s5364_s20 + $0x68] sm:$0xff]   ;;  %s5040_s21 = smov [#allocation17]  }
 0x112   : > { %v1089_v28 = vld [vmem:[#allocation2 + $0x2] sm:$0xff]  ;;  %v4193_v29 = vpack.i.bf16 %v1249_v27, %v1248_v26  ;;  %v1090_v30 = vld [vmem:[#allocation2 + $0xa] sm:$0xff]  ;;  %v4693_v37 = vld [vmem:[#allocation8 + $0x48] sm:$0xff]   ;;  %p4941_p12 = pnand %p4940_p1, %p6430_p11  ;;  %s4943_s16 = sshll.u32 %s5040_s21, 4  ;;  %s4944_s16 = int_to_ptr.vmem [resolvable:$false] %s4943_s16 }
 0x113   : > { %693 = vmatpush1.bf16.msra.mxu0 %v4671_v7  ;;  %4184 = vrot.lane.b32.xlu1 %v4183_v24, %s5037_s18  ;;  %v4188_v31 = vpack.i.bf16 %v1090_v30, %v1089_v28  ;;  %v4689_v33 = vld [vmem:[%s5364_s20 + $0x70] sm:$0xff]   ;;  %v4690_v34 = vld [vmem:[%s5364_s20 + $0x78] sm:$0xff]   ;;  %v4691_v35 = vld [vmem:[#allocation8 + $0x40] sm:$0xff]   ;;  %s4945_s20 = scalar_lea.vmem %s4944_s16, 4096  ;;  %p4946_p9 = scmp.lt.s32.totalorder %s6317_s23, %s4944_s16 }
 0x114   : > { %694 = vmatprep.subr.bf16.mxu0 %v4672_v8  ;;  %4194 = vrot.lane.b32.xlu0 %v4193_v29, %s5038_s15  ;;  %v4692_v36 = vld [vmem:[#allocation8] sm:$0xff]   ;;  %v4694_v38 = vld [vmem:[#allocation8 + $0x8] sm:$0xff]   ;;  %v4695_v44 = vld [vmem:[#allocation8 + $0x50] sm:$0xff]   ;;  %p4942_p13 = pneg %p4941_p12  ;;  %p4947_p7 = scmp.lt.s32.totalorder %s4945_s20, %s4939_s1 }
 0x115   : > { %4040 = vmatprep.subr.bf16.mxu1 %v4691_v35  ;;  %v5495_v39 = vld [vmem:[#allocation11] ss:$0 sm:$0xff]  ;;  %v4696_v45 = vld [vmem:[#allocation8 + $0x10] sm:$0xff]   ;;  %v4697_v50 = vld [vmem:[#allocation8 + $0x58] sm:$0xff]  }
 0x116   : > { %4048 = vmatpush3.bf16.msra.mxu1 %v4692_v36  ;;  %v4698_v51 = vld [vmem:[#allocation8 + $0x18] sm:$0xff]   ;;  %v4699_v56 = vld [vmem:[#allocation8 + $0x60] sm:$0xff]   ;;  %v4701_v63 = vld [vmem:[#allocation8 + $0x68] sm:$0xff]   ;;  %p4948_p10 = por %p4947_p7, %p4946_p9 }
 0x117   : > { %695 = vmatpush1.bf16.msra.mxu0 %v4674_v9  ;;  %4189 = vrot.lane.b32.xlu1 %v4188_v31, %s5038_s15  ;;  %v4700_v58 = vld [vmem:[#allocation8 + $0x20] sm:$0xff]   ;;  %v4702_v0 = vld [vmem:[#allocation8 + $0x28] sm:$0xff]   ;;  %v4706_v27 = vld [vmem:[#allocation8 + $0x38] sm:$0xff]  }
 0x118   : > { %3820 = vmatprep.subr.bf16.mxu0 %v4691_v35  ;;  %4041 = vmatprep.subr.bf16.mxu1 %v4693_v37  ;;  %p4949_p3 = pnand %p4948_p10, %p4942_p13 }
 0x11a   : > { %3582 = vmatmul.mubr.msk.bf16.vlgmr.msra.gmra.mrb[0].mxu0 %vm639_vm2, %v4675_v10  ;;  %4049 = vmatpush3.bf16.msra.mxu1 %v4694_v38 }
 0x11b   : > { %730 = vmatprep.mubr.bf16.mxu0 %v5036_v3  ;;  %3821 = vmatpush3.bf16.msra.mxu0 %v4692_v36 }
 0x11c   : > { %3822 = vmatprep.subr.bf16.mxu0 %v4693_v37  ;;  %4042 = vmatprep.subr.bf16.mxu1 %v4695_v44 }
 0x11e   : > { %4050 = vmatpush3.bf16.msra.mxu1 %v4696_v45 }
 0x11f   : > { %3823 = vmatpush3.bf16.msra.mxu0 %v4694_v38  ;;  %4043 = vmatprep.subr.bf16.mxu1 %v4697_v50 }
 0x120   : > { %3824 = vmatprep.subr.bf16.mxu0 %v4695_v44 }
 0x122   : > { %3583 = vmatmul.mubr.msk.bf16.gmra.mrb[4].mxu0 %vm639_vm2, %v4676_v11  ;;  %4051 = vmatpush3.bf16.msra.mxu1 %v4698_v51  ;;  %v4703_v11 = vld [vmem:[#allocation8 + $0x70] sm:$0xff]  }
 0x123   : > { %740 = vmatprep.mubr.bf16.mxu0 %v5036_v3  ;;  %3825 = vmatpush3.bf16.msra.mxu0 %v4696_v45 }
 0x124   : > { %3826 = vmatprep.subr.bf16.mxu0 %v4697_v50  ;;  %4044 = vmatprep.subr.bf16.mxu1 %v4699_v56 }
 0x126   : > { %4052 = vmatpush3.bf16.msra.mxu1 %v4700_v58 }
 0x127   : > { %3827 = vmatpush3.bf16.msra.mxu0 %v4698_v51  ;;  %4045 = vmatprep.subr.bf16.mxu1 %v4701_v63 }
 0x128   : > { %3828 = vmatprep.subr.bf16.mxu0 %v4699_v56 }
 0x12a   : > { %3584 = vmatmul.mubr.msk.bf16.gmra.mrb[8].mxu0 %vm639_vm2, %v4677_v12  ;;  %4053 = vmatpush3.bf16.msra.mxu1 %v4702_v0 }
 0x12b   : > { %750 = vmatprep.mubr.bf16.mxu0 %v5036_v3  ;;  %3829 = vmatpush3.bf16.msra.mxu0 %v4700_v58 }
 0x12c   : > { %3830 = vmatprep.subr.bf16.mxu0 %v4701_v63  ;;  %4046 = vmatprep.subr.bf16.mxu1 %v4703_v11 }
 0x12f   : > { %3831 = vmatpush3.bf16.msra.mxu0 %v4702_v0 }
 0x130   : > { %3832 = vmatprep.subr.bf16.mxu0 %v4703_v11 }
 0x132   : > { %3585 = vmatmul.mubr.msk.bf16.gmra.mrb[12].mxu0 %vm639_vm2, %v4678_v13 }
 0x133   : > { %760 = vmatprep.mubr.bf16.mxu0 %v5036_v3 }
 0x13a   : > { %3586 = vmatmul.mubr.msk.bf16.gmra.mrb[16].mxu0 %vm639_vm2, %v4679_v14  ;;  %v4704_v14 = vld [vmem:[#allocation8 + $0x30] sm:$0xff]  }
 0x13b   : > { %770 = vmatprep.mubr.bf16.mxu0 %v5036_v3  ;;  %3833 = vmatpush3.bf16.msra.mxu0 %v4704_v14 }
 0x13c   : > { %4054 = vmatpush3.bf16.msra.mxu1 %v4704_v14 }
 0x142   : > { %3587 = vmatmul.mubr.msk.bf16.gmra.mrb[20].mxu0 %vm639_vm2, %v4680_v15 }
 0x143   : > { %780 = vmatprep.mubr.bf16.mxu0 %v5036_v3 }
 0x14a   : > { %3588 = vmatmul.mubr.msk.bf16.gmra.mrb[24].mxu0 %vm639_vm2, %v4681_v16 }
 0x14b   : > { %790 = vmatprep.mubr.bf16.mxu0 %v5036_v3 }
 0x152   : > { %3589 = vmatmul.mubr.msk.bf16.gmra.mrb[28].mxu0 %vm639_vm2, %v4682_v17 }
 0x153   : > { %800 = vmatprep.mubr.bf16.mxu0 %v5036_v3 }
 0x15a   : > { %3590 = vmatmul.mubr.msk.bf16.gmra.mrb[32].mxu0 %vm639_vm2, %v4683_v18 }
 0x15b   : > { %810 = vmatprep.mubr.bf16.mxu0 %v5036_v3 }
 0x162   : > { %3591 = vmatmul.mubr.msk.bf16.gmra.mrb[36].mxu0 %vm639_vm2, %v4684_v19 }
 0x163   : > { %820 = vmatprep.mubr.bf16.mxu0 %v5036_v3 }
 0x16a   : > { %3592 = vmatmul.mubr.msk.bf16.gmra.mrb[40].mxu0 %vm639_vm2, %v4685_v20  ;;  %v4705_v20 = vld [vmem:[#allocation8 + $0x78] sm:$0xff]  }
 0x16b   : > { %830 = vmatprep.mubr.bf16.mxu0 %v5036_v3  ;;  %3834 = vmatprep.subr.bf16.mxu0 %v4705_v20 }
 0x16c   : > { %4047 = vmatprep.subr.bf16.mxu1 %v4705_v20  ;;  %3835 = vmatpush3.bf16.msra.mxu0 %v4706_v27 }
 0x16d   : > { %4055 = vmatpush3.bf16.msra.mxu1 %v4706_v27 }
 0x172   : > { %3593 = vmatmul.mubr.msk.bf16.gmra.mrb[44].mxu0 %vm639_vm2, %v4686_v21 }
 0x173   : > { %840 = vmatprep.mubr.bf16.mxu0 %v5036_v3 }
 0x17a   : > { %3594 = vmatmul.mubr.msk.bf16.gmra.mrb[48].mxu0 %vm639_vm2, %v4687_v25 }
 0x17b   : > { %850 = vmatprep.mubr.bf16.mxu0 %v5036_v3 }
 0x182   : > { %3595 = vmatmul.mubr.msk.bf16.gmra.mrb[52].mxu0 %vm639_vm2, %v4688_v32  ;;  %v5550_v32 = vld [vmem:[#allocation8 + $0x80] sm:$0xff]  }
 0x183   : > { %860 = vmatprep.mubr.bf16.mxu0 %v5036_v3  ;;  %3968 = vmatprep.subr.bf16.mxu0 %v5550_v32 }
 0x18a   : > { %3596 = vmatmul.mubr.msk.bf16.gmra.mrb[56].mxu0 %vm639_vm2, %v4689_v33 }
 0x18b   : > { %870 = vmatprep.mubr.bf16.mxu0 %v5036_v3 }
 0x192   : > { %3597 = vmatmul.mubr.msk.bf16.gmra.mrb[60].mxu0 %vm639_vm2, %v4690_v34 }
 0x1ed   : > { %v5497_v40 = vpop.f32.mrb[0].mxu0 }
 0x1ee   : > { %v724_v41 = vpop.f32.mrb[1].mxu0 }
 0x1ef   : > { %v927_v42 = vadd.f32 %v5495_v39, %v724_v41  ;;  %v5500_v43 = vpop.f32.mrb[2].mxu0 }
 0x1f0   : > { %v728_v46 = vpop.f32.mrb[3].mxu0 }
 0x1f1   : > { %v959_v47 = vmax.f32 %v927_v42, 0.0  ;;  %v928_v48 = vadd.f32 %v5495_v39, %v728_v46 }
 0x1f3   : > { %993 = vst.msk [vmem:[#allocation2 + $0x19] sm:$0xff] %vm992_vm3, %v959_v47  ;;  %v960_v49 = vmax.f32 %v928_v48, 0.0 }
 0x1f5   : > { %994 = vst.msk [vmem:[#allocation2 + $0x21] sm:$0xff] %vm992_vm3, %v960_v49  ;;  %v5505_v52 = vpop.f32.mrb[4].mxu0 }
 0x1f6   : > { %v734_v53 = vpop.f32.mrb[5].mxu0 }
 0x1f7   : > { %v929_v54 = vadd.f32 %v5495_v39, %v734_v53  ;;  %v5508_v55 = vpop.f32.mrb[6].mxu0 }
 0x1f8   : > { %v738_v57 = vpop.f32.mrb[7].mxu0 }
 0x1f9   : > { %v961_v59 = vmax.f32 %v929_v54, 0.0  ;;  %v930_v60 = vadd.f32 %v5495_v39, %v738_v57 }
 0x1fa   : > { %v5512_v62 = vld [vmem:[#allocation2 + $0x19] sm:$0xff] }
 0x1fb   : > { %995 = vst.msk [vmem:[#allocation2 + $0x31] sm:$0xff] %vm992_vm3, %v961_v59  ;;  %v962_v61 = vmax.f32 %v930_v60, 0.0  ;;  %v5528_v13 = vld [vmem:[#allocation2 + $0x18] sm:$0xff] }
 0x1fc   : > { %v1091_v1 = vld [vmem:[#allocation2 + $0x1a] sm:$0xff]  ;;  %v1092_v2 = vld [vmem:[#allocation2 + $0x22] sm:$0xff] }
 0x1fd   : > { %v5514_v3 = vld [vmem:[#allocation2 + $0x21] sm:$0xff]  ;;  %996 = vst.msk [vmem:[#allocation2 + $0x39] sm:$0xff] %vm992_vm3, %v962_v61  ;;  %v5517_v4 = vpop.f32.mrb[8].mxu0  ;;  %v4203_v5 = vpack.i.bf16 %v1092_v2, %v1091_v1 }
 0x1fe   : > { %v4198_v6 = vpack.i.bf16 %v5514_v3, %v5512_v62  ;;  %v744_v7 = vpop.f32.mrb[9].mxu0  ;;  %v5521_v8 = vld [vmem:[#allocation2 + $0x20] sm:$0xff] }
 0x1ff   : > { %4204 = vrot.lane.b32.xlu1 %v4203_v5, %s5038_s15  ;;  %v931_v9 = vadd.f32 %v5495_v39, %v744_v7  ;;  %v5526_v10 = vpop.f32.mrb[10].mxu0  ;;  %v4213_v17 = vpack.i.bf16 %v5521_v8, %v5528_v13 }
 0x200   : > { %4199 = vrot.lane.b32.xlu0 %v4198_v6, %s5037_s18  ;;  %v748_v12 = vpop.f32.mrb[11].mxu0 }
 0x201   : > { %v963_v15 = vmax.f32 %v931_v9, 0.0  ;;  %v932_v16 = vadd.f32 %v5495_v39, %v748_v12 }
 0x202   : > { %v5536_v19 = vld [vmem:[#allocation2 + $0x30] sm:$0xff] }
 0x203   : > { %997 = vst.msk [vmem:[#allocation2 + $0x49] sm:$0xff] %vm992_vm3, %v963_v15  ;;  %v964_v18 = vmax.f32 %v932_v16, 0.0  ;;  %4214 = vrot.lane.b32.xlu1 %v4213_v17, %s5039_s19  ;;  %v1061_v34 = vld [vmem:[#allocation2 + $0x31] sm:$0xff] }
 0x204   : > { %4209 = vrot.lane.b32.xlu0 %v4203_v5, %s5037_s18  ;;  %v1187_v21 = vld [vmem:[#allocation2 + $0x32] sm:$0xff]  ;;  %v1188_v22 = vld [vmem:[#allocation2 + $0x3a] sm:$0xff] }
 0x205   : > { %v5538_v23 = vld [vmem:[#allocation2 + $0x38] sm:$0xff]  ;;  %998 = vst.msk [vmem:[#allocation2 + $0x51] sm:$0xff] %vm992_vm3, %v964_v18  ;;  %v5541_v24 = vpop.f32.mrb[12].mxu0  ;;  %v4218_v25 = vpack.i.bf16 %v1188_v22, %v1187_v21 }
 0x206   : > { %v4223_v26 = vpack.i.bf16 %v5538_v23, %v5536_v19  ;;  %v754_v28 = vpop.f32.mrb[13].mxu0  ;;  %v1062_v29 = vld [vmem:[#allocation2 + $0x39] sm:$0xff] }
 0x207   : > { %v933_v30 = vadd.f32 %v5495_v39, %v754_v28  ;;  %v5548_v31 = vpop.f32.mrb[14].mxu0  ;;  %v4228_v37 = vpack.i.bf16 %v1062_v29, %v1061_v34 }
 0x208   : > { %4219 = vrot.lane.b32.xlu0 %v4218_v25, %s5037_s18  ;;  %4224 = vrot.lane.b32.xlu1 %v4223_v26, %s5039_s19  ;;  %v758_v33 = vpop.f32.mrb[15].mxu0 }
 0x209   : > { %v965_v35 = vmax.f32 %v933_v30, 0.0  ;;  %v934_v36 = vadd.f32 %v5495_v39, %v758_v33 }
 0x20a   : > { %v1252_v42 = vld [vmem:[#allocation2 + $0x49] sm:$0xff] }
 0x20b   : > { %999 = vst.msk [vmem:[#allocation2 + $0x61] sm:$0xff] %vm992_vm3, %v965_v35  ;;  %v966_v38 = vmax.f32 %v934_v36, 0.0  ;;  %v1220_v45 = vld [vmem:[#allocation2 + $0x48] sm:$0xff] }
 0x20c   : > { %4239 = vrot.lane.b32.xlu0 %v4223_v26, %s5038_s15  ;;  %4229 = vrot.lane.b32.xlu1 %v4228_v37, %s5037_s18  ;;  %v1253_v44 = vld [vmem:[#allocation2 + $0x51] sm:$0xff] }
 0x20d   : > { %1000 = vst.msk [vmem:[#allocation2 + $0x69] sm:$0xff] %vm992_vm3, %v966_v38  ;;  %v5558_v41 = vpop.f32.mrb[16].mxu0  ;;  %v1221_v46 = vld [vmem:[#allocation2 + $0x50] sm:$0xff]  ;;  %v4253_v51 = vpack.i.bf16 %v1253_v44, %v1252_v42 }
 0x20e   : > { %v764_v47 = vpop.f32.mrb[17].mxu0  ;;  %v4248_v53 = vpack.i.bf16 %v1221_v46, %v1220_v45  ;;  %v1189_v57 = vld [vmem:[#allocation2 + $0x4a] sm:$0xff]  ;;  %v1190_v58 = vld [vmem:[#allocation2 + $0x52] sm:$0xff] }
 0x20f   : > { %v935_v48 = vadd.f32 %v5495_v39, %v764_v47  ;;  %v5563_v49 = vpop.f32.mrb[18].mxu0  ;;  %v4258_v60 = vpack.i.bf16 %v1190_v58, %v1189_v57 }
 0x210   : > { %4244 = vrot.lane.b32.xlu0 %v4228_v37, %s5039_s19  ;;  %4234 = vrot.lane.b32.xlu1 %v4218_v25, %s5038_s15  ;;  %v768_v50 = vpop.f32.mrb[19].mxu0 }
 0x211   : > { %v967_v54 = vmax.f32 %v935_v48, 0.0  ;;  %v936_v56 = vadd.f32 %v5495_v39, %v768_v50 }
 0x212   : > { %v1222_v63 = vld [vmem:[#allocation2 + $0x60] sm:$0xff] }
 0x213   : > { %1001 = vst.msk [vmem:[#allocation2 + $0x79] sm:$0xff] %vm992_vm3, %v967_v54  ;;  %v968_v59 = vmax.f32 %v936_v56, 0.0  ;;  %v1254_v12 = vld [vmem:[#allocation2 + $0x61] sm:$0xff] }
 0x214   : > { %4254 = vrot.lane.b32.xlu0 %v4253_v51, %s5039_s19  ;;  %4249 = vrot.lane.b32.xlu1 %v4248_v53, %s5038_s15  ;;  %v1223_v0 = vld [vmem:[#allocation2 + $0x68] sm:$0xff] }
 0x215   : > { %1002 = vst.msk [vmem:[#allocation2 + $0x81] sm:$0xff] %vm992_vm3, %v968_v59  ;;  %v5570_v61 = vpop.f32.mrb[20].mxu0  ;;  %v4278_v7 = vpack.i.bf16 %v1223_v0, %v1222_v63  ;;  %v1255_v14 = vld [vmem:[#allocation2 + $0x69] sm:$0xff] }
 0x216   : > { %v774_v1 = vpop.f32.mrb[21].mxu0  ;;  %v4283_v16 = vpack.i.bf16 %v1255_v14, %v1254_v12  ;;  %v1191_v18 = vld [vmem:[#allocation2 + $0x62] sm:$0xff]  ;;  %v1192_v20 = vld [vmem:[#allocation2 + $0x6a] sm:$0xff] }
 0x217   : > { %v937_v2 = vadd.f32 %v5495_v39, %v774_v1  ;;  %v5575_v5 = vpop.f32.mrb[22].mxu0  ;;  %v4288_v27 = vpack.i.bf16 %v1192_v20, %v1191_v18 }
 0x218   : > { %4259 = vrot.lane.b32.xlu0 %v4258_v60, %s5037_s18  ;;  %4264 = vrot.lane.b32.xlu1 %v4248_v53, %s5039_s19  ;;  %v778_v6 = vpop.f32.mrb[23].mxu0 }
 0x219   : > { %v969_v9 = vmax.f32 %v937_v2, 0.0  ;;  %v938_v11 = vadd.f32 %v5495_v39, %v778_v6 }
 0x21a   : > { %v1224_v30 = vld [vmem:[#allocation2 + $0x78] sm:$0xff] }
 0x21b   : > { %1003 = vst.msk [vmem:[#allocation2 + $0x91] sm:$0xff] %vm992_vm3, %v969_v9  ;;  %v970_v15 = vmax.f32 %v938_v11, 0.0  ;;  %v1256_v37 = vld [vmem:[#allocation2 + $0x79] sm:$0xff] }
 0x21c   : > { %4269 = vrot.lane.b32.xlu1 %v4253_v51, %s5037_s18  ;;  %4279 = vrot.lane.b32.xlu0 %v4278_v7, %s5038_s15  ;;  %v1225_v33 = vld [vmem:[#allocation2 + $0x80] sm:$0xff] }
 0x21d   : > { %1004 = vst.msk [vmem:[#allocation2 + $0x99] sm:$0xff] %vm992_vm3, %v970_v15  ;;  %v5582_v17 = vpop.f32.mrb[24].mxu0  ;;  %v4308_v35 = vpack.i.bf16 %v1225_v33, %v1224_v30  ;;  %v1257_v38 = vld [vmem:[#allocation2 + $0x81] sm:$0xff] }
 0x21e   : > { %v784_v21 = vpop.f32.mrb[25].mxu0  ;;  %v4313_v47 = vpack.i.bf16 %v1257_v38, %v1256_v37  ;;  %v1193_v51 = vld [vmem:[#allocation2 + $0x7a] sm:$0xff]  ;;  %v1194_v53 = vld [vmem:[#allocation2 + $0x82] sm:$0xff] }
 0x21f   : > { %v939_v22 = vadd.f32 %v5495_v39, %v784_v21  ;;  %v5587_v25 = vpop.f32.mrb[26].mxu0  ;;  %v4318_v56 = vpack.i.bf16 %v1194_v53, %v1193_v51 }
 0x220   : > { %4274 = vrot.lane.b32.xlu1 %v4258_v60, %s5038_s15  ;;  %4284 = vrot.lane.b32.xlu0 %v4283_v16, %s5039_s19  ;;  %v788_v26 = vpop.f32.mrb[27].mxu0 }
 0x221   : > { %v971_v28 = vmax.f32 %v939_v22, 0.0  ;;  %v940_v29 = vadd.f32 %v5495_v39, %v788_v26 }
 0x222   : > { %v1226_v58 = vld [vmem:[#allocation2 + $0x90] sm:$0xff] }
 0x223   : > { %1005 = vst.msk [vmem:[#allocation2 + $0xa9] sm:$0xff] %vm992_vm3, %v971_v28  ;;  %v972_v34 = vmax.f32 %v940_v29, 0.0  ;;  %v1258_v9 = vld [vmem:[#allocation2 + $0x91] sm:$0xff] }
 0x224   : > { %4289 = vrot.lane.b32.xlu0 %v4288_v27, %s5037_s18  ;;  %4294 = vrot.lane.b32.xlu1 %v4278_v7, %s5039_s19  ;;  %v1227_v59 = vld [vmem:[#allocation2 + $0x98] sm:$0xff] }
 0x225   : > { %1006 = vst.msk [vmem:[#allocation2 + $0xb1] sm:$0xff] %vm992_vm3, %v972_v34  ;;  %v5594_v36 = vpop.f32.mrb[28].mxu0  ;;  %v4338_v2 = vpack.i.bf16 %v1227_v59, %v1226_v58  ;;  %v1259_v11 = vld [vmem:[#allocation2 + $0x99] sm:$0xff] }
 0x226   : > { %v794_v42 = vpop.f32.mrb[29].mxu0  ;;  %v4343_v14 = vpack.i.bf16 %v1259_v11, %v1258_v9  ;;  %v1196_v18 = vld [vmem:[#allocation2 + $0x9a] sm:$0xff] }
 0x227   : > { %v941_v44 = vadd.f32 %v5495_v39, %v794_v42  ;;  %v5599_v45 = vpop.f32.mrb[30].mxu0 }
 0x228   : > { %4299 = vrot.lane.b32.xlu1 %v4283_v16, %s5037_s18  ;;  %4309 = vrot.lane.b32.xlu0 %v4308_v35, %s5038_s15  ;;  %v798_v46 = vpop.f32.mrb[31].mxu0  ;;  %v1195_v16 = vld [vmem:[#allocation2 + $0x92] sm:$0xff] }
 0x229   : > { %v973_v48 = vmax.f32 %v941_v44, 0.0  ;;  %v942_v50 = vadd.f32 %v5495_v39, %v798_v46 }
 0x22a   : > { %v1228_v30 = vld [vmem:[#allocation2 + $0xa8] sm:$0xff] }
 0x22b   : > { %1007 = vst.msk [vmem:[#allocation2 + $0xc1] sm:$0xff] %vm992_vm3, %v973_v48  ;;  %v974_v54 = vmax.f32 %v942_v50, 0.0  ;;  %v1260_v38 = vld [vmem:[#allocation2 + $0xa9] sm:$0xff] }
 0x22c   : > { %4304 = vrot.lane.b32.xlu1 %v4288_v27, %s5038_s15  ;;  %4314 = vrot.lane.b32.xlu0 %v4313_v47, %s5039_s19  ;;  %v4348_v27 = vpack.i.bf16 %v1196_v18, %v1195_v16  ;;  %v1229_v33 = vld [vmem:[#allocation2 + $0xb0] sm:$0xff] }
 0x22d   : > { %1008 = vst.msk [vmem:[#allocation2 + $0xc9] sm:$0xff] %vm992_vm3, %v974_v54  ;;  %v5606_v57 = vpop.f32.mrb[32].mxu0  ;;  %v1261_v42 = vld [vmem:[#allocation2 + $0xb1] sm:$0xff] }
 0x22e   : > { %v804_v60 = vpop.f32.mrb[33].mxu0  ;;  %v4373_v50 = vpack.i.bf16 %v1261_v42, %v1260_v38  ;;  %v1197_v54 = vld [vmem:[#allocation2 + $0xaa] sm:$0xff] }
 0x22f   : > { %v943_v63 = vadd.f32 %v5495_v39, %v804_v60  ;;  %v5611_v0 = vpop.f32.mrb[34].mxu0 }
 0x230   : > { %4319 = vrot.lane.b32.xlu0 %v4318_v56, %s5037_s18  ;;  %4324 = vrot.lane.b32.xlu1 %v4308_v35, %s5039_s19  ;;  %6402 = vst [vmem:[#allocation24_spill] sm:$0xff] %v5611_v0  ;;  %v808_v1 = vpop.f32.mrb[35].mxu0  ;;  %v4368_v35 = vpack.i.bf16 %v1229_v33, %v1228_v30 }
 0x231   : > { %v975_v6 = vmax.f32 %v943_v63, 0.0  ;;  %v944_v7 = vadd.f32 %v5495_v39, %v808_v1 }
 0x232   : > { %v1230_v63 = vld [vmem:[#allocation2 + $0xc0] sm:$0xff] }
 0x233   : > { %1009 = vst.msk [vmem:[#allocation2 + $0xd9] sm:$0xff] %vm992_vm3, %v975_v6  ;;  %v976_v12 = vmax.f32 %v944_v7, 0.0  ;;  %v1262_v16 = vld [vmem:[#allocation2 + $0xc1] sm:$0xff] }
 0x234   : > { %4329 = vrot.lane.b32.xlu1 %v4313_v47, %s5037_s18  ;;  %4339 = vrot.lane.b32.xlu0 %v4338_v2, %s5038_s15  ;;  %v1231_v1 = vld [vmem:[#allocation2 + $0xc8] sm:$0xff] }
 0x235   : > { %1010 = vst.msk [vmem:[#allocation2 + $0xe1] sm:$0xff] %vm992_vm3, %v976_v12  ;;  %v5618_v15 = vpop.f32.mrb[36].mxu0  ;;  %v4398_v11 = vpack.i.bf16 %v1231_v1, %v1230_v63  ;;  %v1263_v18 = vld [vmem:[#allocation2 + $0xc9] sm:$0xff] }
 0x236   : > { %v814_v20 = vpop.f32.mrb[37].mxu0 }
 0x237   : > { %v945_v21 = vadd.f32 %v5495_v39, %v814_v20  ;;  %v5623_v22 = vpop.f32.mrb[38].mxu0 }
 0x238   : > { %4334 = vrot.lane.b32.xlu1 %v4318_v56, %s5038_s15  ;;  %4344 = vrot.lane.b32.xlu0 %v4343_v14, %s5039_s19  ;;  %6403 = vst [vmem:[#allocation25_spill] sm:$0xff] %v5623_v22  ;;  %v818_v26 = vpop.f32.mrb[39].mxu0  ;;  %v1198_v56 = vld [vmem:[#allocation2 + $0xb2] sm:$0xff] }
 0x239   : > { %v977_v28 = vmax.f32 %v945_v21, 0.0  ;;  %v946_v29 = vadd.f32 %v5495_v39, %v818_v26  ;;  %v4378_v59 = vpack.i.bf16 %v1198_v56, %v1197_v54  ;;  %v4403_v21 = vpack.i.bf16 %v1263_v18, %v1262_v16 }
 0x23b   : > { %1011 = vst.msk [vmem:[#allocation2 + $0xf1] sm:$0xff] %vm992_vm3, %v977_v28  ;;  %v978_v34 = vmax.f32 %v946_v29, 0.0  ;;  %v1200_v28 = vld [vmem:[#allocation2 + $0xca] sm:$0xff] }
 0x23c   : > { %4349 = vrot.lane.b32.xlu0 %v4348_v27, %s5037_s18  ;;  %4354 = vrot.lane.b32.xlu1 %v4338_v2, %s5039_s19  ;;  %v1265_v54 = vld [vmem:[#allocation2 + $0xe1] sm:$0xff] }
 0x23d   : > { %1012 = vst.msk [vmem:[#allocation2 + $0xf9] sm:$0xff] %vm992_vm3, %v978_v34  ;;  %v5630_v37 = vpop.f32.mrb[40].mxu0 }
 0x23e   : > { %6404 = vst [vmem:[#allocation26_spill] sm:$0xff] %v5630_v37  ;;  %v824_v44 = vpop.f32.mrb[41].mxu0 }
 0x23f   : > { %v947_v46 = vadd.f32 %v5495_v39, %v824_v44  ;;  %v5635_v47 = vpop.f32.mrb[42].mxu0  ;;  %v1232_v44 = vld [vmem:[#allocation2 + $0xd8] sm:$0xff] }
 0x240   : > { %4359 = vrot.lane.b32.xlu1 %v4343_v14, %s5037_s18  ;;  %4369 = vrot.lane.b32.xlu0 %v4368_v35, %s5038_s15  ;;  %6405 = vst [vmem:[#allocation27_spill] sm:$0xff] %v5635_v47  ;;  %v828_v48 = vpop.f32.mrb[43].mxu0 }
 0x241   : > { %v979_v51 = vmax.f32 %v947_v46, 0.0  ;;  %v948_v53 = vadd.f32 %v5495_v39, %v828_v48  ;;  %v1233_v46 = vld [vmem:[#allocation2 + $0xe0] sm:$0xff] }
 0x242   : > { %v1234_v18 = vld [vmem:[#allocation2 + $0xf0] sm:$0xff] }
 0x243   : > { %1013 = vst.msk [vmem:[#allocation2 + $0x109] sm:$0xff] %vm992_vm3, %v979_v51  ;;  %v980_v58 = vmax.f32 %v948_v53, 0.0  ;;  %v1264_v53 = vld [vmem:[#allocation2 + $0xd9] sm:$0xff] }
 0x244   : > { %4364 = vrot.lane.b32.xlu1 %v4348_v27, %s5038_s15  ;;  %4374 = vrot.lane.b32.xlu0 %v4373_v50, %s5039_s19  ;;  %v1199_v27 = vld [vmem:[#allocation2 + $0xc2] sm:$0xff]  ;;  %v4433_v1 = vpack.i.bf16 %v1265_v54, %v1264_v53  ;;  %v5692_v53 = vld [vmem:[#allocation2 + $0xf2] sm:$0xff]  ;;  %v5694_v54 = vld [vmem:[#allocation2 + $0xfa] sm:$0xff] }
 0x245   : > { %1014 = vst.msk [vmem:[#allocation2 + $0x111] sm:$0xff] %vm992_vm3, %v980_v58  ;;  %v5642_v60 = vpop.f32.mrb[44].mxu0 }
 0x246   : > { %6406 = vst [vmem:[#allocation28_spill] sm:$0xff] %v5642_v60  ;;  %v834_v2 = vpop.f32.mrb[45].mxu0 }
 0x247   : > { %v949_v6 = vadd.f32 %v5495_v39, %v834_v2  ;;  %v5647_v7 = vpop.f32.mrb[46].mxu0 }
 0x248   : > { %4379 = vrot.lane.b32.xlu0 %v4378_v59, %s5037_s18  ;;  %4384 = vrot.lane.b32.xlu1 %v4368_v35, %s5039_s19  ;;  %6407 = vst [vmem:[#allocation29_spill] sm:$0xff] %v5647_v7  ;;  %v838_v9 = vpop.f32.mrb[47].mxu0  ;;  %v4408_v35 = vpack.i.bf16 %v1200_v28, %v1199_v27 }
 0x249   : > { %v981_v12 = vmax.f32 %v949_v6, 0.0  ;;  %v950_v14 = vadd.f32 %v5495_v39, %v838_v9  ;;  %v1201_v9 = vld [vmem:[#allocation2 + $0xda] sm:$0xff] }
 0x24b   : > { %1015 = vst.msk [vmem:[#allocation2 + $0x121] sm:$0xff] %vm992_vm3, %v981_v12  ;;  %v982_v20 = vmax.f32 %v950_v14, 0.0 }
 0x24c   : > { %4389 = vrot.lane.b32.xlu1 %v4373_v50, %s5037_s18  ;;  %4399 = vrot.lane.b32.xlu0 %v4398_v11, %s5038_s15  ;;  %v4428_v50 = vpack.i.bf16 %v1233_v46, %v1232_v44 }
 0x24d   : > { %1016 = vst.msk [vmem:[#allocation2 + $0x129] sm:$0xff] %vm992_vm3, %v982_v20  ;;  %v5654_v26 = vpop.f32.mrb[48].mxu0  ;;  %v1235_v20 = vld [vmem:[#allocation2 + $0xf8] sm:$0xff] }
 0x24e   : > { %6408 = vst [vmem:[#allocation30_spill] sm:$0xff] %v5654_v26  ;;  %v844_v29 = vpop.f32.mrb[49].mxu0 }
 0x24f   : > { %v951_v30 = vadd.f32 %v5495_v39, %v844_v29  ;;  %v5659_v33 = vpop.f32.mrb[50].mxu0 }
 0x250   : > { %4394 = vrot.lane.b32.xlu1 %v4378_v59, %s5038_s15  ;;  %4404 = vrot.lane.b32.xlu0 %v4403_v21, %s5039_s19  ;;  %6409 = vst [vmem:[#allocation31_spill] sm:$0xff] %v5659_v33  ;;  %v848_v34 = vpop.f32.mrb[51].mxu0  ;;  %v5738_v33 = vld [vmem:[#allocation2 + $0x3a] sm:$0xff] }
 0x251   : > { %v983_v38 = vmax.f32 %v951_v30, 0.0  ;;  %v952_v42 = vadd.f32 %v5495_v39, %v848_v34  ;;  %v4458_v30 = vpack.i.bf16 %v1235_v20, %v1234_v18 }
 0x253   : > { %1017 = vst.msk [vmem:[#allocation2 + $0x139] sm:$0xff] %vm992_vm3, %v983_v38  ;;  %v984_v48 = vmax.f32 %v952_v42, 0.0  ;;  %v1266_v38 = vld [vmem:[#allocation2 + $0xf1] sm:$0xff]  ;;  %v1267_v42 = vld [vmem:[#allocation2 + $0xf9] sm:$0xff] }
 0x254   : > { %4409 = vrot.lane.b32.xlu0 %v4408_v35, %s5037_s18  ;;  %4414 = vrot.lane.b32.xlu1 %v4398_v11, %s5039_s19  ;;  %v1202_v11 = vld [vmem:[#allocation2 + $0xe2] sm:$0xff]  ;;  %v4463_v46 = vpack.i.bf16 %v1267_v42, %v1266_v38  ;;  %v5718_v38 = vld [vmem:[#allocation2 + $0x112] sm:$0xff] }
 0x255   : > { %1018 = vst.msk [vmem:[#allocation2 + $0x141] sm:$0xff] %vm992_vm3, %v984_v48  ;;  %v5666_v51 = vpop.f32.mrb[52].mxu0  ;;  %v4438_v14 = vpack.i.bf16 %v1202_v11, %v1201_v9  ;;  %v4185_v48 = vpop.permute.xlu1 %4184  ;;  %v1236_v11 = vld [vmem:[#allocation2 + $0x108] sm:$0xff] }
 0x256   : > { %6410 = vst [vmem:[#allocation32_spill] sm:$0xff] %v5666_v51  ;;  %v854_v56 = vpop.f32.mrb[53].mxu0 }
 0x257   : > { %v953_v58 = vadd.f32 %v5495_v39, %v854_v56  ;;  %v5671_v59 = vpop.f32.mrb[54].mxu0 }
 0x258   : > { %4419 = vrot.lane.b32.xlu1 %v4403_v21, %s5037_s18  ;;  %4429 = vrot.lane.b32.xlu0 %v4428_v50, %s5038_s15  ;;  %6411 = vst [vmem:[#allocation33_spill] sm:$0xff] %v5671_v59  ;;  %v858_v63 = vpop.f32.mrb[55].mxu0 }
 0x259   : > { %v985_v2 = vmax.f32 %v953_v58, 0.0  ;;  %v954_v6 = vadd.f32 %v5495_v39, %v858_v63  ;;  %v4190_v18 = vpop.permute.xlu1 %4189 }
 0x25b   : > { %1019 = vst.msk [vmem:[#allocation2 + $0x151] sm:$0xff] %vm992_vm3, %v985_v2  ;;  %v986_v12 = vmax.f32 %v954_v6, 0.0  ;;  %v4468_v2 = vpack.i.bf16 %v5694_v54, %v5692_v53 }
 0x25c   : > { %4424 = vrot.lane.b32.xlu1 %v4408_v35, %s5038_s15  ;;  %4434 = vrot.lane.b32.xlu0 %v4433_v1, %s5039_s19 }
 0x25d   : > { %1020 = vst.msk [vmem:[#allocation2 + $0x159] sm:$0xff] %vm992_vm3, %v986_v12  ;;  %v5678_v16 = vpop.f32.mrb[56].mxu0  ;;  %v1237_v12 = vld [vmem:[#allocation2 + $0x110] sm:$0xff] }
 0x25e   : > { %6412 = vst [vmem:[#allocation34_spill] sm:$0xff] %v5678_v16  ;;  %v864_v21 = vpop.f32.mrb[57].mxu0  ;;  %v4192_v16 = vunpack.i.h.bf16 %v4190_v18 }
 0x25f   : > { %v955_v27 = vadd.f32 %v5495_v39, %v864_v21  ;;  %v5683_v28 = vpop.f32.mrb[58].mxu0  ;;  %v4488_v21 = vpack.i.bf16 %v1237_v12, %v1236_v11  ;;  %v1026_v11 = vld [vmem:[#allocation2 + $0x8] sm:$0xff] }
 0x260   : > { %4439 = vrot.lane.b32.xlu0 %v4438_v14, %s5037_s18  ;;  %4444 = vrot.lane.b32.xlu1 %v4428_v50, %s5039_s19  ;;  %6413 = vst [vmem:[#allocation35_spill] sm:$0xff] %v5683_v28  ;;  %v868_v29 = vpop.f32.mrb[59].mxu0  ;;  %v1271_v28 = vld [vmem:[#allocation2 + $0x129] sm:$0xff] }
 0x261   : > { %v987_v34 = vmax.f32 %v955_v27, 0.0  ;;  %v956_v35 = vadd.f32 %v5495_v39, %v868_v29  ;;  %v1268_v27 = vld [vmem:[#allocation2 + $0x109] sm:$0xff]  ;;  %v1269_v29 = vld [vmem:[#allocation2 + $0x111] sm:$0xff] }
 0x263   : > { %1021 = vst.msk [vmem:[#allocation2 + $0x169] sm:$0xff] %vm992_vm3, %v987_v34  ;;  %v988_v44 = vmax.f32 %v956_v35, 0.0  ;;  %v5716_v35 = vld [vmem:[#allocation2 + $0x10a] sm:$0xff] }
 0x264   : > { %4449 = vrot.lane.b32.xlu1 %v4433_v1, %s5037_s18  ;;  %4459 = vrot.lane.b32.xlu0 %v4458_v30, %s5038_s15 }
 0x265   : > { %1022 = vst.msk [vmem:[#allocation2 + $0x171] sm:$0xff] %vm992_vm3, %v988_v44  ;;  %v5690_v50 = vpop.f32.mrb[60].mxu0 }
 0x266   : > { %6414 = vst [vmem:[#allocation36_spill] sm:$0xff] %v5690_v50  ;;  %v874_v56 = vpop.f32.mrb[61].mxu0  ;;  %v5736_v50 = vld [vmem:[#allocation2 + $0x32] sm:$0xff] }
 0x267   : > { %v957_v58 = vadd.f32 %v5495_v39, %v874_v56  ;;  %v5699_v63 = vpop.f32.mrb[62].mxu0  ;;  %v1238_v56 = vld [vmem:[#allocation2 + $0x120] sm:$0xff] }
 0x268   : > { %4454 = vrot.lane.b32.xlu1 %v4438_v14, %s5038_s15  ;;  %4464 = vrot.lane.b32.xlu0 %v4463_v46, %s5039_s19  ;;  %6415 = vst [vmem:[#allocation37_spill] sm:$0xff] %v5699_v63  ;;  %v878_v1 = vpop.f32.mrb[63].mxu0  ;;  %v5706_v14 = vpop.permute.xlu0 %4194 }
 0x269   : > { %v989_v6 = vmax.f32 %v957_v58, 0.0  ;;  %v958_v9 = vadd.f32 %v5495_v39, %v878_v1  ;;  %v1239_v58 = vld [vmem:[#allocation2 + $0x128] sm:$0xff]  ;;  %v4186_v1 = vunpack.i.l.bf16 %v4185_v48 }
 0x26b   : > { %1023 = vst.msk [vmem:[#allocation2 + $0x181] sm:$0xff] %vm992_vm3, %v989_v6  ;;  %v990_v20 = vmax.f32 %v958_v9, 0.0  ;;  %v4187_v6 = vunpack.i.h.bf16 %v4185_v48  ;;  %v1025_v9 = vld [vmem:[#allocation2] sm:$0xff] }
 0x26c   : > { %4469 = vrot.lane.b32.xlu0 %v4468_v2, %s5037_s18  ;;  %4474 = vrot.lane.b32.xlu1 %v4458_v30, %s5039_s19  ;;  %v4493_v30 = vpack.i.bf16 %v1269_v29, %v1268_v27  ;;  %v4191_v27 = vunpack.i.l.bf16 %v4190_v18  ;;  %v1270_v29 = vld [vmem:[#allocation2 + $0x121] sm:$0xff]  ;;  %v2082_v63 = vsel %vm992_vm3, %v1025_v9, %v4186_v1  ;;  %v5743_v1 = vld [vmem:[#allocation2 + $0x12a] sm:$0xff] }
 0x26d   : > { %1024 = vst.msk [vmem:[#allocation2 + $0x189] sm:$0xff] %vm992_vm3, %v990_v20  ;;  %v4518_v20 = vpack.i.bf16 %v1239_v58, %v1238_v56  ;;  %v5734_v48 = vld [vmem:[#allocation2 + $0x122] sm:$0xff]  ;;  %v4523_v18 = vpack.i.bf16 %v1271_v28, %v1270_v29  ;;  %v2277_v28 = vpack.c.bf16 %v5738_v33, %v5736_v50 }
 0x26e   : > { %v1241_v9 = vld [vmem:[#allocation2 + $0x140] sm:$0xff] }
 0x270   : > { %4479 = vrot.lane.b32.xlu1 %v4463_v46, %s5037_s18  ;;  %4489 = vrot.lane.b32.xlu0 %v4488_v21, %s5038_s15  ;;  %v4498_v46 = vpack.i.bf16 %v5718_v38, %v5716_v35 }
 0x271   : > { %v5712_v39 = vpop.permute.xlu1 %4204 }
 0x272   : > { %v5714_v34 = vpop.permute.xlu0 %4199 }
 0x273   : > { %v4201_v56 = vunpack.i.l.bf16 %v5714_v34  ;;  %v4202_v29 = vunpack.i.h.bf16 %v5714_v34 }
 0x274   : > { %4484 = vrot.lane.b32.xlu1 %v4468_v2, %s5038_s15  ;;  %4494 = vrot.lane.b32.xlu0 %v4493_v30, %s5039_s19 }
 0x275   : > { %v4215_v42 = vpop.permute.xlu1 %4214 }
 0x276   : > { %v4210_v44 = vpop.permute.xlu0 %4209  ;;  %v4217_v58 = vunpack.i.h.bf16 %v4215_v42  ;;  %v4216_v59 = vunpack.i.l.bf16 %v4215_v42  ;;  %v4207_v42 = vunpack.i.h.bf16 %v5712_v39 }
 0x277   : > { %v4211_v47 = vunpack.i.l.bf16 %v4210_v44 }
 0x278   : > { %4499 = vrot.lane.b32.xlu0 %v4498_v46, %s5037_s18  ;;  %4504 = vrot.lane.b32.xlu1 %v4488_v21, %s5039_s19  ;;  %v2083_v21 = vsel %vm992_vm3, %v1026_v11, %v4187_v6  ;;  %v2114_v6 = vsel %vm639_vm2, %v2082_v63, %v4191_v27  ;;  %v4212_v11 = vunpack.i.h.bf16 %v4210_v44  ;;  %v4528_v63 = vpack.i.bf16 %v5743_v1, %v5734_v48 }
 0x279   : > { %v2115_v7 = vsel %vm639_vm2, %v2083_v21, %v4192_v16  ;;  %v4206_v16 = vunpack.i.l.bf16 %v5712_v39  ;;  %v2179_v34 = vsel %vm992_vm3, %v5512_v62, %v4211_v47 }
 0x27a   : > { %v5726_v12 = vpop.permute.xlu0 %4219  ;;  %v5728_v2 = vpop.permute.xlu1 %4224  ;;  %v2148_v44 = vsel %vm2146_vm4, %v2115_v7, %v4217_v58  ;;  %v2180_v50 = vsel %vm992_vm3, %v5514_v3, %v4212_v11  ;;  %v2085_v3 = vsel %vm992_vm3, %v5521_v8, %v4202_v29  ;;  %v1156_v8 = vld [vmem:[#allocation2 + $0x39] sm:$0xff] }
 0x27b   : > { %v4222_v39 = vunpack.i.h.bf16 %v5726_v12  ;;  %v4221_v0 = vunpack.i.l.bf16 %v5726_v12  ;;  %v4227_v12 = vunpack.i.h.bf16 %v5728_v2  ;;  %v4708_v29 = vld [vmem:[#allocation8 + $0x88] sm:$0xff]  }
 0x27c   : > { %4509 = vrot.lane.b32.xlu1 %v4493_v30, %s5037_s18  ;;  %4519 = vrot.lane.b32.xlu0 %v4518_v20, %s5038_s15  ;;  %v1240_v30 = vld [vmem:[#allocation2 + $0x138] sm:$0xff] }
 0x27d   : > { %v5755_v27 = vpack.i.bf16 %v1241_v9, %v1240_v30 }
 0x27e   : > { %v4240_v26 = vpop.permute.xlu0 %4239  ;;  %v5741_v51 = vpop.permute.xlu1 %4229 }
 0x27f   : > { %v4242_v37 = vunpack.i.h.bf16 %v4240_v26  ;;  %v4241_v60 = vunpack.i.l.bf16 %v4240_v26  ;;  %v2084_v26 = vsel %vm992_vm3, %v5528_v13, %v4201_v56 }
 0x280   : > { %4514 = vrot.lane.b32.xlu1 %v4498_v46, %s5038_s15  ;;  %4524 = vrot.lane.b32.xlu0 %v4523_v18, %s5039_s19  ;;  %v2147_v46 = vsel %vm2146_vm4, %v2114_v6, %v4216_v59  ;;  %v4226_v59 = vunpack.i.l.bf16 %v5728_v2  ;;  %v2182_v2 = vsel %vm992_vm3, %v1156_v8, %v4222_v39  ;;  %v1242_v8 = vld [vmem:[#allocation2 + $0x150] sm:$0xff] }
 0x281   : > { %v2212_v13 = vsel %vm639_vm2, %v2180_v50, %v4242_v37  ;;  %v2211_v7 = vsel %vm639_vm2, %v2179_v34, %v4241_v60  ;;  %v2275_v56 = vpack.c.bf16 %v2148_v44, %v2147_v46  ;;  %v2116_v60 = vsel %vm639_vm2, %v2084_v26, %v4206_v16  ;;  %v1155_v34 = vld [vmem:[#allocation2 + $0x31] sm:$0xff] }
 0x282   : > { %v4245_v21 = vpop.permute.xlu0 %4244  ;;  %v5762_v33 = vpop.permute.xlu1 %4234  ;;  %v2181_v44 = vsel %vm992_vm3, %v1155_v34, %v4221_v0  ;;  %v2117_v46 = vsel %vm639_vm2, %v2085_v3, %v4207_v42 }
 0x283   : > { %v4247_v30 = vunpack.i.h.bf16 %v4245_v21  ;;  %v4246_v9 = vunpack.i.l.bf16 %v4245_v21 }
 0x284   : > { %4529 = vrot.lane.b32.xlu0 %v4528_v63, %s5037_s18  ;;  %4534 = vrot.lane.b32.xlu1 %v4518_v20, %s5039_s19 }
 0x285   : > { %v2243_v62 = vsel %vm2146_vm4, %v2211_v7, %v4246_v9  ;;  %v2244_v47 = vsel %vm2146_vm4, %v2212_v13, %v4247_v30  ;;  %v1272_v9 = vld [vmem:[#allocation2 + $0x139] sm:$0xff]  ;;  %v1273_v30 = vld [vmem:[#allocation2 + $0x141] sm:$0xff]  ;;  %v2149_v13 = vsel %vm2146_vm4, %v2116_v60, %v4226_v59  ;;  %v2150_v7 = vsel %vm2146_vm4, %v2117_v46, %v4227_v12 }
 0x286   : > { %v4255_v58 = vpop.permute.xlu0 %4254  ;;  %v4250_v37 = vpop.permute.xlu1 %4249  ;;  %v2276_v6 = vpack.c.bf16 %v2244_v47, %v2243_v62  ;;  %v4553_v3 = vpack.i.bf16 %v1273_v30, %v1272_v9  ;;  %v1284_v62 = vld [vmem:[#allocation2 + $0x4a] sm:$0xff]  ;;  %v5798_v59 = vld [vmem:[#allocation2 + $0x142] sm:$0xff]  ;;  %v4237_v12 = vunpack.i.h.bf16 %v5762_v33  ;;  %v1243_v9 = vld [vmem:[#allocation2 + $0x158] sm:$0xff] }
 0x287   : > { %v4257_v11 = vunpack.i.h.bf16 %v4255_v58  ;;  %v4256_v21 = vunpack.i.l.bf16 %v4255_v58  ;;  %v4252_v20 = vunpack.i.h.bf16 %v4250_v37  ;;  %v4251_v50 = vunpack.i.l.bf16 %v4250_v37 }
 0x288   : > { %2554 = vmatprep.mubr.bf16.mxu0 %v2276_v6  ;;  %4539 = vrot.lane.b32.xlu1 %v4523_v18, %s5037_s18  ;;  %v4231_v58 = vunpack.i.l.bf16 %v5741_v51  ;;  %v2278_v37 = vpack.c.bf16 %v2150_v7, %v2149_v13  ;;  %v4236_v6 = vunpack.i.l.bf16 %v5762_v33 }
 0x289   : > { %4549 = vrot.lane.b32.xlu0 %v5755_v27, %s5038_s15  ;;  %2555 = vmatmul.mubr.bf16.vlgmr.msra.gmra.mrb[64].mxu0 %v2275_v56  ;;  %v2213_v16 = vsel %vm639_vm2, %v2181_v44, %v4251_v50  ;;  %v2214_v26 = vsel %vm639_vm2, %v2182_v2, %v4252_v20  ;;  %v5796_v56 = vld [vmem:[#allocation2 + $0x13a] sm:$0xff] }
 0x28a   : > { %3969 = vmatpush3.bf16.msra.mxu0 %v5550_v32  ;;  %3972 = vmatprep.mubr.msk.bf16.mxu0 %vm992_vm3, %v2277_v28  ;;  %v4260_v18 = vpop.permute.xlu0 %4259  ;;  %v4265_v0 = vpop.permute.xlu1 %4264  ;;  %v2245_v39 = vsel %vm2146_vm4, %v2213_v16, %v4256_v21  ;;  %v2246_v42 = vsel %vm2146_vm4, %v2214_v26, %v4257_v11  ;;  %v1285_v32 = vld [vmem:[#allocation2 + $0x52] sm:$0xff]  ;;  %v4232_v28 = vunpack.i.h.bf16 %v5741_v51  ;;  %v1286_v11 = vld [vmem:[#allocation2 + $0x62] sm:$0xff]  ;;  %v1287_v21 = vld [vmem:[#allocation2 + $0x6a] sm:$0xff]  ;;  %v4558_v51 = vpack.i.bf16 %v5798_v59, %v5796_v56 }
 0x28b   : > { %3970 = vmatprep.subr.bf16.mxu0 %v4708_v29  ;;  %v2279_v47 = vpack.c.bf16 %v2246_v42, %v2245_v39  ;;  %v4262_v20 = vunpack.i.h.bf16 %v4260_v18  ;;  %v4261_v50 = vunpack.i.l.bf16 %v4260_v18  ;;  %v2280_v34 = vpack.c.bf16 %v1285_v32, %v1284_v62  ;;  %v1157_v18 = vld [vmem:[#allocation2 + $0x49] sm:$0xff] }
 0x28c   : > { %4544 = vrot.lane.b32.xlu1 %v4528_v63, %s5038_s15  ;;  %v4267_v30 = vunpack.i.h.bf16 %v4265_v0  ;;  %v4266_v44 = vunpack.i.l.bf16 %v4265_v0  ;;  %v2087_v46 = vsel %vm992_vm3, %v5538_v23, %v4232_v28  ;;  %v2283_v16 = vpack.c.bf16 %v1287_v21, %v1286_v11  ;;  %v1158_v0 = vld [vmem:[#allocation2 + $0x51] sm:$0xff]  ;;  %v1288_v11 = vld [vmem:[#allocation2 + $0x7a] sm:$0xff]  ;;  %v1289_v21 = vld [vmem:[#allocation2 + $0x82] sm:$0xff] }
 0x28d   : > { %4554 = vrot.lane.b32.xlu0 %v4553_v3, %s5039_s19  ;;  %2562 = vmatprep.mubr.bf16.mxu1 %v2279_v47  ;;  %v2119_v13 = vsel %vm639_vm2, %v2087_v46, %v4237_v12  ;;  %v4578_v42 = vpack.i.bf16 %v1243_v9, %v1242_v8  ;;  %v2184_v7 = vsel %vm992_vm3, %v1158_v0, %v4262_v20  ;;  %v5827_v28 = vld [vmem:[#allocation2 + $0x151] sm:$0xff]  ;;  %v1291_v8 = vld [vmem:[#allocation2 + $0x9a] sm:$0xff] }
 0x28e   : > { %3971 = vmatpush3.bf16.msra.mxu0 %v4708_v29  ;;  %v5805_v63 = vpop.permute.xlu1 %4269  ;;  %v4280_v60 = vpop.permute.xlu0 %4279  ;;  %2563 = vmatmul.mubr.bf16.vlgmr.msra.gmra.mrb[0].mxu1 %v2278_v37  ;;  %v2086_v29 = vsel %vm992_vm3, %v5536_v19, %v4231_v58  ;;  %v2183_v19 = vsel %vm992_vm3, %v1157_v18, %v4261_v50  ;;  %v5829_v58 = vld [vmem:[#allocation2 + $0x159] sm:$0xff]  ;;  %v2152_v12 = vsel %vm2146_vm4, %v2119_v13, %v4267_v30  ;;  %v1292_v0 = vld [vmem:[#allocation2 + $0xaa] sm:$0xff] }
 0x28f   : > { %v4282_v2 = vunpack.i.h.bf16 %v4280_v60  ;;  %v4281_v33 = vunpack.i.l.bf16 %v4280_v60  ;;  %v2118_v26 = vsel %vm639_vm2, %v2086_v29, %v4236_v6  ;;  %v4583_v9 = vpack.i.bf16 %v5829_v58, %v5827_v28 }
 0x290   : > { %4564 = vrot.lane.b32.xlu1 %v5755_v27, %s5039_s19  ;;  %v2151_v37 = vsel %vm2146_vm4, %v2118_v26, %v4266_v44  ;;  %v2286_v30 = vpack.c.bf16 %v1289_v21, %v1288_v11  ;;  %v5839_v44 = vld [vmem:[#allocation2 + $0x152] sm:$0xff]  ;;  %v4272_v29 = vunpack.i.h.bf16 %v5805_v63  ;;  %v4271_v46 = vunpack.i.l.bf16 %v5805_v63  ;;  %v1159_v21 = vld [vmem:[#allocation2 + $0x61] sm:$0xff] }
 0x291   : > { %4559 = vrot.lane.b32.xlu0 %v4558_v51, %s5037_s18  ;;  %3973 = vmatmul.mubr.msk.bf16.vlgmr.msra.gmra.mrb[68].mxu0 %vm992_vm3, %v2280_v34  ;;  %v2216_v47 = vsel %vm639_vm2, %v2184_v7, %v4282_v2  ;;  %v2215_v32 = vsel %vm639_vm2, %v2183_v19, %v4281_v33  ;;  %v2281_v2 = vpack.c.bf16 %v2152_v12, %v2151_v37  ;;  %v5841_v33 = vld [vmem:[#allocation2 + $0x15a] sm:$0xff]  ;;  %v1244_v7 = vld [vmem:[#allocation2 + $0x168] sm:$0xff] }
 0x292   : > { %v5819_v39 = vpop.permute.xlu1 %4274  ;;  %v4285_v27 = vpop.permute.xlu0 %4284  ;;  %3976 = vmatprep.mubr.msk.bf16.mxu0 %vm992_vm3, %v2283_v16  ;;  %v4588_v63 = vpack.i.bf16 %v5841_v33, %v5839_v44 }
 0x293   : > { %v4287_v23 = vunpack.i.h.bf16 %v4285_v27  ;;  %v4286_v62 = vunpack.i.l.bf16 %v4285_v27  ;;  %v4277_v26 = vunpack.i.h.bf16 %v5819_v39  ;;  %v4276_v13 = vunpack.i.l.bf16 %v5819_v39 }
 0x294   : > { %4569 = vrot.lane.b32.xlu1 %v4553_v3, %s5037_s18  ;;  %v1290_v3 = vld [vmem:[#allocation2 + $0x92] sm:$0xff] }
 0x295   : > { %4579 = vrot.lane.b32.xlu0 %v4578_v42, %s5038_s15  ;;  %v2247_v6 = vsel %vm2146_vm4, %v2215_v32, %v4286_v62  ;;  %v2248_v60 = vsel %vm2146_vm4, %v2216_v47, %v4287_v23  ;;  %v2289_v16 = vpack.c.bf16 %v1291_v8, %v1290_v3  ;;  %v1245_v23 = vld [vmem:[#allocation2 + $0x170] sm:$0xff]  ;;  %v1031_v47 = vld [vmem:[#allocation2 + $0x48] sm:$0xff] }
 0x296   : > { %v4290_v20 = vpop.permute.xlu0 %4289  ;;  %v4295_v50 = vpop.permute.xlu1 %4294  ;;  %v2282_v34 = vpack.c.bf16 %v2248_v60, %v2247_v6  ;;  %v1293_v62 = vld [vmem:[#allocation2 + $0xb2] sm:$0xff]  ;;  %v2088_v60 = vsel %vm992_vm3, %v1031_v47, %v4271_v46  ;;  %v1160_v3 = vld [vmem:[#allocation2 + $0x69] sm:$0xff] }
 0x297   : > { %v4292_v27 = vunpack.i.h.bf16 %v4290_v20  ;;  %v4291_v19 = vunpack.i.l.bf16 %v4290_v20  ;;  %v1032_v32 = vld [vmem:[#allocation2 + $0x50] sm:$0xff]  ;;  %v4297_v37 = vunpack.i.h.bf16 %v4295_v50  ;;  %v4296_v39 = vunpack.i.l.bf16 %v4295_v50 }
 0x298   : > { %2570 = vmatprep.mubr.bf16.mxu1 %v2282_v34  ;;  %4574 = vrot.lane.b32.xlu1 %v4558_v51, %s5038_s15  ;;  %v2089_v11 = vsel %vm992_vm3, %v1032_v32, %v4272_v29  ;;  %v2120_v20 = vsel %vm639_vm2, %v2088_v60, %v4276_v13  ;;  %v2292_v50 = vpack.c.bf16 %v1293_v62, %v1292_v0  ;;  %v5867_v13 = vld [vmem:[#allocation2 + $0x171] sm:$0xff]  ;;  %v1296_v60 = vld [vmem:[#allocation2 + $0xda] sm:$0xff] }
 0x299   : > { %4584 = vrot.lane.b32.xlu0 %v4583_v9, %s5039_s19  ;;  %2571 = vmatmul.mubr.bf16.gmra.mrb[4].mxu1 %v2281_v2  ;;  %v2121_v34 = vsel %vm639_vm2, %v2089_v11, %v4277_v26  ;;  %v2186_v46 = vsel %vm992_vm3, %v1160_v3, %v4292_v27  ;;  %v5865_v26 = vld [vmem:[#allocation2 + $0x169] sm:$0xff]  ;;  %v2153_v0 = vsel %vm2146_vm4, %v2120_v20, %v4296_v39 }
 0x29a   : > { %3977 = vmatmul.mubr.msk.bf16.gmra.mrb[72].mxu0 %vm992_vm3, %v2286_v30  ;;  %v5849_v51 = vpop.permute.xlu1 %4299  ;;  %v4310_v18 = vpop.permute.xlu0 %4309  ;;  %v4608_v30 = vpack.i.bf16 %v1245_v23, %v1244_v7  ;;  %v2154_v7 = vsel %vm2146_vm4, %v2121_v34, %v4297_v37  ;;  %v5879_v37 = vld [vmem:[#allocation2 + $0x16a] sm:$0xff]  ;;  %v1297_v11 = vld [vmem:[#allocation2 + $0xe2] sm:$0xff] }
 0x29b   : > { %3980 = vmatprep.mubr.msk.bf16.mxu0 %vm992_vm3, %v2289_v16  ;;  %v4312_v12 = vunpack.i.h.bf16 %v4310_v18  ;;  %v4311_v6 = vunpack.i.l.bf16 %v4310_v18  ;;  %v1294_v16 = vld [vmem:[#allocation2 + $0xc2] sm:$0xff]  ;;  %v1295_v18 = vld [vmem:[#allocation2 + $0xca] sm:$0xff]  ;;  %v2284_v39 = vpack.c.bf16 %v2154_v7, %v2153_v0  ;;  %v4301_v20 = vunpack.i.l.bf16 %v5849_v51 }
 0x29c   : > { %4594 = vrot.lane.b32.xlu1 %v4578_v42, %s5039_s19  ;;  %v2185_v42 = vsel %vm992_vm3, %v1159_v21, %v4291_v19  ;;  %v2295_v19 = vpack.c.bf16 %v1295_v18, %v1294_v16  ;;  %v4302_v21 = vunpack.i.h.bf16 %v5849_v51 }
 0x29d   : > { %4589 = vrot.lane.b32.xlu0 %v4588_v63, %s5037_s18  ;;  %v2218_v32 = vsel %vm639_vm2, %v2186_v46, %v4312_v12  ;;  %v2217_v22 = vsel %vm639_vm2, %v2185_v42, %v4311_v6  ;;  %v4613_v6 = vpack.i.bf16 %v5867_v13, %v5865_v26  ;;  %v2298_v42 = vpack.c.bf16 %v1297_v11, %v1296_v60  ;;  %v1246_v46 = vld [vmem:[#allocation2 + $0x180] sm:$0xff] }
 0x29e   : > { %v4305_v8 = vpop.permute.xlu1 %4304  ;;  %v4315_v2 = vpop.permute.xlu0 %4314  ;;  %v1162_v60 = vld [vmem:[#allocation2 + $0x81] sm:$0xff] }
 0x29f   : > { %v4317_v47 = vunpack.i.h.bf16 %v4315_v2  ;;  %v4316_v29 = vunpack.i.l.bf16 %v4315_v2  ;;  %v4307_v34 = vunpack.i.h.bf16 %v4305_v8  ;;  %v4306_v3 = vunpack.i.l.bf16 %v4305_v8 }
 0x2a0   : > { %4599 = vrot.lane.b32.xlu1 %v4583_v9, %s5037_s18 }
 0x2a1   : > { %4609 = vrot.lane.b32.xlu0 %v4608_v30, %s5038_s15  ;;  %v2249_v27 = vsel %vm2146_vm4, %v2217_v22, %v4316_v29  ;;  %v2250_v23 = vsel %vm2146_vm4, %v2218_v32, %v4317_v47  ;;  %v5881_v22 = vld [vmem:[#allocation2 + $0x172] sm:$0xff]  ;;  %v1247_v47 = vld [vmem:[#allocation2 + $0x188] sm:$0xff]  ;;  %v1033_v29 = vld [vmem:[#allocation2 + $0x60] sm:$0xff] }
 0x2a2   : > { %3981 = vmatmul.mubr.msk.bf16.gmra.mrb[76].mxu0 %vm992_vm3, %v2292_v50  ;;  %v4320_v62 = vpop.permute.xlu0 %4319  ;;  %v4325_v12 = vpop.permute.xlu1 %4324  ;;  %v2285_v9 = vpack.c.bf16 %v2250_v23, %v2249_v27  ;;  %v1034_v32 = vld [vmem:[#allocation2 + $0x68] sm:$0xff]  ;;  %v2090_v8 = vsel %vm992_vm3, %v1033_v29, %v4301_v20  ;;  %v2301_v23 = vpack.c.bf16 %v5694_v54, %v5692_v53 }
 0x2a3   : > { %3984 = vmatprep.mubr.msk.bf16.mxu0 %vm992_vm3, %v2295_v19  ;;  %v4322_v16 = vunpack.i.h.bf16 %v4320_v62  ;;  %v4321_v18 = vunpack.i.l.bf16 %v4320_v62  ;;  %v4327_v0 = vunpack.i.h.bf16 %v4325_v12  ;;  %v4326_v51 = vunpack.i.l.bf16 %v4325_v12 }
 0x2a4   : > { %2578 = vmatprep.mubr.bf16.mxu1 %v2285_v9  ;;  %4604 = vrot.lane.b32.xlu1 %v4588_v63, %s5038_s15  ;;  %v4618_v63 = vpack.i.bf16 %v5881_v22, %v5879_v37  ;;  %v2091_v27 = vsel %vm992_vm3, %v1034_v32, %v4302_v21  ;;  %v2122_v62 = vsel %vm639_vm2, %v2090_v8, %v4306_v3  ;;  %v5907_v3 = vld [vmem:[#allocation2 + $0x189] sm:$0xff] }
 0x2a5   : > { %4614 = vrot.lane.b32.xlu0 %v4613_v6, %s5039_s19  ;;  %2579 = vmatmul.mubr.bf16.gmra.mrb[8].mxu1 %v2284_v39  ;;  %v2123_v9 = vsel %vm639_vm2, %v2091_v27, %v4307_v34  ;;  %v1161_v39 = vld [vmem:[#allocation2 + $0x79] sm:$0xff]  ;;  %v2188_v21 = vsel %vm992_vm3, %v1162_v60, %v4322_v16  ;;  %v5905_v34 = vld [vmem:[#allocation2 + $0x181] sm:$0xff]  ;;  %v5921_v8 = vld [vmem:[#allocation2 + $0x18a] sm:$0xff] }
 0x2a6   : > { %v5886_v2 = vpop.permute.xlu1 %4329  ;;  %v4340_v50 = vpop.permute.xlu0 %4339  ;;  %v2187_v20 = vsel %vm992_vm3, %v1161_v39, %v4321_v18  ;;  %v2156_v18 = vsel %vm2146_vm4, %v2123_v9, %v4327_v0  ;;  %v5919_v0 = vld [vmem:[#allocation2 + $0x182] sm:$0xff] }
 0x2a7   : > { %v4342_v7 = vunpack.i.h.bf16 %v4340_v50  ;;  %v4341_v19 = vunpack.i.l.bf16 %v4340_v50  ;;  %v4332_v27 = vunpack.i.h.bf16 %v5886_v2  ;;  %v1281_v60 = vld [vmem:[#allocation2 + $0x1a1] sm:$0xff] }
 0x2a8   : > { %4624 = vrot.lane.b32.xlu1 %v4608_v30, %s5039_s19  ;;  %v4638_v30 = vpack.i.bf16 %v1247_v47, %v1246_v46 }
 0x2a9   : > { %4619 = vrot.lane.b32.xlu0 %v4618_v63, %s5037_s18  ;;  %v2220_v53 = vsel %vm639_vm2, %v2188_v21, %v4342_v7  ;;  %v2219_v54 = vsel %vm639_vm2, %v2187_v20, %v4341_v19  ;;  %v1035_v21 = vld [vmem:[#allocation2 + $0x78] sm:$0xff] }
 0x2aa   : > { %3985 = vmatmul.mubr.msk.bf16.gmra.mrb[80].mxu0 %vm992_vm3, %v2298_v42  ;;  %v4335_v12 = vpop.permute.xlu1 %4334  ;;  %v4345_v11 = vpop.permute.xlu0 %4344  ;;  %v2155_v42 = vsel %vm2146_vm4, %v2122_v62, %v4326_v51  ;;  %v2304_v51 = vpack.c.bf16 %v5718_v38, %v5716_v35  ;;  %v2307_v62 = vpack.c.bf16 %v5743_v1, %v5734_v48  ;;  %v1280_v38 = vld [vmem:[#allocation2 + $0x199] sm:$0xff] }
 0x2ab   : > { %v4347_v50 = vunpack.i.h.bf16 %v4345_v11  ;;  %v4346_v29 = vunpack.i.l.bf16 %v4345_v11  ;;  %3988 = vmatprep.mubr.msk.bf16.mxu0 %vm992_vm3, %v2301_v23  ;;  %v2287_v19 = vpack.c.bf16 %v2156_v18, %v2155_v42  ;;  %v4331_v23 = vunpack.i.l.bf16 %v5886_v2 }
 0x2ac   : > { %4629 = vrot.lane.b32.xlu1 %v4613_v6, %s5037_s18  ;;  %v4643_v6 = vpack.i.bf16 %v5907_v3, %v5905_v34  ;;  %v4337_v9 = vunpack.i.h.bf16 %v4335_v12  ;;  %v4336_v39 = vunpack.i.l.bf16 %v4335_v12  ;;  %v4648_v2 = vpack.i.bf16 %v5921_v8, %v5919_v0 }
 0x2ad   : > { %4639 = vrot.lane.b32.xlu0 %v4638_v30, %s5038_s15  ;;  %v2251_v16 = vsel %vm2146_vm4, %v2219_v54, %v4346_v29  ;;  %v2252_v46 = vsel %vm2146_vm4, %v2220_v53, %v4347_v50  ;;  %v1036_v50 = vld [vmem:[#allocation2 + $0x80] sm:$0xff]  ;;  %v2092_v53 = vsel %vm992_vm3, %v1035_v21, %v4331_v23  ;;  %v4653_v42 = vpack.i.bf16 %v1281_v60, %v1280_v38 }
 0x2ae   : > { %v4350_v47 = vpop.permute.xlu0 %4349  ;;  %v4355_v32 = vpop.permute.xlu1 %4354  ;;  %v2288_v7 = vpack.c.bf16 %v2252_v46, %v2251_v16  ;;  %v2093_v54 = vsel %vm992_vm3, %v1036_v50, %v4332_v27  ;;  %v2124_v18 = vsel %vm639_vm2, %v2092_v53, %v4336_v39  ;;  %v1163_v46 = vld [vmem:[#allocation2 + $0x91] sm:$0xff] }
 0x2af   : > { %v4352_v11 = vunpack.i.h.bf16 %v4350_v47  ;;  %v4351_v20 = vunpack.i.l.bf16 %v4350_v47  ;;  %v4357_v29 = vunpack.i.h.bf16 %v4355_v32  ;;  %v4356_v48 = vunpack.i.l.bf16 %v4355_v32  ;;  %v1164_v47 = vld [vmem:[#allocation2 + $0x99] sm:$0xff]  ;;  %v1037_v53 = vld [vmem:[#allocation2 + $0x90] sm:$0xff] }
 0x2b0   : > { %2586 = vmatprep.mubr.bf16.mxu1 %v2288_v7  ;;  %4634 = vrot.lane.b32.xlu1 %v4618_v63, %s5038_s15  ;;  %v2125_v16 = vsel %vm639_vm2, %v2093_v54, %v4337_v9  ;;  %v2310_v32 = vpack.c.bf16 %v5798_v59, %v5796_v56  ;;  %v1038_v54 = vld [vmem:[#allocation2 + $0x98] sm:$0xff] }
 0x2b1   : > { %4644 = vrot.lane.b32.xlu0 %v4643_v6, %s5039_s19  ;;  %2587 = vmatmul.mubr.bf16.gmra.mrb[12].mxu1 %v2287_v19  ;;  %v2190_v19 = vsel %vm992_vm3, %v1164_v47, %v4352_v11  ;;  %v2157_v39 = vsel %vm2146_vm4, %v2124_v18, %v4356_v48  ;;  %v2158_v9 = vsel %vm2146_vm4, %v2125_v16, %v4357_v29 }
 0x2b2   : > { %3989 = vmatmul.mubr.msk.bf16.gmra.mrb[84].mxu0 %vm992_vm3, %v2304_v51  ;;  %v5929_v63 = vpop.permute.xlu1 %4359  ;;  %v4370_v35 = vpop.permute.xlu0 %4369 }
 0x2b3   : > { %3992 = vmatprep.mubr.msk.bf16.mxu0 %vm992_vm3, %v2307_v62  ;;  %v4372_v1 = vunpack.i.h.bf16 %v4370_v35  ;;  %v4371_v12 = vunpack.i.l.bf16 %v4370_v35  ;;  %v2313_v35 = vpack.c.bf16 %v5841_v33, %v5839_v44  ;;  %v4361_v21 = vunpack.i.l.bf16 %v5929_v63 }
 0x2b4   : > { %4659 = vrot.lane.b32.xlu1 %v4638_v30, %s5039_s19  ;;  %v2189_v30 = vsel %vm992_vm3, %v1163_v46, %v4351_v20  ;;  %v2290_v20 = vpack.c.bf16 %v2158_v9, %v2157_v39  ;;  %v1312_v39 = vld [vmem:[#allocation2 + $0x19a] sm:$0xff] }
 0x2b5   : > { %4649 = vrot.lane.b32.xlu0 %v4648_v2, %s5037_s18  ;;  %v2222_v23 = vsel %vm639_vm2, %v2190_v19, %v4372_v1  ;;  %v2221_v62 = vsel %vm639_vm2, %v2189_v30, %v4371_v12  ;;  %v4362_v2 = vunpack.i.h.bf16 %v5929_v63  ;;  %v2316_v12 = vpack.c.bf16 %v5881_v22, %v5879_v37  ;;  %v1165_v30 = vld [vmem:[#allocation2 + $0xa9] sm:$0xff]  ;;  %v1166_v19 = vld [vmem:[#allocation2 + $0xb1] sm:$0xff] }
 0x2b6   : > { %v4365_v7 = vpop.permute.xlu1 %4364  ;;  %v4375_v6 = vpop.permute.xlu0 %4374  ;;  %v2094_v47 = vsel %vm992_vm3, %v1037_v53, %v4361_v21 }
 0x2b7   : > { %v4377_v51 = vunpack.i.h.bf16 %v4375_v6  ;;  %v4376_v27 = vunpack.i.l.bf16 %v4375_v6  ;;  %v4367_v50 = vunpack.i.h.bf16 %v4365_v7  ;;  %v4366_v44 = vunpack.i.l.bf16 %v4365_v7 }
 0x2b8   : > { %v2095_v63 = vsel %vm992_vm3, %v1038_v54, %v4362_v2  ;;  %v2319_v7 = vpack.c.bf16 %v5921_v8, %v5919_v0  ;;  %v1313_v0 = vld [vmem:[#allocation2 + $0x1a2] sm:$0xff] }
 0x2b9   : > { %4654 = vrot.lane.b32.xlu0 %v4653_v42, %s5039_s19  ;;  %v2253_v56 = vsel %vm2146_vm4, %v2221_v62, %v4376_v27  ;;  %v2254_v59 = vsel %vm2146_vm4, %v2222_v23, %v4377_v51  ;;  %v2126_v6 = vsel %vm639_vm2, %v2094_v47, %v4366_v44  ;;  %v2322_v2 = vpack.c.bf16 %v1313_v0, %v1312_v39 }
 0x2ba   : > { %3993 = vmatmul.mubr.msk.bf16.gmra.mrb[88].mxu0 %vm992_vm3, %v2310_v32  ;;  %v4380_v38 = vpop.permute.xlu0 %4379  ;;  %v4385_v60 = vpop.permute.xlu1 %4384  ;;  %v2291_v11 = vpack.c.bf16 %v2254_v59, %v2253_v56  ;;  %v2127_v32 = vsel %vm639_vm2, %v2095_v63, %v4367_v50 }
 0x2bb   : > { %3996 = vmatprep.mubr.msk.bf16.mxu0 %vm992_vm3, %v2313_v35  ;;  %v4382_v48 = vunpack.i.h.bf16 %v4380_v38  ;;  %v4381_v1 = vunpack.i.l.bf16 %v4380_v38  ;;  %v4387_v42 = vunpack.i.h.bf16 %v4385_v60  ;;  %v4386_v18 = vunpack.i.l.bf16 %v4385_v60 }
 0x2bc   : > { %2594 = vmatprep.mubr.bf16.mxu1 %v2291_v11 }
 0x2bd   : > { %2595 = vmatmul.mubr.bf16.gmra.mrb[16].mxu1 %v2290_v20  ;;  %v2191_v51 = vsel %vm992_vm3, %v1165_v30, %v4381_v1  ;;  %v2192_v27 = vsel %vm992_vm3, %v1166_v19, %v4382_v48  ;;  %v2159_v35 = vsel %vm2146_vm4, %v2126_v6, %v4386_v18  ;;  %v2160_v56 = vsel %vm2146_vm4, %v2127_v32, %v4387_v42  ;;  %v1039_v42 = vld [vmem:[#allocation2 + $0xa8] sm:$0xff]  ;;  %v1040_v18 = vld [vmem:[#allocation2 + $0xb0] sm:$0xff] }
 0x2be   : > { %v4390_v33 = vpop.permute.xlu1 %4389  ;;  %v4400_v29 = vpop.permute.xlu0 %4399  ;;  %v2293_v21 = vpack.c.bf16 %v2160_v56, %v2159_v35  ;;  %v1167_v30 = vld [vmem:[#allocation2 + $0xc1] sm:$0xff]  ;;  %v1168_v19 = vld [vmem:[#allocation2 + $0xc9] sm:$0xff] }
 0x2bf   : > { %v4402_v16 = vunpack.i.h.bf16 %v4400_v29  ;;  %v4401_v46 = vunpack.i.l.bf16 %v4400_v29  ;;  %v4392_v50 = vunpack.i.h.bf16 %v4390_v33  ;;  %v4391_v44 = vunpack.i.l.bf16 %v4390_v33 }
 0x2c1   : > { %v2224_v8 = vsel %vm639_vm2, %v2192_v27, %v4402_v16  ;;  %v2223_v9 = vsel %vm639_vm2, %v2191_v51, %v4401_v46  ;;  %v2097_v6 = vsel %vm992_vm3, %v1040_v18, %v4392_v50 }
 0x2c2   : > { %3997 = vmatmul.mubr.msk.bf16.gmra.mrb[92].mxu0 %vm992_vm3, %v2316_v12  ;;  %v4395_v37 = vpop.permute.xlu1 %4394  ;;  %v4405_v22 = vpop.permute.xlu0 %4404 }
 0x2c3   : > { %v4407_v23 = vunpack.i.h.bf16 %v4405_v22  ;;  %v4406_v62 = vunpack.i.l.bf16 %v4405_v22  ;;  %4000 = vmatprep.mubr.msk.bf16.mxu0 %vm992_vm3, %v2319_v7  ;;  %v4397_v29 = vunpack.i.h.bf16 %v4395_v37  ;;  %v4396_v48 = vunpack.i.l.bf16 %v4395_v37 }
 0x2c4   : > { %v2096_v7 = vsel %vm992_vm3, %v1039_v42, %v4391_v44 }
 0x2c5   : > { %v2255_v59 = vsel %vm2146_vm4, %v2223_v9, %v4406_v62  ;;  %v2256_v38 = vsel %vm2146_vm4, %v2224_v8, %v4407_v23  ;;  %v2128_v33 = vsel %vm639_vm2, %v2096_v7, %v4396_v48  ;;  %v2129_v32 = vsel %vm639_vm2, %v2097_v6, %v4397_v29  ;;  %v1169_v6 = vld [vmem:[#allocation2 + $0xd9] sm:$0xff] }
 0x2c6   : > { %v4410_v60 = vpop.permute.xlu0 %4409  ;;  %v4415_v11 = vpop.permute.xlu1 %4414  ;;  %v2294_v20 = vpack.c.bf16 %v2256_v38, %v2255_v59 }
 0x2c7   : > { %v4412_v53 = vunpack.i.h.bf16 %v4410_v60  ;;  %v4411_v54 = vunpack.i.l.bf16 %v4410_v60  ;;  %v4417_v16 = vunpack.i.h.bf16 %v4415_v11  ;;  %v4416_v46 = vunpack.i.l.bf16 %v4415_v11 }
 0x2c8   : > { %2602 = vmatprep.mubr.bf16.mxu1 %v2294_v20 }
 0x2c9   : > { %2603 = vmatmul.mubr.bf16.gmra.mrb[20].mxu1 %v2293_v21  ;;  %v2193_v51 = vsel %vm992_vm3, %v1167_v30, %v4411_v54  ;;  %v2194_v27 = vsel %vm992_vm3, %v1168_v19, %v4412_v53  ;;  %v2161_v8 = vsel %vm2146_vm4, %v2128_v33, %v4416_v46  ;;  %v2162_v9 = vsel %vm2146_vm4, %v2129_v32, %v4417_v16  ;;  %v1041_v53 = vld [vmem:[#allocation2 + $0xc0] sm:$0xff]  ;;  %v1042_v54 = vld [vmem:[#allocation2 + $0xc8] sm:$0xff] }
 0x2ca   : > { %v4420_v1 = vpop.permute.xlu1 %4419  ;;  %v4430_v12 = vpop.permute.xlu0 %4429  ;;  %4001 = vmatmul.mubr.msk.bf16.gmra.mrb[96].mxu0 %vm992_vm3, %v2322_v2  ;;  %v2296_v11 = vpack.c.bf16 %v2162_v9, %v2161_v8  ;;  %v1170_v33 = vld [vmem:[#allocation2 + $0xe1] sm:$0xff] }
 0x2cb   : > { %v4432_v47 = vunpack.i.h.bf16 %v4430_v12  ;;  %v4431_v63 = vunpack.i.l.bf16 %v4430_v12  ;;  %v4422_v20 = vunpack.i.h.bf16 %v4420_v1  ;;  %v4421_v2 = vunpack.i.l.bf16 %v4420_v1 }
 0x2cd   : > { %v2226_v39 = vsel %vm639_vm2, %v2194_v27, %v4432_v47  ;;  %v2225_v0 = vsel %vm639_vm2, %v2193_v51, %v4431_v63  ;;  %v2098_v47 = vsel %vm992_vm3, %v1041_v53, %v4421_v2  ;;  %v2099_v63 = vsel %vm992_vm3, %v1042_v54, %v4422_v20  ;;  %v1044_v53 = vld [vmem:[#allocation2 + $0xe0] sm:$0xff] }
 0x2ce   : > { %v4425_v37 = vpop.permute.xlu1 %4424  ;;  %v4435_v22 = vpop.permute.xlu0 %4434 }
 0x2cf   : > { %v4437_v23 = vunpack.i.h.bf16 %v4435_v22  ;;  %v4436_v62 = vunpack.i.l.bf16 %v4435_v22  ;;  %v4427_v21 = vunpack.i.h.bf16 %v4425_v37  ;;  %v4426_v50 = vunpack.i.l.bf16 %v4425_v37 }
 0x2d1   : > { %v2257_v35 = vsel %vm2146_vm4, %v2225_v0, %v4436_v62  ;;  %v2258_v56 = vsel %vm2146_vm4, %v2226_v39, %v4437_v23  ;;  %v2130_v7 = vsel %vm639_vm2, %v2098_v47, %v4426_v50  ;;  %v2131_v1 = vsel %vm639_vm2, %v2099_v63, %v4427_v21  ;;  %v4709_v50 = vld [vmem:[#allocation9] sm:$0xff]  }
 0x2d2   : > { %v4440_v59 = vpop.permute.xlu0 %4439  ;;  %v4445_v38 = vpop.permute.xlu1 %4444  ;;  %v2297_v60 = vpack.c.bf16 %v2258_v56, %v2257_v35  ;;  %4004 = vmatprep.subr.bf16.mxu1 %v4709_v50 }
 0x2d3   : > { %v4442_v48 = vunpack.i.h.bf16 %v4440_v59  ;;  %v4441_v12 = vunpack.i.l.bf16 %v4440_v59  ;;  %v4447_v42 = vunpack.i.h.bf16 %v4445_v38  ;;  %v4446_v18 = vunpack.i.l.bf16 %v4445_v38  ;;  %4005 = vmatpush3.bf16.msra.mxu1 %v4709_v50 }
 0x2d4   : > { %2610 = vmatprep.mubr.bf16.mxu1 %v2297_v60 }
 0x2d5   : > { %2611 = vmatmul.mubr.bf16.gmra.mrb[24].mxu1 %v2296_v11  ;;  %v2195_v19 = vsel %vm992_vm3, %v1169_v6, %v4441_v12  ;;  %v2196_v37 = vsel %vm992_vm3, %v1170_v33, %v4442_v48  ;;  %v2163_v62 = vsel %vm2146_vm4, %v2130_v7, %v4446_v18  ;;  %v2164_v39 = vsel %vm2146_vm4, %v2131_v1, %v4447_v42  ;;  %v1043_v12 = vld [vmem:[#allocation2 + $0xd8] sm:$0xff] }
 0x2d6   : > { %v4450_v44 = vpop.permute.xlu1 %4449  ;;  %v4460_v29 = vpop.permute.xlu0 %4459  ;;  %v2299_v59 = vpack.c.bf16 %v2164_v39, %v2163_v62  ;;  %v1171_v7 = vld [vmem:[#allocation2 + $0xf1] sm:$0xff]  ;;  %v1172_v1 = vld [vmem:[#allocation2 + $0xf9] sm:$0xff] }
 0x2d7   : > { %v4462_v16 = vunpack.i.h.bf16 %v4460_v29  ;;  %v4461_v46 = vunpack.i.l.bf16 %v4460_v29  ;;  %v4452_v38 = vunpack.i.h.bf16 %v4450_v44  ;;  %v4451_v60 = vunpack.i.l.bf16 %v4450_v44 }
 0x2d9   : > { %v2228_v27 = vsel %vm639_vm2, %v2196_v37, %v4462_v16  ;;  %v2227_v23 = vsel %vm639_vm2, %v2195_v19, %v4461_v46  ;;  %v2100_v46 = vsel %vm992_vm3, %v1043_v12, %v4451_v60  ;;  %v2101_v47 = vsel %vm992_vm3, %v1044_v53, %v4452_v38  ;;  %v1046_v12 = vld [vmem:[#allocation2 + $0xf8] sm:$0xff] }
 0x2da   : > { %v4455_v32 = vpop.permute.xlu1 %4454  ;;  %v4465_v30 = vpop.permute.xlu0 %4464 }
 0x2db   : > { %v4467_v22 = vunpack.i.h.bf16 %v4465_v30  ;;  %v4466_v51 = vunpack.i.l.bf16 %v4465_v30  ;;  %v4457_v11 = vunpack.i.h.bf16 %v4455_v32  ;;  %v4456_v20 = vunpack.i.l.bf16 %v4455_v32 }
 0x2dd   : > { %v2259_v0 = vsel %vm2146_vm4, %v2227_v23, %v4466_v51  ;;  %v2260_v8 = vsel %vm2146_vm4, %v2228_v27, %v4467_v22  ;;  %v2132_v44 = vsel %vm639_vm2, %v2100_v46, %v4456_v20  ;;  %v2133_v63 = vsel %vm639_vm2, %v2101_v47, %v4457_v11 }
 0x2de   : > { %v4470_v9 = vpop.permute.xlu0 %4469  ;;  %v4475_v35 = vpop.permute.xlu1 %4474  ;;  %v2300_v56 = vpack.c.bf16 %v2260_v8, %v2259_v0 }
 0x2df   : > { %v4472_v29 = vunpack.i.h.bf16 %v4470_v9  ;;  %v4471_v48 = vunpack.i.l.bf16 %v4470_v9  ;;  %v4477_v54 = vunpack.i.h.bf16 %v4475_v35  ;;  %v4476_v42 = vunpack.i.l.bf16 %v4475_v35 }
 0x2e0   : > { %2618 = vmatprep.mubr.bf16.mxu1 %v2300_v56  ;;  %v4710_v56 = vld [vmem:[#allocation9 + $0x8] sm:$0xff]  }
 0x2e1   : > { %2619 = vmatmul.mubr.bf16.gmra.mrb[28].mxu1 %v2299_v59  ;;  %v2197_v32 = vsel %vm992_vm3, %v1171_v7, %v4471_v48  ;;  %v2198_v30 = vsel %vm992_vm3, %v1172_v1, %v4472_v29  ;;  %v2165_v27 = vsel %vm2146_vm4, %v2132_v44, %v4476_v42  ;;  %v2166_v23 = vsel %vm2146_vm4, %v2133_v63, %v4477_v54  ;;  %v1045_v48 = vld [vmem:[#allocation2 + $0xf0] sm:$0xff] }
 0x2e2   : > { %v4480_v2 = vpop.permute.xlu1 %4479  ;;  %v4490_v21 = vpop.permute.xlu0 %4489  ;;  %v2302_v35 = vpack.c.bf16 %v2166_v23, %v2165_v27  ;;  %4006 = vmatprep.subr.bf16.mxu1 %v4710_v56  ;;  %v1173_v44 = vld [vmem:[#allocation2 + $0x109] sm:$0xff]  ;;  %v1174_v63 = vld [vmem:[#allocation2 + $0x111] sm:$0xff] }
 0x2e3   : > { %v4492_v18 = vunpack.i.h.bf16 %v4490_v21  ;;  %v4491_v16 = vunpack.i.l.bf16 %v4490_v21  ;;  %v4482_v59 = vunpack.i.h.bf16 %v4480_v2  ;;  %v4481_v38 = vunpack.i.l.bf16 %v4480_v2  ;;  %4007 = vmatpush3.bf16.msra.mxu1 %v4710_v56 }
 0x2e5   : > { %v2230_v22 = vsel %vm639_vm2, %v2198_v30, %v4492_v18  ;;  %v2229_v51 = vsel %vm639_vm2, %v2197_v32, %v4491_v16  ;;  %v2102_v16 = vsel %vm992_vm3, %v1045_v48, %v4481_v38  ;;  %v2103_v46 = vsel %vm992_vm3, %v1046_v12, %v4482_v59 }
 0x2e6   : > { %v4485_v6 = vpop.permute.xlu1 %4484  ;;  %v4495_v33 = vpop.permute.xlu0 %4494 }
 0x2e7   : > { %v4497_v19 = vunpack.i.h.bf16 %v4495_v33  ;;  %v4496_v37 = vunpack.i.l.bf16 %v4495_v33  ;;  %v4487_v60 = vunpack.i.h.bf16 %v4485_v6  ;;  %v4486_v11 = vunpack.i.l.bf16 %v4485_v6 }
 0x2e9   : > { %v2261_v62 = vsel %vm2146_vm4, %v2229_v51, %v4496_v37  ;;  %v2262_v39 = vsel %vm2146_vm4, %v2230_v22, %v4497_v19  ;;  %v2134_v2 = vsel %vm639_vm2, %v2102_v16, %v4486_v11  ;;  %v2135_v47 = vsel %vm639_vm2, %v2103_v46, %v4487_v60 }
 0x2ea   : > { %v4500_v0 = vpop.permute.xlu0 %4499  ;;  %v4505_v8 = vpop.permute.xlu1 %4504  ;;  %v2303_v9 = vpack.c.bf16 %v2262_v39, %v2261_v62 }
 0x2eb   : > { %v4502_v50 = vunpack.i.h.bf16 %v4500_v0  ;;  %v4501_v29 = vunpack.i.l.bf16 %v4500_v0  ;;  %v4507_v53 = vunpack.i.h.bf16 %v4505_v8  ;;  %v4506_v54 = vunpack.i.l.bf16 %v4505_v8 }
 0x2ec   : > { %2626 = vmatprep.mubr.bf16.mxu1 %v2303_v9 }
 0x2ed   : > { %2627 = vmatmul.mubr.bf16.gmra.mrb[32].mxu1 %v2302_v35  ;;  %v2199_v6 = vsel %vm992_vm3, %v1173_v44, %v4501_v29  ;;  %v2200_v33 = vsel %vm992_vm3, %v1174_v63, %v4502_v50  ;;  %v2167_v22 = vsel %vm2146_vm4, %v2134_v2, %v4506_v54  ;;  %v2168_v51 = vsel %vm2146_vm4, %v2135_v47, %v4507_v53  ;;  %v1047_v50 = vld [vmem:[#allocation2 + $0x108] sm:$0xff]  ;;  %v1048_v29 = vld [vmem:[#allocation2 + $0x110] sm:$0xff] }
 0x2ee   : > { %v4510_v20 = vpop.permute.xlu1 %4509  ;;  %v4520_v21 = vpop.permute.xlu0 %4519  ;;  %v2305_v8 = vpack.c.bf16 %v2168_v51, %v2167_v22  ;;  %v1175_v2 = vld [vmem:[#allocation2 + $0x121] sm:$0xff]  ;;  %v1176_v47 = vld [vmem:[#allocation2 + $0x129] sm:$0xff] }
 0x2ef   : > { %v4522_v42 = vunpack.i.h.bf16 %v4520_v21  ;;  %v4521_v18 = vunpack.i.l.bf16 %v4520_v21  ;;  %v4512_v9 = vunpack.i.h.bf16 %v4510_v20  ;;  %v4511_v35 = vunpack.i.l.bf16 %v4510_v20 }
 0x2f1   : > { %v2232_v19 = vsel %vm639_vm2, %v2200_v33, %v4522_v42  ;;  %v2231_v37 = vsel %vm639_vm2, %v2199_v6, %v4521_v18  ;;  %v2104_v42 = vsel %vm992_vm3, %v1047_v50, %v4511_v35  ;;  %v2105_v18 = vsel %vm992_vm3, %v1048_v29, %v4512_v9 }
 0x2f2   : > { %v4515_v7 = vpop.permute.xlu1 %4514  ;;  %v4525_v1 = vpop.permute.xlu0 %4524 }
 0x2f3   : > { %v4527_v32 = vunpack.i.h.bf16 %v4525_v1  ;;  %v4526_v30 = vunpack.i.l.bf16 %v4525_v1  ;;  %v4517_v59 = vunpack.i.h.bf16 %v4515_v7  ;;  %v4516_v38 = vunpack.i.l.bf16 %v4515_v7 }
 0x2f5   : > { %v2263_v27 = vsel %vm2146_vm4, %v2231_v37, %v4526_v30  ;;  %v2264_v23 = vsel %vm2146_vm4, %v2232_v19, %v4527_v32  ;;  %v2136_v46 = vsel %vm639_vm2, %v2104_v42, %v4516_v38  ;;  %v2137_v20 = vsel %vm639_vm2, %v2105_v18, %v4517_v59 }
 0x2f6   : > { %v4530_v62 = vpop.permute.xlu0 %4529  ;;  %v4535_v39 = vpop.permute.xlu1 %4534  ;;  %v2306_v0 = vpack.c.bf16 %v2264_v23, %v2263_v27 }
 0x2f7   : > { %v4532_v11 = vunpack.i.h.bf16 %v4530_v62  ;;  %v4531_v21 = vunpack.i.l.bf16 %v4530_v62  ;;  %v4537_v48 = vunpack.i.h.bf16 %v4535_v39  ;;  %v4536_v12 = vunpack.i.l.bf16 %v4535_v39 }
 0x2f8   : > { %2634 = vmatprep.mubr.bf16.mxu1 %v2306_v0 }
 0x2f9   : > { %2635 = vmatmul.mubr.bf16.gmra.mrb[36].mxu1 %v2305_v8  ;;  %v2201_v63 = vsel %vm992_vm3, %v1175_v2, %v4531_v21  ;;  %v2202_v7 = vsel %vm992_vm3, %v1176_v47, %v4532_v11  ;;  %v2169_v30 = vsel %vm2146_vm4, %v2136_v46, %v4536_v12  ;;  %v2170_v19 = vsel %vm2146_vm4, %v2137_v20, %v4537_v48  ;;  %v1049_v11 = vld [vmem:[#allocation2 + $0x120] sm:$0xff]  ;;  %v1050_v21 = vld [vmem:[#allocation2 + $0x128] sm:$0xff] }
 0x2fa   : > { %v4540_v56 = vpop.permute.xlu1 %4539  ;;  %v2308_v62 = vpack.c.bf16 %v2170_v19, %v2169_v30  ;;  %v1177_v46 = vld [vmem:[#allocation2 + $0x139] sm:$0xff] }
 0x2fb   : > { %v4550_v60 = vpop.permute.xlu0 %4549  ;;  %v4542_v39 = vunpack.i.h.bf16 %v4540_v56  ;;  %v4541_v0 = vunpack.i.l.bf16 %v4540_v56 }
 0x2fc   : > { %v4552_v53 = vunpack.i.h.bf16 %v4550_v60  ;;  %v4551_v54 = vunpack.i.l.bf16 %v4550_v60 }
 0x2fe   : > { %v4545_v16 = vpop.permute.xlu1 %4544  ;;  %v2234_v33 = vsel %vm639_vm2, %v2202_v7, %v4552_v53  ;;  %v2233_v32 = vsel %vm639_vm2, %v2201_v63, %v4551_v54  ;;  %v2106_v53 = vsel %vm992_vm3, %v1049_v11, %v4541_v0  ;;  %v2107_v54 = vsel %vm992_vm3, %v1050_v21, %v4542_v39 }
 0x2ff   : > { %v4555_v44 = vpop.permute.xlu0 %4554  ;;  %v4547_v9 = vunpack.i.h.bf16 %v4545_v16  ;;  %v4546_v35 = vunpack.i.l.bf16 %v4545_v16  ;;  %v1178_v16 = vld [vmem:[#allocation2 + $0x141] sm:$0xff] }
 0x300   : > { %v4557_v1 = vunpack.i.h.bf16 %v4555_v44  ;;  %v4556_v6 = vunpack.i.l.bf16 %v4555_v44 }
 0x301   : > { %v2138_v56 = vsel %vm639_vm2, %v2106_v53, %v4546_v35  ;;  %v2139_v18 = vsel %vm639_vm2, %v2107_v54, %v4547_v9 }
 0x302   : > { %v4565_v37 = vpop.permute.xlu1 %4564  ;;  %v2265_v22 = vsel %vm2146_vm4, %v2233_v32, %v4556_v6  ;;  %v2266_v51 = vsel %vm2146_vm4, %v2234_v33, %v4557_v1 }
 0x303   : > { %v4560_v27 = vpop.permute.xlu0 %4559  ;;  %v2309_v23 = vpack.c.bf16 %v2266_v51, %v2265_v22  ;;  %v4567_v50 = vunpack.i.h.bf16 %v4565_v37  ;;  %v4566_v29 = vunpack.i.l.bf16 %v4565_v37 }
 0x304   : > { %v4562_v38 = vunpack.i.h.bf16 %v4560_v27  ;;  %v4561_v60 = vunpack.i.l.bf16 %v4560_v27 }
 0x305   : > { %2642 = vmatprep.mubr.bf16.mxu1 %v2309_v23  ;;  %v2171_v6 = vsel %vm2146_vm4, %v2138_v56, %v4566_v29  ;;  %v2172_v33 = vsel %vm2146_vm4, %v2139_v18, %v4567_v50 }
 0x306   : > { %2643 = vmatmul.mubr.bf16.gmra.mrb[40].mxu1 %v2308_v62  ;;  %v4570_v8 = vpop.permute.xlu1 %4569  ;;  %v2203_v2 = vsel %vm992_vm3, %v1177_v46, %v4561_v60  ;;  %v2204_v47 = vsel %vm992_vm3, %v1178_v16, %v4562_v38  ;;  %v2311_v51 = vpack.c.bf16 %v2172_v33, %v2171_v6  ;;  %v1051_v38 = vld [vmem:[#allocation2 + $0x138] sm:$0xff]  ;;  %v1052_v60 = vld [vmem:[#allocation2 + $0x140] sm:$0xff] }
 0x307   : > { %v4580_v59 = vpop.permute.xlu0 %4579  ;;  %v4572_v27 = vunpack.i.h.bf16 %v4570_v8  ;;  %v4571_v23 = vunpack.i.l.bf16 %v4570_v8 }
 0x308   : > { %v4582_v48 = vunpack.i.h.bf16 %v4580_v59  ;;  %v4581_v12 = vunpack.i.l.bf16 %v4580_v59 }
 0x30a   : > { %v4575_v42 = vpop.permute.xlu1 %4574  ;;  %v2236_v7 = vsel %vm639_vm2, %v2204_v47, %v4582_v48  ;;  %v2235_v1 = vsel %vm639_vm2, %v2203_v2, %v4581_v12  ;;  %v2108_v48 = vsel %vm992_vm3, %v1051_v38, %v4571_v23  ;;  %v2109_v12 = vsel %vm992_vm3, %v1052_v60, %v4572_v27  ;;  %v1053_v23 = vld [vmem:[#allocation2 + $0x150] sm:$0xff] }
 0x30b   : > { %v4585_v20 = vpop.permute.xlu0 %4584  ;;  %v4577_v39 = vunpack.i.h.bf16 %v4575_v42  ;;  %v4576_v0 = vunpack.i.l.bf16 %v4575_v42 }
 0x30c   : > { %v4587_v44 = vunpack.i.h.bf16 %v4585_v20  ;;  %v4586_v63 = vunpack.i.l.bf16 %v4585_v20 }
 0x30d   : > { %v2140_v8 = vsel %vm639_vm2, %v2108_v48, %v4576_v0  ;;  %v2141_v54 = vsel %vm639_vm2, %v2109_v12, %v4577_v39  ;;  %v1054_v39 = vld [vmem:[#allocation2 + $0x158] sm:$0xff] }
 0x30e   : > { %v4595_v32 = vpop.permute.xlu1 %4594  ;;  %v2267_v30 = vsel %vm2146_vm4, %v2235_v1, %v4586_v63  ;;  %v2268_v19 = vsel %vm2146_vm4, %v2236_v7, %v4587_v44 }
 0x30f   : > { %v4590_v37 = vpop.permute.xlu0 %4589  ;;  %v2312_v22 = vpack.c.bf16 %v2268_v19, %v2267_v30  ;;  %v4597_v11 = vunpack.i.h.bf16 %v4595_v32  ;;  %v4596_v21 = vunpack.i.l.bf16 %v4595_v32 }
 0x310   : > { %v4592_v35 = vunpack.i.h.bf16 %v4590_v37  ;;  %v4591_v59 = vunpack.i.l.bf16 %v4590_v37 }
 0x311   : > { %2650 = vmatprep.mubr.bf16.mxu1 %v2312_v22  ;;  %v2173_v47 = vsel %vm2146_vm4, %v2140_v8, %v4596_v21  ;;  %v2174_v44 = vsel %vm2146_vm4, %v2141_v54, %v4597_v11 }
 0x312   : > { %2651 = vmatmul.mubr.bf16.gmra.mrb[44].mxu1 %v2311_v51  ;;  %v4600_v62 = vpop.permute.xlu1 %4599  ;;  %v2205_v42 = vsel %vm992_vm3, %v5827_v28, %v4591_v59  ;;  %v2206_v18 = vsel %vm992_vm3, %v5829_v58, %v4592_v35  ;;  %v2314_v33 = vpack.c.bf16 %v2174_v44, %v2173_v47 }
 0x313   : > { %v4610_v9 = vpop.permute.xlu0 %4609  ;;  %v4602_v32 = vunpack.i.h.bf16 %v4600_v62  ;;  %v4601_v58 = vunpack.i.l.bf16 %v4600_v62 }
 0x314   : > { %v4612_v50 = vunpack.i.h.bf16 %v4610_v9  ;;  %v4611_v29 = vunpack.i.l.bf16 %v4610_v9 }
 0x315   : > { %v2110_v35 = vsel %vm992_vm3, %v1053_v23, %v4601_v58  ;;  %v2111_v59 = vsel %vm992_vm3, %v1054_v39, %v4602_v32  ;;  %v4197_v58 = vunpack.i.h.bf16 %v5706_v14 }
 0x316   : > { %v4605_v53 = vpop.permute.xlu1 %4604  ;;  %v2238_v20 = vsel %vm639_vm2, %v2206_v18, %v4612_v50  ;;  %v2237_v2 = vsel %vm639_vm2, %v2205_v42, %v4611_v29 }
 0x317   : > { %v4615_v56 = vpop.permute.xlu0 %4614  ;;  %v4607_v30 = vunpack.i.h.bf16 %v4605_v53  ;;  %v4606_v19 = vunpack.i.l.bf16 %v4605_v53 }
 0x318   : > { %v4617_v46 = vunpack.i.h.bf16 %v4615_v56  ;;  %v4616_v16 = vunpack.i.l.bf16 %v4615_v56 }
 0x319   : > { %v2142_v62 = vsel %vm639_vm2, %v2110_v35, %v4606_v19  ;;  %v2143_v11 = vsel %vm639_vm2, %v2111_v59, %v4607_v30  ;;  %v4196_v30 = vunpack.i.l.bf16 %v5706_v14  ;;  %v4711_v19 = vld [vmem:[#allocation2 + $0x168] sm:$0xff] }
 0x31a   : > { %v4625_v63 = vpop.permute.xlu1 %4624  ;;  %v2269_v7 = vsel %vm2146_vm4, %v2237_v2, %v4616_v16  ;;  %v2270_v1 = vsel %vm2146_vm4, %v2238_v20, %v4617_v46 }
 0x31b   : > { %v4620_v6 = vpop.permute.xlu0 %4619  ;;  %v2315_v28 = vpack.c.bf16 %v2270_v1, %v2269_v7  ;;  %v4627_v22 = vunpack.i.h.bf16 %v4625_v63  ;;  %v4626_v51 = vunpack.i.l.bf16 %v4625_v63 }
 0x31c   : > { %v4622_v0 = vunpack.i.h.bf16 %v4620_v6  ;;  %v4621_v9 = vunpack.i.l.bf16 %v4620_v6 }
 0x31d   : > { %2658 = vmatprep.mubr.bf16.mxu1 %v2315_v28  ;;  %v2175_v29 = vsel %vm2146_vm4, %v2142_v62, %v4626_v51  ;;  %v2176_v48 = vsel %vm2146_vm4, %v2143_v11, %v4627_v22  ;;  %v4712_v22 = vld [vmem:[#allocation2 + $0x170] sm:$0xff] }
 0x31e   : > { %2659 = vmatmul.mubr.bf16.gmra.mrb[48].mxu1 %v2314_v33  ;;  %v4630_v37 = vpop.permute.xlu1 %4629  ;;  %v2207_v12 = vsel %vm992_vm3, %v5865_v26, %v4621_v9  ;;  %v2208_v53 = vsel %vm992_vm3, %v5867_v13, %v4622_v0  ;;  %v2317_v63 = vpack.c.bf16 %v2176_v48, %v2175_v29 }
 0x31f   : > { %v4640_v27 = vpop.permute.xlu0 %4639  ;;  %v4632_v20 = vunpack.i.h.bf16 %v4630_v37  ;;  %v4631_v2 = vunpack.i.l.bf16 %v4630_v37 }
 0x320   : > { %v4642_v38 = vunpack.i.h.bf16 %v4640_v27  ;;  %v4641_v60 = vunpack.i.l.bf16 %v4640_v27 }
 0x321   : > { %v2112_v37 = vsel %vm992_vm3, %v4711_v19, %v4631_v2  ;;  %v2113_v51 = vsel %vm992_vm3, %v4712_v22, %v4632_v20 }
 0x322   : > { %v4635_v21 = vpop.permute.xlu1 %4634  ;;  %v2240_v56 = vsel %vm639_vm2, %v2208_v53, %v4642_v38  ;;  %v2239_v42 = vsel %vm639_vm2, %v2207_v12, %v4641_v60 }
 0x323   : > { %v4645_v50 = vpop.permute.xlu0 %4644  ;;  %v4637_v26 = vunpack.i.h.bf16 %v4635_v21  ;;  %v4636_v7 = vunpack.i.l.bf16 %v4635_v21 }
 0x324   : > { %v4647_v8 = vunpack.i.h.bf16 %v4645_v50  ;;  %v4646_v54 = vunpack.i.l.bf16 %v4645_v50 }
 0x325   : > { %v2144_v23 = vsel %vm639_vm2, %v2112_v37, %v4636_v7  ;;  %v2145_v39 = vsel %vm639_vm2, %v2113_v51, %v4637_v26 }
 0x326   : > { %v4660_v18 = vpop.permute.xlu1 %4659  ;;  %v2271_v46 = vsel %vm2146_vm4, %v2239_v42, %v4646_v54  ;;  %v2272_v16 = vsel %vm2146_vm4, %v2240_v56, %v4647_v8  ;;  %v6092_v8 = vld [vmem:[#allocation12] ss:$0 sm:$0xff] }
 0x327   : > { %v4650_v47 = vpop.permute.xlu0 %4649  ;;  %v2318_v44 = vpack.c.bf16 %v2272_v16, %v2271_v46  ;;  %v4662_v6 = vunpack.i.h.bf16 %v4660_v18  ;;  %v4661_v28 = vunpack.i.l.bf16 %v4660_v18 }
 0x328   : > { %v4652_v1 = vunpack.i.h.bf16 %v4650_v47  ;;  %v4651_v13 = vunpack.i.l.bf16 %v4650_v47 }
 0x329   : > { %2666 = vmatprep.mubr.bf16.mxu1 %v2318_v44  ;;  %v2177_v35 = vsel %vm2146_vm4, %v2144_v23, %v4661_v28  ;;  %v2178_v14 = vsel %vm2146_vm4, %v2145_v39, %v4662_v6 }
 0x32a   : > { %v2209_v33 = vsel %vm992_vm3, %v5905_v34, %v4651_v13  ;;  %v2210_v32 = vsel %vm992_vm3, %v5907_v3, %v4652_v1  ;;  %2667 = vmatmul.mubr.bf16.gmra.mrb[52].mxu1 %v2317_v63  ;;  %v2320_v62 = vpack.c.bf16 %v2178_v14, %v2177_v35 }
 0x32b   : > { %v4655_v27 = vpop.permute.xlu0 %4654  ;;  %v2241_v3 = vsel %vm639_vm2, %v2209_v33, %v4196_v30  ;;  %v2242_v9 = vsel %vm639_vm2, %v2210_v32, %v4197_v58 }
 0x32c   : > { %v4657_v34 = vunpack.i.h.bf16 %v4655_v27  ;;  %v4656_v0 = vunpack.i.l.bf16 %v4655_v27 }
 0x32e   : > { %v2273_v59 = vsel %vm2146_vm4, %v2241_v3, %v4656_v0  ;;  %v2274_v38 = vsel %vm2146_vm4, %v2242_v9, %v4657_v34 }
 0x32f   : > { %v2321_v60 = vpack.c.bf16 %v2274_v38, %v2273_v59 }
 0x331   : > { %2674 = vmatprep.mubr.bf16.mxu1 %v2321_v60 }
 0x332   : > { %2675 = vmatmul.mubr.bf16.gmra.mrb[56].mxu1 %v2320_v62 }
 0x35c   : > { %v3836_v11 = vpop.f32.mrb[64].mxu0 }
 0x35d   : > { %v3837_v21 = vpop.f32.mrb[65].mxu0 }
 0x35e   : > { %v3838_v50 = vadd.f32 %v3837_v21, %v3836_v11  ;;  %v3839_v29 = vpop.f32.mrb[66].mxu0 }
 0x35f   : > { %v3840_v48 = vpop.f32.mrb[67].mxu0 }
 0x360   : > { %v3841_v12 = vadd.f32 %v3840_v48, %v3839_v29  ;;  %v2557_v16 = vadd.f32 %v3838_v50, %v6092_v8 }
 0x361   : > { %v3842_v53 = vpop.f32.mrb[0].mxu1 }
 0x362   : > { %v3843_v54 = vpop.f32.mrb[1].mxu1  ;;  %v2560_v26 = vadd.f32 %v3841_v12, %v6092_v8 }
 0x363   : > { %v3844_v56 = vadd.f32 %v3843_v54, %v3842_v53  ;;  %v3845_v42 = vpop.f32.mrb[2].mxu1 }
 0x364   : > { %v3846_v18 = vpop.f32.mrb[3].mxu1  ;;  %v3974_v46 = vpop.f32.mrb[68].mxu0 }
 0x365   : > { %v3847_v20 = vadd.f32 %v3846_v18, %v3845_v42  ;;  %v2565_v2 = vadd.f32 %v3844_v56, %v6092_v8  ;;  %v2717_v47 = vpop.f32.mrb[69].mxu0 }
 0x366   : > { %v2718_v44 = vadd.f32 %v2717_v47, %v2557_v16  ;;  %v3975_v63 = vpop.f32.mrb[70].mxu0 }
 0x367   : > { %v2726_v7 = vadd.f32 %v3974_v46, %v2565_v2  ;;  %v2568_v1 = vadd.f32 %v3847_v20, %v6092_v8  ;;  %v2720_v13 = vpop.f32.mrb[71].mxu0 }
 0x368   : > { %v2721_v6 = vadd.f32 %v2720_v13, %v2560_v26  ;;  %v2844_v33 = vmax.f32 %v2718_v44, 0.0 }
 0x369   : > { %v2729_v28 = vadd.f32 %v3975_v63, %v2568_v1  ;;  %v2846_v58 = vmax.f32 %v2726_v7, 0.0 }
 0x36a   : > { %v2845_v32 = vmax.f32 %v2721_v6, 0.0 }
 0x36b   : > { %v2847_v30 = vmax.f32 %v2729_v28, 0.0 }
 0x36c   : > { %v3848_v19 = vpop.f32.mrb[4].mxu1  ;;  %v2915_v37 = vpack.c.bf16 %v2845_v32, %v2844_v33 }
 0x36d   : > { %v3978_v22 = vpop.f32.mrb[72].mxu0  ;;  %v3849_v51 = vpop.f32.mrb[5].mxu1  ;;  %v2916_v27 = vpack.c.bf16 %v2847_v30, %v2846_v58 }
 0x36e   : > { %v3850_v23 = vadd.f32 %v3849_v51, %v3848_v19  ;;  %v2733_v39 = vpop.f32.mrb[73].mxu0  ;;  %v3851_v34 = vpop.f32.mrb[6].mxu1  ;;  %4008 = vmatprep.mubr.msk.bf16.mxu1 %vm992_vm3, %v2915_v37 }
 0x36f   : > { %v3979_v0 = vpop.f32.mrb[74].mxu0  ;;  %v3852_v3 = vpop.f32.mrb[7].mxu1  ;;  %4009 = vmatmul.mubr.msk.bf16.vlgmr.msra.gmra.mrb[60].mxu1 %vm992_vm3, %v2916_v27 }
 0x370   : > { %v2573_v9 = vadd.f32 %v3850_v23, %v6092_v8  ;;  %v3853_v35 = vadd.f32 %v3852_v3, %v3851_v34  ;;  %v2736_v14 = vpop.f32.mrb[75].mxu0 }
 0x372   : > { %v2734_v59 = vadd.f32 %v2733_v39, %v2573_v9  ;;  %v2576_v38 = vadd.f32 %v3853_v35, %v6092_v8 }
 0x374   : > { %v2737_v60 = vadd.f32 %v2736_v14, %v2576_v38  ;;  %v2848_v11 = vmax.f32 %v2734_v59, 0.0 }
 0x375   : > { %v3982_v62 = vpop.f32.mrb[76].mxu0 }
 0x376   : > { %v2849_v21 = vmax.f32 %v2737_v60, 0.0  ;;  %v2749_v50 = vpop.f32.mrb[77].mxu0 }
 0x377   : > { %v3983_v29 = vpop.f32.mrb[78].mxu0 }
 0x378   : > { %v2917_v48 = vpack.c.bf16 %v2849_v21, %v2848_v11  ;;  %v2752_v12 = vpop.f32.mrb[79].mxu0  ;;  %v3854_v53 = vpop.f32.mrb[8].mxu1 }
 0x379   : > { %v3855_v54 = vpop.f32.mrb[9].mxu1 }
 0x37a   : > { %v3856_v56 = vadd.f32 %v3855_v54, %v3854_v53  ;;  %v3857_v42 = vpop.f32.mrb[10].mxu1  ;;  %4012 = vmatprep.mubr.msk.bf16.mxu1 %vm992_vm3, %v2917_v48 }
 0x37b   : > { %v3858_v18 = vpop.f32.mrb[11].mxu1 }
 0x37c   : > { %v2581_v46 = vadd.f32 %v3856_v56, %v6092_v8  ;;  %v3859_v16 = vadd.f32 %v3858_v18, %v3857_v42 }
 0x37d   : > { %v6104_v20 = vpop.f32.mrb[80].mxu0 }
 0x37e   : > { %v2742_v2 = vadd.f32 %v3978_v22, %v2581_v46  ;;  %v2584_v47 = vadd.f32 %v3859_v16, %v6092_v8  ;;  %v2765_v44 = vpop.f32.mrb[81].mxu0 }
 0x37f   : > { %v6107_v63 = vpop.f32.mrb[82].mxu0 }
 0x380   : > { %v2745_v26 = vadd.f32 %v3979_v0, %v2584_v47  ;;  %v2768_v7 = vpop.f32.mrb[83].mxu0  ;;  %v2850_v1 = vmax.f32 %v2742_v2, 0.0 }
 0x382   : > { %v2851_v13 = vmax.f32 %v2745_v26, 0.0 }
 0x384   : > { %v2918_v6 = vpack.c.bf16 %v2851_v13, %v2850_v1  ;;  %v3860_v28 = vpop.f32.mrb[12].mxu1 }
 0x385   : > { %v6109_v33 = vpop.f32.mrb[84].mxu0  ;;  %v3861_v32 = vpop.f32.mrb[13].mxu1 }
 0x386   : > { %v3862_v58 = vadd.f32 %v3861_v32, %v3860_v28  ;;  %v6111_v30 = vpop.f32.mrb[85].mxu0  ;;  %v3863_v19 = vpop.f32.mrb[14].mxu1  ;;  %4013 = vmatmul.mubr.msk.bf16.gmra.mrb[64].mxu1 %vm992_vm3, %v2918_v6 }
 0x387   : > { %v6114_v37 = vpop.f32.mrb[86].mxu0  ;;  %v3864_v22 = vpop.f32.mrb[15].mxu1 }
 0x388   : > { %v2589_v51 = vadd.f32 %v3862_v58, %v6092_v8  ;;  %v3865_v27 = vadd.f32 %v3864_v22, %v3863_v19  ;;  %v6117_v23 = vpop.f32.mrb[87].mxu0 }
 0x38a   : > { %v2750_v39 = vadd.f32 %v2749_v50, %v2589_v51  ;;  %v2592_v34 = vadd.f32 %v3865_v27, %v6092_v8 }
 0x38c   : > { %v2753_v0 = vadd.f32 %v2752_v12, %v2592_v34  ;;  %v2852_v9 = vmax.f32 %v2750_v39, 0.0 }
 0x38d   : > { %v6120_v3 = vpop.f32.mrb[88].mxu0 }
 0x38e   : > { %v2853_v35 = vmax.f32 %v2753_v0, 0.0  ;;  %v6122_v14 = vpop.f32.mrb[89].mxu0 }
 0x38f   : > { %v6124_v59 = vpop.f32.mrb[90].mxu0 }
 0x390   : > { %v2919_v38 = vpack.c.bf16 %v2853_v35, %v2852_v9  ;;  %v6126_v60 = vpop.f32.mrb[91].mxu0  ;;  %v3866_v11 = vpop.f32.mrb[16].mxu1 }
 0x391   : > { %v3867_v21 = vpop.f32.mrb[17].mxu1 }
 0x392   : > { %v3868_v48 = vadd.f32 %v3867_v21, %v3866_v11  ;;  %v3869_v53 = vpop.f32.mrb[18].mxu1  ;;  %4016 = vmatprep.mubr.msk.bf16.mxu1 %vm992_vm3, %v2919_v38 }
 0x393   : > { %v3870_v50 = vpop.f32.mrb[19].mxu1 }
 0x394   : > { %v2597_v12 = vadd.f32 %v3868_v48, %v6092_v8  ;;  %v3871_v54 = vadd.f32 %v3870_v50, %v3869_v53 }
 0x395   : > { %v6130_v56 = vpop.f32.mrb[92].mxu0 }
 0x396   : > { %v2758_v42 = vadd.f32 %v3982_v62, %v2597_v12  ;;  %v2600_v18 = vadd.f32 %v3871_v54, %v6092_v8  ;;  %v6133_v46 = vpop.f32.mrb[93].mxu0 }
 0x397   : > { %v6135_v16 = vpop.f32.mrb[94].mxu0 }
 0x398   : > { %v2761_v2 = vadd.f32 %v3983_v29, %v2600_v18  ;;  %v6137_v47 = vpop.f32.mrb[95].mxu0  ;;  %v2854_v26 = vmax.f32 %v2758_v42, 0.0 }
 0x39a   : > { %v2855_v1 = vmax.f32 %v2761_v2, 0.0 }
 0x39c   : > { %v2920_v13 = vpack.c.bf16 %v2855_v1, %v2854_v26  ;;  %v3872_v6 = vpop.f32.mrb[20].mxu1 }
 0x39d   : > { %v3873_v28 = vpop.f32.mrb[21].mxu1  ;;  %v6139_v32 = vpop.f32.mrb[96].mxu0 }
 0x39e   : > { %v3874_v58 = vadd.f32 %v3873_v28, %v3872_v6  ;;  %v3875_v19 = vpop.f32.mrb[22].mxu1  ;;  %4017 = vmatmul.mubr.msk.bf16.gmra.mrb[68].mxu1 %vm992_vm3, %v2920_v13  ;;  %v6142_v62 = vpop.f32.mrb[97].mxu0 }
 0x39f   : > { %v3876_v22 = vpop.f32.mrb[23].mxu1  ;;  %v6144_v51 = vpop.f32.mrb[98].mxu0 }
 0x3a0   : > { %v2605_v29 = vadd.f32 %v3874_v58, %v6092_v8  ;;  %v3877_v27 = vadd.f32 %v3876_v22, %v3875_v19  ;;  %v6147_v39 = vpop.f32.mrb[99].mxu0 }
 0x3a2   : > { %v2766_v34 = vadd.f32 %v2765_v44, %v2605_v29  ;;  %v2608_v0 = vadd.f32 %v3877_v27, %v6092_v8 }
 0x3a4   : > { %v2769_v9 = vadd.f32 %v2768_v7, %v2608_v0  ;;  %v2856_v35 = vmax.f32 %v2766_v34, 0.0 }
 0x3a6   : > { %v2857_v38 = vmax.f32 %v2769_v9, 0.0 }
 0x3a8   : > { %v2921_v11 = vpack.c.bf16 %v2857_v38, %v2856_v35  ;;  %v3878_v21 = vpop.f32.mrb[24].mxu1 }
 0x3a9   : > { %v3879_v48 = vpop.f32.mrb[25].mxu1 }
 0x3aa   : > { %v3880_v53 = vadd.f32 %v3879_v48, %v3878_v21  ;;  %v3881_v50 = vpop.f32.mrb[26].mxu1  ;;  %4020 = vmatprep.mubr.msk.bf16.mxu1 %vm992_vm3, %v2921_v11 }
 0x3ab   : > { %v3882_v12 = vpop.f32.mrb[27].mxu1 }
 0x3ac   : > { %v2613_v54 = vadd.f32 %v3880_v53, %v6092_v8  ;;  %v3883_v42 = vadd.f32 %v3882_v12, %v3881_v50 }
 0x3ae   : > { %v2774_v18 = vadd.f32 %v6104_v20, %v2613_v54  ;;  %v2616_v44 = vadd.f32 %v3883_v42, %v6092_v8 }
 0x3b0   : > { %v2777_v2 = vadd.f32 %v6107_v63, %v2616_v44  ;;  %v2858_v7 = vmax.f32 %v2774_v18, 0.0 }
 0x3b2   : > { %v2859_v26 = vmax.f32 %v2777_v2, 0.0 }
 0x3b4   : > { %v2922_v1 = vpack.c.bf16 %v2859_v26, %v2858_v7  ;;  %v3884_v13 = vpop.f32.mrb[28].mxu1 }
 0x3b5   : > { %v3885_v6 = vpop.f32.mrb[29].mxu1 }
 0x3b6   : > { %v3886_v28 = vadd.f32 %v3885_v6, %v3884_v13  ;;  %v3887_v58 = vpop.f32.mrb[30].mxu1  ;;  %4021 = vmatmul.mubr.msk.bf16.gmra.mrb[72].mxu1 %vm992_vm3, %v2922_v1 }
 0x3b7   : > { %v3888_v19 = vpop.f32.mrb[31].mxu1 }
 0x3b8   : > { %v2621_v22 = vadd.f32 %v3886_v28, %v6092_v8  ;;  %v3889_v29 = vadd.f32 %v3888_v19, %v3887_v58 }
 0x3ba   : > { %v2782_v27 = vadd.f32 %v6111_v30, %v2621_v22  ;;  %v2624_v20 = vadd.f32 %v3889_v29, %v6092_v8 }
 0x3bc   : > { %v2785_v34 = vadd.f32 %v6117_v23, %v2624_v20  ;;  %v2860_v63 = vmax.f32 %v2782_v27, 0.0 }
 0x3be   : > { %v2861_v0 = vmax.f32 %v2785_v34, 0.0 }
 0x3c0   : > { %v2923_v9 = vpack.c.bf16 %v2861_v0, %v2860_v63  ;;  %v3890_v35 = vpop.f32.mrb[32].mxu1 }
 0x3c1   : > { %v3891_v38 = vpop.f32.mrb[33].mxu1 }
 0x3c2   : > { %v3892_v11 = vadd.f32 %v3891_v38, %v3890_v35  ;;  %v3893_v21 = vpop.f32.mrb[34].mxu1  ;;  %4024 = vmatprep.mubr.msk.bf16.mxu1 %vm992_vm3, %v2923_v9 }
 0x3c3   : > { %v3894_v48 = vpop.f32.mrb[35].mxu1 }
 0x3c4   : > { %v2629_v53 = vadd.f32 %v3892_v11, %v6092_v8  ;;  %v3895_v50 = vadd.f32 %v3894_v48, %v3893_v21 }
 0x3c6   : > { %v2790_v12 = vadd.f32 %v6109_v33, %v2629_v53  ;;  %v2632_v30 = vadd.f32 %v3895_v50, %v6092_v8 }
 0x3c8   : > { %v2793_v54 = vadd.f32 %v6114_v37, %v2632_v30  ;;  %v2862_v23 = vmax.f32 %v2790_v12, 0.0 }
 0x3ca   : > { %v2863_v42 = vmax.f32 %v2793_v54, 0.0 }
 0x3cc   : > { %v2924_v18 = vpack.c.bf16 %v2863_v42, %v2862_v23  ;;  %v3896_v44 = vpop.f32.mrb[36].mxu1 }
 0x3cd   : > { %v3897_v2 = vpop.f32.mrb[37].mxu1 }
 0x3ce   : > { %v3898_v7 = vadd.f32 %v3897_v2, %v3896_v44  ;;  %v3899_v26 = vpop.f32.mrb[38].mxu1  ;;  %4025 = vmatmul.mubr.msk.bf16.gmra.mrb[76].mxu1 %vm992_vm3, %v2924_v18 }
 0x3cf   : > { %v3900_v1 = vpop.f32.mrb[39].mxu1 }
 0x3d0   : > { %v2637_v13 = vadd.f32 %v3898_v7, %v6092_v8  ;;  %v3901_v6 = vadd.f32 %v3900_v1, %v3899_v26 }
 0x3d2   : > { %v2798_v28 = vadd.f32 %v6122_v14, %v2637_v13  ;;  %v2640_v33 = vadd.f32 %v3901_v6, %v6092_v8 }
 0x3d4   : > { %v2801_v58 = vadd.f32 %v6126_v60, %v2640_v33  ;;  %v2864_v37 = vmax.f32 %v2798_v28, 0.0 }
 0x3d6   : > { %v2865_v19 = vmax.f32 %v2801_v58, 0.0 }
 0x3d8   : > { %v2925_v22 = vpack.c.bf16 %v2865_v19, %v2864_v37 }
 0x3d9   : > { %v3902_v29 = vpop.f32.mrb[40].mxu1 }
 0x3da   : > { %v3903_v27 = vpop.f32.mrb[41].mxu1  ;;  %4028 = vmatprep.mubr.msk.bf16.mxu1 %vm992_vm3, %v2925_v22 }
 0x3db   : > { %v3904_v20 = vadd.f32 %v3903_v27, %v3902_v29  ;;  %v3905_v34 = vpop.f32.mrb[42].mxu1 }
 0x3dc   : > { %v3906_v63 = vpop.f32.mrb[43].mxu1 }
 0x3dd   : > { %v2645_v0 = vadd.f32 %v3904_v20, %v6092_v8  ;;  %v3907_v9 = vadd.f32 %v3906_v63, %v3905_v34 }
 0x3df   : > { %v2806_v35 = vadd.f32 %v6120_v3, %v2645_v0  ;;  %v2648_v14 = vadd.f32 %v3907_v9, %v6092_v8 }
 0x3e1   : > { %v2809_v38 = vadd.f32 %v6124_v59, %v2648_v14  ;;  %v2866_v60 = vmax.f32 %v2806_v35, 0.0 }
 0x3e3   : > { %v2867_v11 = vmax.f32 %v2809_v38, 0.0 }
 0x3e5   : > { %v2926_v21 = vpack.c.bf16 %v2867_v11, %v2866_v60  ;;  %v3908_v48 = vpop.f32.mrb[44].mxu1 }
 0x3e6   : > { %v3909_v53 = vpop.f32.mrb[45].mxu1 }
 0x3e7   : > { %v3910_v50 = vadd.f32 %v3909_v53, %v3908_v48  ;;  %v3911_v12 = vpop.f32.mrb[46].mxu1  ;;  %4029 = vmatmul.mubr.msk.bf16.gmra.mrb[80].mxu1 %vm992_vm3, %v2926_v21 }
 0x3e8   : > { %v3912_v30 = vpop.f32.mrb[47].mxu1 }
 0x3e9   : > { %v2653_v54 = vadd.f32 %v3910_v50, %v6092_v8  ;;  %v3913_v23 = vadd.f32 %v3912_v30, %v3911_v12 }
 0x3eb   : > { %v2814_v42 = vadd.f32 %v6133_v46, %v2653_v54  ;;  %v2656_v3 = vadd.f32 %v3913_v23, %v6092_v8 }
 0x3ed   : > { %v2817_v18 = vadd.f32 %v6137_v47, %v2656_v3  ;;  %v2868_v59 = vmax.f32 %v2814_v42, 0.0 }
 0x3ef   : > { %v2869_v44 = vmax.f32 %v2817_v18, 0.0  ;;  %v6196_v18 = vld [vmem:[#allocation15] ss:$0 sm:$0xff] }
 0x3f1   : > { %v2927_v2 = vpack.c.bf16 %v2869_v44, %v2868_v59  ;;  %v3914_v7 = vpop.f32.mrb[48].mxu1  ;;  %v890_v59 = vadd.f32 %v6196_v18, %v5505_v52  ;;  %v888_v44 = vadd.f32 %v6196_v18, %v5497_v40 }
 0x3f2   : > { %v3915_v26 = vpop.f32.mrb[49].mxu1 }
 0x3f3   : > { %v3916_v1 = vadd.f32 %v3915_v26, %v3914_v7  ;;  %v3917_v13 = vpop.f32.mrb[50].mxu1  ;;  %4032 = vmatprep.mubr.msk.bf16.mxu1 %vm992_vm3, %v2927_v2 }
 0x3f4   : > { %v3918_v6 = vpop.f32.mrb[51].mxu1 }
 0x3f5   : > { %v2661_v28 = vadd.f32 %v3916_v1, %v6092_v8  ;;  %v3919_v33 = vadd.f32 %v3918_v6, %v3917_v13 }
 0x3f7   : > { %v2822_v58 = vadd.f32 %v6130_v56, %v2661_v28  ;;  %v2664_v46 = vadd.f32 %v3919_v33, %v6092_v8 }
 0x3f9   : > { %v2825_v37 = vadd.f32 %v6135_v16, %v2664_v46  ;;  %v2870_v47 = vmax.f32 %v2822_v58, 0.0 }
 0x3fb   : > { %v2871_v19 = vmax.f32 %v2825_v37, 0.0 }
 0x3fd   : > { %v2928_v22 = vpack.c.bf16 %v2871_v19, %v2870_v47  ;;  %v3920_v29 = vpop.f32.mrb[52].mxu1 }
 0x3fe   : > { %v3921_v27 = vpop.f32.mrb[53].mxu1 }
 0x3ff   : > { %v3922_v20 = vadd.f32 %v3921_v27, %v3920_v29  ;;  %v3923_v34 = vpop.f32.mrb[54].mxu1  ;;  %4033 = vmatmul.mubr.msk.bf16.gmra.mrb[84].mxu1 %vm992_vm3, %v2928_v22  ;;  %v894_v29 = vadd.f32 %v6196_v18, %v5541_v24  ;;  %v892_v27 = vadd.f32 %v6196_v18, %v5517_v4 }
 0x400   : > { %v3924_v63 = vpop.f32.mrb[55].mxu1 }
 0x401   : > { %v3925_v0 = vadd.f32 %v3924_v63, %v3923_v34  ;;  %v2669_v9 = vadd.f32 %v3922_v20, %v6092_v8  ;;  %v895_v20 = vadd.f32 %v6196_v18, %v5548_v31  ;;  %v893_v34 = vadd.f32 %v6196_v18, %v5526_v10 }
 0x403   : > { %v2830_v35 = vadd.f32 %v6142_v62, %v2669_v9  ;;  %v2672_v56 = vadd.f32 %v3925_v0, %v6092_v8 }
 0x405   : > { %v2833_v14 = vadd.f32 %v6147_v39, %v2672_v56  ;;  %v3926_v16 = vpop.f32.mrb[56].mxu1  ;;  %v2872_v60 = vmax.f32 %v2830_v35, 0.0 }
 0x406   : > { %v3927_v38 = vpop.f32.mrb[57].mxu1 }
 0x407   : > { %v2873_v11 = vmax.f32 %v2833_v14, 0.0  ;;  %v3928_v21 = vadd.f32 %v3927_v38, %v3926_v16  ;;  %v3929_v48 = vpop.f32.mrb[58].mxu1 }
 0x408   : > { %v3930_v53 = vpop.f32.mrb[59].mxu1 }
 0x409   : > { %v2929_v50 = vpack.c.bf16 %v2873_v11, %v2872_v60  ;;  %v2677_v12 = vadd.f32 %v3928_v21, %v6092_v8  ;;  %v3931_v30 = vadd.f32 %v3930_v53, %v3929_v48 }
 0x40b   : > { %v2838_v54 = vadd.f32 %v6139_v32, %v2677_v12  ;;  %v2680_v23 = vadd.f32 %v3931_v30, %v6092_v8  ;;  %4036 = vmatprep.mubr.msk.bf16.mxu1 %vm992_vm3, %v2929_v50  ;;  %v891_v8 = vadd.f32 %v6196_v18, %v5508_v55  ;;  %v6204_v32 = vld [vmem:[#allocation14] ss:$0 sm:$0xff]  ;;  %v898_v12 = vadd.f32 %v6196_v18, %v5570_v61 }
 0x40c   : > { %v2885_v2 = vadd.f32 %v6204_v32, %v890_v59  ;;  %v2883_v26 = vadd.f32 %v6204_v32, %v888_v44  ;;  %v2889_v63 = vadd.f32 %v6204_v32, %v894_v29  ;;  %v2887_v9 = vadd.f32 %v6204_v32, %v892_v27 }
 0x40d   : > { %v2841_v62 = vadd.f32 %v6144_v51, %v2680_v23  ;;  %v2874_v39 = vmax.f32 %v2838_v54, 0.0  ;;  %v889_v51 = vadd.f32 %v6196_v18, %v5500_v43  ;;  %v2886_v13 = vadd.f32 %v6204_v32, %v891_v8 }
 0x40e   : > { %v2890_v24 = vadd.f32 %v6204_v32, %v895_v20  ;;  %v2888_v4 = vadd.f32 %v6204_v32, %v893_v34  ;;  %v896_v30 = vadd.f32 %v6196_v18, %v5558_v41  ;;  %v899_v54 = vadd.f32 %v6196_v18, %v5575_v5 }
 0x40f   : > { %v2875_v42 = vmax.f32 %v2841_v62, 0.0  ;;  %v2884_v55 = vadd.f32 %v6204_v32, %v889_v51  ;;  %v897_v23 = vadd.f32 %v6196_v18, %v5563_v49  ;;  %v2893_v62 = vadd.f32 %v6204_v32, %v898_v12 }
 0x410   : > { %v2894_v61 = vadd.f32 %v6204_v32, %v899_v54 }
 0x411   : > { %v2930_v3 = vpack.c.bf16 %v2875_v42, %v2874_v39  ;;  %v2891_v42 = vadd.f32 %v6204_v32, %v896_v30  ;;  %v2892_v41 = vadd.f32 %v6204_v32, %v897_v23 }
 0x413   : > { %4037 = vmatmul.mubr.msk.bf16.gmra.mrb[88].mxu1 %vm992_vm3, %v2930_v3 }
 0x442   : > { %v4010_v7 = vpop.f32.mrb[60].mxu1 }
 0x443   : > { %v3158_v1 = vadd.f32 %v4010_v7, %v2885_v2  ;;  %v3029_v52 = vpop.f32.mrb[61].mxu1 }
 0x444   : > { %v3156_v40 = vadd.f32 %v3029_v52, %v2883_v26  ;;  %v4011_v6 = vpop.f32.mrb[62].mxu1 }
 0x445   : > { %v3159_v28 = vadd.f32 %v4011_v6, %v2886_v13  ;;  %v3032_v33 = vpop.f32.mrb[63].mxu1  ;;  %v3190_v46 = vmax.f32 %v3158_v1, 0.0  ;;  %v900_v6 = vadd.f32 %v6196_v18, %v5582_v17 }
 0x446   : > { %v3157_v58 = vadd.f32 %v3032_v33, %v2884_v55  ;;  %v3188_v37 = vmax.f32 %v3156_v40, 0.0  ;;  %v902_v40 = vadd.f32 %v6196_v18, %v5594_v36  ;;  %v903_v55 = vadd.f32 %v6196_v18, %v5599_v45 }
 0x447   : > { %v3191_v43 = vmax.f32 %v3159_v28, 0.0  ;;  %v901_v28 = vadd.f32 %v6196_v18, %v5587_v25 }
 0x448   : > { %v3189_v47 = vmax.f32 %v3157_v58, 0.0  ;;  %v2897_v33 = vadd.f32 %v6204_v32, %v902_v40  ;;  %v2898_v36 = vadd.f32 %v6204_v32, %v903_v55 }
 0x449   : > { %v3733_v19 = vpack.c.bf16 %v3191_v43, %v3190_v46  ;;  %v2895_v46 = vadd.f32 %v6204_v32, %v900_v6  ;;  %v2896_v17 = vadd.f32 %v6204_v32, %v901_v28 }
 0x44a   : > { %v3728_v22 = vpack.c.bf16 %v3189_v47, %v3188_v37 }
 0x44b   : > { %3805 = vst [vmem:[%s5386_s12 + $0x8] sm:$0xff] %v3733_v19  }
 0x44c   : > { %3729 = vst [vmem:[%s5386_s12] sm:$0xff] %v3728_v22  }
 0x459   : > { %v4014_v0 = vpop.f32.mrb[64].mxu1 }
 0x45a   : > { %v3162_v35 = vadd.f32 %v4014_v0, %v2889_v63  ;;  %v3045_v56 = vpop.f32.mrb[65].mxu1 }
 0x45b   : > { %v3160_v14 = vadd.f32 %v3045_v56, %v2887_v9  ;;  %v4015_v16 = vpop.f32.mrb[66].mxu1  ;;  %v906_v9 = vadd.f32 %v6196_v18, %v5618_v15  ;;  %v6416_v56 = vld [vmem:[#allocation25_spill] sm:$0xff] }
 0x45c   : > { %v3163_v38 = vadd.f32 %v4015_v16, %v2890_v24  ;;  %v3048_v31 = vpop.f32.mrb[67].mxu1  ;;  %v3194_v11 = vmax.f32 %v3162_v35, 0.0  ;;  %v904_v35 = vadd.f32 %v6196_v18, %v5606_v57  ;;  %v907_v24 = vadd.f32 %v6196_v18, %v6416_v56 }
 0x45d   : > { %v3161_v60 = vadd.f32 %v3048_v31, %v2888_v4  ;;  %v3192_v21 = vmax.f32 %v3160_v14, 0.0  ;;  %v6417_v14 = vld [vmem:[#allocation24_spill] sm:$0xff]  ;;  %v2901_v4 = vadd.f32 %v6204_v32, %v906_v9 }
 0x45e   : > { %v3195_v10 = vmax.f32 %v3163_v38, 0.0  ;;  %v905_v16 = vadd.f32 %v6196_v18, %v6417_v14  ;;  %v2899_v31 = vadd.f32 %v6204_v32, %v904_v35  ;;  %v2902_v15 = vadd.f32 %v6204_v32, %v907_v24 }
 0x45f   : > { %v3193_v48 = vmax.f32 %v3161_v60, 0.0 }
 0x460   : > { %v3743_v53 = vpack.c.bf16 %v3195_v10, %v3194_v11  ;;  %v2900_v57 = vadd.f32 %v6204_v32, %v905_v16 }
 0x461   : > { %v3738_v50 = vpack.c.bf16 %v3193_v48, %v3192_v21 }
 0x462   : > { %3807 = vst [vmem:[%s5386_s12 + $0x18] sm:$0xff] %v3743_v53  }
 0x463   : > { %3806 = vst [vmem:[%s5386_s12 + $0x10] sm:$0xff] %v3738_v50  }
 0x471   : > { %v4018_v39 = vpop.f32.mrb[68].mxu1 }
 0x472   : > { %v3166_v3 = vadd.f32 %v4018_v39, %v2893_v62  ;;  %v3061_v59 = vpop.f32.mrb[69].mxu1 }
 0x473   : > { %v3164_v44 = vadd.f32 %v3061_v59, %v2891_v42  ;;  %v4019_v8 = vpop.f32.mrb[70].mxu1  ;;  %v6418_v42 = vld [vmem:[#allocation28_spill] sm:$0xff]  ;;  %v6419_v59 = vld [vmem:[#allocation26_spill] sm:$0xff] }
 0x474   : > { %v3167_v51 = vadd.f32 %v4019_v8, %v2894_v61  ;;  %v3064_v5 = vpop.f32.mrb[71].mxu1  ;;  %v3198_v7 = vmax.f32 %v3166_v3, 0.0  ;;  %v910_v3 = vadd.f32 %v6196_v18, %v6418_v42  ;;  %v908_v61 = vadd.f32 %v6196_v18, %v6419_v59 }
 0x475   : > { %v3165_v2 = vadd.f32 %v3064_v5, %v2892_v41  ;;  %v3196_v26 = vmax.f32 %v3164_v44, 0.0  ;;  %v6420_v44 = vld [vmem:[#allocation29_spill] sm:$0xff]  ;;  %v6421_v41 = vld [vmem:[#allocation27_spill] sm:$0xff] }
 0x476   : > { %v3199_v49 = vmax.f32 %v3167_v51, 0.0  ;;  %v911_v8 = vadd.f32 %v6196_v18, %v6420_v44  ;;  %v909_v51 = vadd.f32 %v6196_v18, %v6421_v41  ;;  %v2905_v5 = vadd.f32 %v6204_v32, %v910_v3 }
 0x477   : > { %v3197_v1 = vmax.f32 %v3165_v2, 0.0 }
 0x478   : > { %v3753_v52 = vpack.c.bf16 %v3199_v49, %v3198_v7  ;;  %v2903_v7 = vadd.f32 %v6204_v32, %v908_v61  ;;  %v2904_v40 = vadd.f32 %v6204_v32, %v909_v51 }
 0x479   : > { %v3748_v13 = vpack.c.bf16 %v3197_v1, %v3196_v26  ;;  %v2906_v1 = vadd.f32 %v6204_v32, %v911_v8 }
 0x47a   : > { %3809 = vst [vmem:[%s5386_s12 + $0x28] sm:$0xff] %v3753_v52  }
 0x47b   : > { %3808 = vst [vmem:[%s5386_s12 + $0x20] sm:$0xff] %v3748_v13  }
 0x489   : > { %v4022_v58 = vpop.f32.mrb[72].mxu1 }
 0x48a   : > { %v3170_v43 = vadd.f32 %v4022_v58, %v2897_v33  ;;  %v3077_v37 = vpop.f32.mrb[73].mxu1 }
 0x48b   : > { %v3168_v47 = vadd.f32 %v3077_v37, %v2895_v46  ;;  %v4023_v19 = vpop.f32.mrb[74].mxu1 }
 0x48c   : > { %v3171_v22 = vadd.f32 %v4023_v19, %v2898_v36  ;;  %v3080_v45 = vpop.f32.mrb[75].mxu1  ;;  %v3202_v27 = vmax.f32 %v3170_v43, 0.0 }
 0x48d   : > { %v3169_v29 = vadd.f32 %v3080_v45, %v2896_v17  ;;  %v3200_v20 = vmax.f32 %v3168_v47, 0.0  ;;  %v6422_v47 = vld [vmem:[#allocation32_spill] sm:$0xff]  ;;  %v6423_v17 = vld [vmem:[#allocation30_spill] sm:$0xff]  ;;  %v6424_v45 = vld [vmem:[#allocation33_spill] sm:$0xff] }
 0x48e   : > { %v3203_v25 = vmax.f32 %v3171_v22, 0.0  ;;  %v914_v19 = vadd.f32 %v6196_v18, %v6422_v47  ;;  %v912_v22 = vadd.f32 %v6196_v18, %v6423_v17 }
 0x48f   : > { %v3201_v34 = vmax.f32 %v3169_v29, 0.0  ;;  %v915_v29 = vadd.f32 %v6196_v18, %v6424_v45 }
 0x490   : > { %v3763_v63 = vpack.c.bf16 %v3203_v25, %v3202_v27  ;;  %v6425_v27 = vld [vmem:[#allocation31_spill] sm:$0xff] }
 0x491   : > { %v3758_v0 = vpack.c.bf16 %v3201_v34, %v3200_v20  ;;  %v913_v25 = vadd.f32 %v6196_v18, %v6425_v27  ;;  %v2909_v20 = vadd.f32 %v6204_v32, %v914_v19  ;;  %v2910_v35 = vadd.f32 %v6204_v32, %v915_v29 }
 0x492   : > { %3811 = vst [vmem:[%s5386_s12 + $0x38] sm:$0xff] %v3763_v63   ;;  %v2907_v63 = vadd.f32 %v6204_v32, %v912_v22 }
 0x493   : > { %3810 = vst [vmem:[%s5386_s12 + $0x30] sm:$0xff] %v3758_v0   ;;  %v2908_v14 = vadd.f32 %v6204_v32, %v913_v25 }
 0x4a1   : > { %v4026_v38 = vpop.f32.mrb[76].mxu1 }
 0x4a2   : > { %v3174_v60 = vadd.f32 %v4026_v38, %v2901_v4  ;;  %v3093_v11 = vpop.f32.mrb[77].mxu1 }
 0x4a3   : > { %v3172_v10 = vadd.f32 %v3093_v11, %v2899_v31  ;;  %v4027_v21 = vpop.f32.mrb[78].mxu1 }
 0x4a4   : > { %v3175_v48 = vadd.f32 %v4027_v21, %v2902_v15  ;;  %v3096_v53 = vpop.f32.mrb[79].mxu1  ;;  %v3206_v12 = vmax.f32 %v3174_v60, 0.0 }
 0x4a5   : > { %v3173_v50 = vadd.f32 %v3096_v53, %v2900_v57  ;;  %v3204_v54 = vmax.f32 %v3172_v10, 0.0  ;;  %v6426_v57 = vld [vmem:[#allocation36_spill] sm:$0xff]  ;;  %v6427_v53 = vld [vmem:[#allocation34_spill] sm:$0xff] }
 0x4a6   : > { %v3207_v30 = vmax.f32 %v3175_v48, 0.0  ;;  %v918_v48 = vadd.f32 %v6196_v18, %v6426_v57 }
 0x4a7   : > { %v3205_v23 = vmax.f32 %v3173_v50, 0.0  ;;  %v916_v50 = vadd.f32 %v6196_v18, %v6427_v53 }
 0x4a8   : > { %v3773_v62 = vpack.c.bf16 %v3207_v30, %v3206_v12  ;;  %v6428_v12 = vld [vmem:[#allocation37_spill] sm:$0xff] }
 0x4a9   : > { %v3768_v39 = vpack.c.bf16 %v3205_v23, %v3204_v54  ;;  %v919_v30 = vadd.f32 %v6196_v18, %v6428_v12  ;;  %v6429_v54 = vld [vmem:[#allocation35_spill] sm:$0xff]  ;;  %v2911_v42 = vadd.f32 %v6204_v32, %v916_v50 }
 0x4aa   : > { %3813 = vst [vmem:[%s5386_s12 + $0x48] sm:$0xff] %v3773_v62   ;;  %v917_v23 = vadd.f32 %v6196_v18, %v6429_v54  ;;  %v2913_v62 = vadd.f32 %v6204_v32, %v918_v48 }
 0x4ab   : > { %3812 = vst [vmem:[%s5386_s12 + $0x40] sm:$0xff] %v3768_v39   ;;  %v2914_v61 = vadd.f32 %v6204_v32, %v919_v30 }
 0x4ac   : > { %v2912_v41 = vadd.f32 %v6204_v32, %v917_v23 }
 0x4ba   : > { %v4030_v2 = vpop.f32.mrb[80].mxu1 }
 0x4bb   : > { %v3178_v49 = vadd.f32 %v4030_v2, %v2905_v5  ;;  %v3109_v26 = vpop.f32.mrb[81].mxu1 }
 0x4bc   : > { %v3176_v52 = vadd.f32 %v3109_v26, %v2903_v7  ;;  %v4031_v13 = vpop.f32.mrb[82].mxu1 }
 0x4bd   : > { %v3179_v6 = vadd.f32 %v4031_v13, %v2906_v1  ;;  %v3112_v55 = vpop.f32.mrb[83].mxu1  ;;  %v3210_v33 = vmax.f32 %v3178_v49, 0.0 }
 0x4be   : > { %v3177_v28 = vadd.f32 %v3112_v55, %v2904_v40  ;;  %v3208_v46 = vmax.f32 %v3176_v52, 0.0 }
 0x4bf   : > { %v3211_v58 = vmax.f32 %v3179_v6, 0.0 }
 0x4c0   : > { %v3209_v43 = vmax.f32 %v3177_v28, 0.0 }
 0x4c1   : > { %v3783_v37 = vpack.c.bf16 %v3211_v58, %v3210_v33 }
 0x4c2   : > { %v3778_v36 = vpack.c.bf16 %v3209_v43, %v3208_v46 }
 0x4c3   : > { %3815 = vst [vmem:[%s5386_s12 + $0x58] sm:$0xff] %v3783_v37  }
 0x4c4   : > { %3814 = vst [vmem:[%s5386_s12 + $0x50] sm:$0xff] %v3778_v36  }
 0x4d2   : > { %v4034_v34 = vpop.f32.mrb[84].mxu1 }
 0x4d3   : > { %v3182_v0 = vadd.f32 %v4034_v34, %v2909_v20  ;;  %v3125_v9 = vpop.f32.mrb[85].mxu1 }
 0x4d4   : > { %v3180_v56 = vadd.f32 %v3125_v9, %v2907_v63  ;;  %v4035_v24 = vpop.f32.mrb[86].mxu1 }
 0x4d5   : > { %v3183_v16 = vadd.f32 %v4035_v24, %v2910_v35  ;;  %v3128_v4 = vpop.f32.mrb[87].mxu1  ;;  %v3214_v31 = vmax.f32 %v3182_v0, 0.0 }
 0x4d6   : > { %v3181_v38 = vadd.f32 %v3128_v4, %v2908_v14  ;;  %v3212_v11 = vmax.f32 %v3180_v56, 0.0 }
 0x4d7   : > { %v3215_v60 = vmax.f32 %v3183_v16, 0.0 }
 0x4d8   : > { %v3213_v15 = vmax.f32 %v3181_v38, 0.0 }
 0x4d9   : > { %v3793_v10 = vpack.c.bf16 %v3215_v60, %v3214_v31 }
 0x4da   : > { %v3788_v21 = vpack.c.bf16 %v3213_v15, %v3212_v11 }
 0x4db   : > { %3817 = vst [vmem:[%s5386_s12 + $0x68] sm:$0xff] %v3793_v10  }
 0x4dc   : > { %3816 = vst [vmem:[%s5386_s12 + $0x60] sm:$0xff] %v3788_v21  }
 0x4e6   : > { %v4038_v39 = vpop.f32.mrb[88].mxu1 }
 0x4e7   : > { %v3186_v3 = vadd.f32 %v4038_v39, %v2913_v62  ;;  %v3141_v59 = vpop.f32.mrb[89].mxu1 }
 0x4e8   : > { %v3184_v44 = vadd.f32 %v3141_v59, %v2911_v42  ;;  %v4039_v8 = vpop.f32.mrb[90].mxu1 }
 0x4e9   : > { %v3187_v51 = vadd.f32 %v4039_v8, %v2914_v61  ;;  %v3144_v5 = vpop.f32.mrb[91].mxu1  ;;  %v3218_v2 = vmax.f32 %v3186_v3, 0.0 }
 0x4ea   : > { %v3185_v18 = vadd.f32 %v3144_v5, %v2912_v41  ;;  %v3216_v49 = vmax.f32 %v3184_v44, 0.0 }
 0x4eb   : > { %v3219_v7 = vmax.f32 %v3187_v51, 0.0 }
 0x4ec   : > { %v3217_v26 = vmax.f32 %v3185_v18, 0.0 }
 0x4ed   : > { %v3803_v1 = vpack.c.bf16 %v3219_v7, %v3218_v2 }
 0x4ee   : > { %v3798_v52 = vpack.c.bf16 %v3217_v26, %v3216_v49 }
 0x4ef   : > { %3819 = vst [vmem:[%s5386_s12 + $0x78] sm:$0xff] %v3803_v1  }
 0x4f0   : > { %3818 = vst [vmem:[%s5386_s12 + $0x70] sm:$0xff] %v3798_v52  }
 0x4f1   : > { %4952 = shalt.err (!%p4949_p3)
}
 0x4f2   : > { %s4953_s12 = scalar_lea.hbm %s6315_s24, 2048  ;;  %s4957_s25 = scalar_lea.hbm %s6373_s8, 4096 }
 0x4f3   : > { %p4954_p4 = scmp.ne.s32.totalorder %s6315_s24, %s4953_s12  ;;  %p4958_p2 = scmp.lt.u32.totalorder %s6315_s24, %s6373_s8 }
 0x4f4   : > { %p4959_p8 = scmp.lt.u32.totalorder %s4957_s25, %s4953_s12  ;;  %p4961_p1 = scmp.lt.u32.totalorder %s4953_s12, %s6315_s24 }
 0x4f5   : > { %p4955_p0 = pnand %p4954_p4, %p6430_p11 }
 0x4f6   : > { %p4960_p5 = por %p4959_p8, %p4958_p2 }
 0x4f7   : > { %p4956_p6 = pneg %p4955_p0 }
 0x4f8   : > { %p4962_p12 = por %p4961_p1, %p4960_p5 }
 0x4fa   : > { %p4963_p13 = pnand %p4962_p12, %p4956_p6 }
 0x4fc   : > { %4966 = shalt.err (!%p4963_p13)
}
 0x4fd   : > { %s5041_s1 = smov 4  }
 0x4fe   : > { %4086 = dma.vmem_to_hbm [thread:$0]  (%p6430_p11), %s6317_s23, 2048, %s6315_s24, %s3381_s11, %s5038_s15, %s5038_s15, %s5041_s1  }
 0x4ff PF: > { %s3409_s21 = sand.u32 1, %s5009_s27   ;;  %p6431_p9 = scmp.ne.s32.totalorder %s6389_s17, 0 }
 0x500   : > { %p6432_p7 = scmp.ge.s32.totalorder %s5021_s30, 2  ;;  %s3410_s16 = scalar_lea.sflag [#allocation5], %s3409_s21 }
 0x502   : > { %p4115_p10 = pnand %p6432_p7, %p6431_p9 }
 0x504   : > { %5004 = dma.done.wait (!%p4115_p10), %s3410_s16, 2048  }
 0x505   : > { %5006 = vsyncadd (!%p4115_p10), %s3410_s16, 4294965248  ;;  %p25_p3 = scmp.ge.s32.totalorder %s5284_s13, 4   ;;  %s6433_s27 = smov %s5013_s28 }
 0x506   : > { %s6434_s28 = smov %s5017_s29  ;;  %s6435_s29 = smov %s5296_s10 }
 0x507   : > { %s6436_s30 = smov %s5284_s13  ;;  %27 = sbr.rel (!%p25_p3) target bundleno = 11 (0xb), region = 131 }
 0x50e   :  { %3415 = vsyncpa [#allocation4], 1 }
 0x50f   :  { %3417 = vsyncpa [#allocation4 + $0x1], 1 }
 0x510   :  { %3418 = vsyncpa [#allocation7], 1 }
 0x511   :  { %3419 = vsyncpa [#allocation10], 1 }
 0x512   :  { %3420 = vsyncpa [#allocation13], 1 }
 0x513   :  { %3421 = vsyncpa [#allocation16], 1 }
 0x514   :  { %3422 = vsyncpa [#allocation5], 1 }
 0x515   :  { %3424 = vsyncpa [#allocation5 + $0x1], 1 }

</bundles_post_ra>
